<compile_context>
chip_gen: v7x
topology: tpu7x:2x2x1
jax: 0.10.0
libtpu: 0.0.40
codegen_flags: <defaults>
</compile_context>

<pallas_src>
import math

import jax
import jax.numpy as jnp
from jax import lax
from jax.experimental import pallas as pl
from jax.experimental.pallas import tpu as pltpu


# ----------------------------- fused Pallas kernel ------------------------------ #

def _make_fused_kernel(B, H, L, T1, T2, F):
    H2 = 2 * H

    def kernel(x1_ref, x2_ref, wih0_ref, wihr_ref, whh_ref, b_ref, out_ref, *scratch):
        bufs = (scratch[:L], scratch[L:2 * L])     # per-model per-layer VMEM buffers
        x_refs = (x1_ref, x2_ref)
        seq_lens = (T1, T2)

        def run_stack(model):
            """Bidirectional L-layer tanh RNN for one model.  Final-layer output ends
            up time-major with fwd|bwd packed on lanes in bufs[model][L-1]."""
            T = seq_lens[model]
            in_ref = x_refs[model]
            for layer in range(L):
                in_dim = F if layer == 0 else H2
                if layer == 0:
                    wih = wih0_ref[model]                 # (F, 2H)
                else:
                    wih = wihr_ref[layer - 1, model]      # (2H, 2H)
                whh = whh_ref[layer, model]               # (2H, 2H) block-diagonal
                bias = b_ref[layer, model]                # (1, 2H)
                out_buf = bufs[model][layer]              # (T, B, 2H) VMEM scratch

                # Hoisted input projection: one matmul for the whole sequence,
                # both directions at once (lane-packed), bias folded in.
                x_all = in_ref[...]                       # (T, B, in_dim)
                xw = jnp.dot(x_all.reshape(T * B, in_dim), wih,
                             preferred_element_type=jnp.float32) + bias
                xw = xw.reshape(T, B, H2)                 # [:, :, :H] fwd, [:, :, H:] bwd

                # Recurrence: packed state [h_fwd | h_bwd]; fwd walks time t = 0..T-1,
                # bwd walks time T-1-t.  Block-diagonal W_hh keeps directions separate.
                h = jnp.zeros((B, H2), jnp.float32)
                for t in range(T):                        # static, fully unrolled
                    tb = T - 1 - t
                    u = jnp.concatenate([xw[t, :, :H], xw[tb, :, H:]], axis=-1)
                    h = jnp.tanh(u + jnp.dot(h, whh,
                                             preferred_element_type=jnp.float32))
                    out_buf[t, :, 0:H] = h[:, 0:H]        # fwd hidden at time t
                    out_buf[tb, :, H:H2] = h[:, H:H2]     # bwd hidden at time T-1-t
                in_ref = out_buf
            return bufs[model][L - 1]

        o1_ref = run_stack(0)      # (T1, B, 2H)
        o2_ref = run_stack(1)      # (T2, B, 2H)

        # Merge (fused, no HBM round-trip): result[b] = out1[b] @ out2[b]^T.
        o1 = o1_ref[...]
        o2 = o2_ref[...]
        for b in range(B):                                # static, B is tiny
            out_ref[b] = lax.dot_general(
                o1[:, b, :], o2[:, b, :],
                dimension_numbers=(((1,), (1,)), ((), ())),
                preferred_element_type=jnp.float32,
            ).astype(out_ref.dtype)

    return kernel


def birnn_merge_pallas(x_ag, x_ab, packed):
    """x_ag: (B, T1, F), x_ab: (B, T2, F) batch-first -> (B, T1, T2)."""
    wih0, wihr, whh, bias = packed
    B, T1, F = x_ag.shape
    _, T2, _ = x_ab.shape
    L, _, H2, _ = whh.shape
    H = H2 // 2

    # Time-major inputs for the kernel (one cheap transpose per input; everything
    # else, including direction reversal and layer concat, happens inside the kernel).
    x1 = jnp.transpose(x_ag, (1, 0, 2))
    x2 = jnp.transpose(x_ab, (1, 0, 2))

    kernel = _make_fused_kernel(B, H, L, T1, T2, F)
    scratch = ([pltpu.VMEM((T1, B, H2), jnp.float32) for _ in range(L)]
               + [pltpu.VMEM((T2, B, H2), jnp.float32) for _ in range(L)])

    return pl.pallas_call(
        kernel,
        out_shape=jax.ShapeDtypeStruct((B, T1, T2), jnp.float32),
        grid=(1,),
        in_specs=[
            pl.BlockSpec((T1, B, F), lambda i: (0, 0, 0)),
            pl.BlockSpec((T2, B, F), lambda i: (0, 0, 0)),
            pl.BlockSpec(wih0.shape, lambda i: (0, 0, 0)),
            pl.BlockSpec(wihr.shape, lambda i: (0, 0, 0, 0)),
            pl.BlockSpec(whh.shape, lambda i: (0, 0, 0, 0)),
            pl.BlockSpec(bias.shape, lambda i: (0, 0, 0, 0)),
        ],
        out_specs=pl.BlockSpec((B, T1, T2), lambda i: (0, 0, 0)),
        scratch_shapes=scratch,
        compiler_params=pltpu.CompilerParams(dimension_semantics=("arbitrary",)),
    )(x1, x2, wih0, wihr, whh, bias)


# ------------------------------ parameters ------------------------------ #

def init_birnn_params(key, input_size, hidden_size, num_layers):
    """Params mimicking nn.RNN init (uniform in [-1/sqrt(H), 1/sqrt(H)]).

    Stored pre-transposed: W_ih^T (in_dim, H), W_hh^T (H, H), bias (1, H) = b_ih + b_hh,
    per layer, per direction ('f'/'b')."""
    k = 1.0 / math.sqrt(hidden_size)
    layers = []
    for layer in range(num_layers):
        in_dim = input_size if layer == 0 else 2 * hidden_size
        p = {}
        for d in ("f", "b"):
            key, k1, k2, k3, k4 = jax.random.split(key, 5)
            p[f"wih_{d}"] = jax.random.uniform(k1, (in_dim, hidden_size), jnp.float32, -k, k)
            p[f"whh_{d}"] = jax.random.uniform(k2, (hidden_size, hidden_size), jnp.float32, -k, k)
            b_ih = jax.random.uniform(k3, (hidden_size,), jnp.float32, -k, k)
            b_hh = jax.random.uniform(k4, (hidden_size,), jnp.float32, -k, k)
            p[f"b_{d}"] = (b_ih + b_hh).reshape(1, hidden_size)
        layers.append(p)
    return layers, key


def pack_params(params1, params2, hidden_size, num_layers):
    """Pack per-direction weights into the lane-packed layout the kernel expects.

    wih0: (2, F, 2H)                 [Wih_f^T | Wih_b^T] for layer 0, per model
    wihr: (max(L-1,1), 2, 2H, 2H)    same for layers >= 1 (dummy zeros if L == 1)
    whh : (L, 2, 2H, 2H)             block-diag(Whh_f^T, Whh_b^T); off-diag exactly 0
    bias: (L, 2, 1, 2H)              [b_f | b_b]
    """
    H = hidden_size
    H2 = 2 * H
    L = num_layers
    models = (params1, params2)

    wih0 = jnp.stack(
        [jnp.concatenate([m[0]["wih_f"], m[0]["wih_b"]], axis=1) for m in models])
    if L > 1:
        wihr = jnp.stack([
            jnp.stack([jnp.concatenate([m[l]["wih_f"], m[l]["wih_b"]], axis=1)
                       for m in models])
            for l in range(1, L)])
    else:
        wihr = jnp.zeros((1, 2, H2, H2), jnp.float32)   # dummy, never read

    whh_layers, b_layers = [], []
    for l in range(L):
        whh_models, b_models = [], []
        for m in models:
            blk = jnp.zeros((H2, H2), jnp.float32)
            blk = blk.at[:H, :H].set(m[l]["whh_f"])
            blk = blk.at[H:, H:].set(m[l]["whh_b"])
            whh_models.append(blk)
            b_models.append(jnp.concatenate([m[l]["b_f"], m[l]["b_b"]], axis=1))
        whh_layers.append(jnp.stack(whh_models))
        b_layers.append(jnp.stack(b_models))
    whh = jnp.stack(whh_layers)
    bias = jnp.stack(b_layers)
    return wih0, wihr, whh, bias


# ------------------------------- pure-JAX ref ------------------------------- #

def _ref_rnn_layer(x_tbf, wih_t, whh_t, b):
    def step(h, x_t):
        h_new = jnp.tanh(x_t @ wih_t + h @ whh_t + b)
        return h_new, h_new

    h0 = jnp.zeros((x_tbf.shape[1], whh_t.shape[0]), jnp.float32)
    _, ys = lax.scan(step, h0, x_tbf)
    return ys


def birnn_forward_ref(x_btf, layers):
    x = jnp.transpose(x_btf, (1, 0, 2))
    for p in layers:
        out_f = _ref_rnn_layer(x, p["wih_f"], p["whh_f"], p["b_f"])
        out_b = jnp.flip(
            _ref_rnn_layer(jnp.flip(x, axis=0), p["wih_b"], p["whh_b"], p["b_b"]), axis=0)
        x = jnp.concatenate([out_f, out_b], axis=-1)
    return jnp.transpose(x, (1, 0, 2))


def birnn_merge_ref(x_ag, x_ab, params1, params2):
    out1 = birnn_forward_ref(x_ag, params1)
    out2 = birnn_forward_ref(x_ab, params2)
    return jnp.einsum("btd,bsd->bts", out1, out2)


# ---------------------------------- main ----------------------------------- #

if __name__ == "__main__":
    B = 2
    T1 = 8       # seq len of X_ag
    T2 = 6       # seq len of X_ab
    INPUT_SIZE = 16
    HIDDEN = 32
    NUM_LAYERS = 2

    key = jax.random.PRNGKey(0)
    params1, key = init_birnn_params(key, INPUT_SIZE, HIDDEN, NUM_LAYERS)
    params2, key = init_birnn_params(key, INPUT_SIZE, HIDDEN, NUM_LAYERS)
    packed = pack_params(params1, params2, HIDDEN, NUM_LAYERS)

    key, kx1, kx2 = jax.random.split(key, 3)
    x_ag = jax.random.normal(kx1, (B, T1, INPUT_SIZE), jnp.float32)
    x_ab = jax.random.normal(kx2, (B, T2, INPUT_SIZE), jnp.float32)

    result = jax.block_until_ready(birnn_merge_pallas(x_ag, x_ab, packed))
    assert result.shape == (B, T1, T2), result.shape

    ref = jax.block_until_ready(birnn_merge_ref(x_ag, x_ab, params1, params2))
    assert jnp.allclose(result, ref, atol=1e-4, rtol=1e-4), float(
        jnp.max(jnp.abs(result - ref)))

    print("KERNEL_OK")
</pallas_src>

<mosaic_0001>
module attributes {stable_mosaic.version = 11 : i64} {
  func.func @kernel(%arg0: i32, %arg1: memref<8x2x16xf32, #tpu.memory_space<vmem>>, %arg2: memref<6x2x16xf32, #tpu.memory_space<vmem>>, %arg3: memref<2x16x64xf32, #tpu.memory_space<vmem>>, %arg4: memref<1x2x64x64xf32, #tpu.memory_space<vmem>>, %arg5: memref<2x2x64x64xf32, #tpu.memory_space<vmem>>, %arg6: memref<2x2x1x64xf32, #tpu.memory_space<vmem>>, %arg7: memref<2x8x6xf32, #tpu.memory_space<vmem>>, %arg8: memref<8x2x64xf32, #tpu.memory_space<vmem>>, %arg9: memref<8x2x64xf32, #tpu.memory_space<vmem>>, %arg10: memref<6x2x64xf32, #tpu.memory_space<vmem>>, %arg11: memref<6x2x64xf32, #tpu.memory_space<vmem>>) attributes {dimension_semantics = [#tpu.dimension_semantics<arbitrary>], iteration_bounds = array<i64: 1>, scalar_prefetch = 0 : i64, scratch_operands = 4 : i64, tpu.core_type = #tpu.core_type<tc>, window_params = [{pipeline_mode = #tpu.pipeline_mode<synchronous>, transform_indices = @transform_0, window_bounds = array<i64: 8, 2, 16>}, {pipeline_mode = #tpu.pipeline_mode<synchronous>, transform_indices = @transform_1, window_bounds = array<i64: 6, 2, 16>}, {pipeline_mode = #tpu.pipeline_mode<synchronous>, transform_indices = @transform_2, window_bounds = array<i64: 2, 16, 64>}, {pipeline_mode = #tpu.pipeline_mode<synchronous>, transform_indices = @transform_3, window_bounds = array<i64: 1, 2, 64, 64>}, {pipeline_mode = #tpu.pipeline_mode<synchronous>, transform_indices = @transform_4, window_bounds = array<i64: 2, 2, 64, 64>}, {pipeline_mode = #tpu.pipeline_mode<synchronous>, transform_indices = @transform_5, window_bounds = array<i64: 2, 2, 1, 64>}, {pipeline_mode = #tpu.pipeline_mode<synchronous>, transform_indices = @transform_6, window_bounds = array<i64: 2, 8, 6>}]} {
    %c0 = arith.constant 0 : index
    %c0_0 = arith.constant 0 : index
    %c0_1 = arith.constant 0 : index
    %0 = vector.load %arg3[%c0, %c0_0, %c0_1] : memref<2x16x64xf32, #tpu.memory_space<vmem>>, vector<1x16x64xf32>
    %1 = vector.shape_cast %0 : vector<1x16x64xf32> to vector<16x64xf32>
    %c0_2 = arith.constant 0 : index
    %c0_3 = arith.constant 0 : index
    %c0_4 = arith.constant 0 : index
    %c0_5 = arith.constant 0 : index
    %2 = vector.load %arg5[%c0_2, %c0_3, %c0_4, %c0_5] : memref<2x2x64x64xf32, #tpu.memory_space<vmem>>, vector<1x1x64x64xf32>
    %3 = vector.shape_cast %2 : vector<1x1x64x64xf32> to vector<64x64xf32>
    %c0_6 = arith.constant 0 : index
    %c0_7 = arith.constant 0 : index
    %c0_8 = arith.constant 0 : index
    %c0_9 = arith.constant 0 : index
    %4 = vector.load %arg6[%c0_6, %c0_7, %c0_8, %c0_9] : memref<2x2x1x64xf32, #tpu.memory_space<vmem>>, vector<1x1x1x64xf32>
    %5 = vector.shape_cast %4 : vector<1x1x1x64xf32> to vector<1x64xf32>
    %c0_10 = arith.constant 0 : index
    %c0_11 = arith.constant 0 : index
    %c0_12 = arith.constant 0 : index
    %6 = vector.load %arg1[%c0_10, %c0_11, %c0_12] : memref<8x2x16xf32, #tpu.memory_space<vmem>>, vector<8x2x16xf32>
    %7 = vector.shape_cast %6 : vector<8x2x16xf32> to vector<16x16xf32>
    %cst = arith.constant dense<0.000000e+00> : vector<16x64xf32>
    %8 = tpu.matmul %7, %1, %cst {dimension_numbers = #tpu.dot_dimension_numbers<[1], [0], [0], [1], [0, 0, 1, 1], [], []>} : vector<16x16xf32>, vector<16x64xf32>, vector<16x64xf32> -> vector<16x64xf32>
    %9 = vector.broadcast %5 : vector<1x64xf32> to vector<16x64xf32>
    %10 = arith.addf %8, %9 : vector<16x64xf32>
    %11 = vector.shape_cast %10 : vector<16x64xf32> to vector<8x2x64xf32>
    %cst_13 = arith.constant 0.000000e+00 : f32
    %12 = vector.broadcast %cst_13 : f32 to vector<2x64xf32>
    %13 = vector.extract_strided_slice %11 {offsets = [0, 0, 0], sizes = [1, 2, 32], strides = [1, 1, 1]} : vector<8x2x64xf32> to vector<1x2x32xf32>
    %14 = vector.shape_cast %13 : vector<1x2x32xf32> to vector<2x32xf32>
    %15 = vector.extract_strided_slice %11 {offsets = [7, 0, 32], sizes = [1, 2, 32], strides = [1, 1, 1]} : vector<8x2x64xf32> to vector<1x2x32xf32>
    %16 = vector.shape_cast %15 : vector<1x2x32xf32> to vector<2x32xf32>
    %17 = tpu.concatenate %14, %16 in 1 : vector<2x32xf32>, vector<2x32xf32> -> vector<2x64xf32>
    %cst_14 = arith.constant dense<0.000000e+00> : vector<2x64xf32>
    %18 = tpu.matmul %12, %3, %cst_14 {dimension_numbers = #tpu.dot_dimension_numbers<[1], [0], [0], [1], [0, 0, 1, 1], [], []>} : vector<2x64xf32>, vector<64x64xf32>, vector<2x64xf32> -> vector<2x64xf32>
    %19 = arith.addf %17, %18 : vector<2x64xf32>
    %20 = math.tanh %19 : vector<2x64xf32>
    %21 = vector.extract_strided_slice %20 {offsets = [0, 0], sizes = [2, 32], strides = [1, 1]} : vector<2x64xf32> to vector<2x32xf32>
    %c0_15 = arith.constant 0 : index
    %c0_16 = arith.constant 0 : index
    %c0_17 = arith.constant 0 : index
    %22 = vector.load %arg8[%c0_15, %c0_16, %c0_17] : memref<8x2x64xf32, #tpu.memory_space<vmem>>, vector<1x2x32xf32>
    %23 = vector.shape_cast %22 : vector<1x2x32xf32> to vector<2x32xf32>
    %24 = vector.shape_cast %21 : vector<2x32xf32> to vector<1x2x32xf32>
    tpu.vector_store %arg8[%c0_15, %c0_16, %c0_17], %24 {strides = array<i32>} : memref<8x2x64xf32, #tpu.memory_space<vmem>>, vector<1x2x32xf32>,
    %25 = vector.extract_strided_slice %20 {offsets = [0, 32], sizes = [2, 32], strides = [1, 1]} : vector<2x64xf32> to vector<2x32xf32>
    %c7 = arith.constant 7 : index
    %c0_18 = arith.constant 0 : index
    %c32 = arith.constant 32 : index
    %26 = vector.load %arg8[%c7, %c0_18, %c32] : memref<8x2x64xf32, #tpu.memory_space<vmem>>, vector<1x2x32xf32>
    %27 = vector.shape_cast %26 : vector<1x2x32xf32> to vector<2x32xf32>
    %28 = vector.shape_cast %25 : vector<2x32xf32> to vector<1x2x32xf32>
    tpu.vector_store %arg8[%c7, %c0_18, %c32], %28 {strides = array<i32>} : memref<8x2x64xf32, #tpu.memory_space<vmem>>, vector<1x2x32xf32>,
    %29 = vector.extract_strided_slice %11 {offsets = [1, 0, 0], sizes = [1, 2, 32], strides = [1, 1, 1]} : vector<8x2x64xf32> to vector<1x2x32xf32>
    %30 = vector.shape_cast %29 : vector<1x2x32xf32> to vector<2x32xf32>
    %31 = vector.extract_strided_slice %11 {offsets = [6, 0, 32], sizes = [1, 2, 32], strides = [1, 1, 1]} : vector<8x2x64xf32> to vector<1x2x32xf32>
    %32 = vector.shape_cast %31 : vector<1x2x32xf32> to vector<2x32xf32>
    %33 = tpu.concatenate %30, %32 in 1 : vector<2x32xf32>, vector<2x32xf32> -> vector<2x64xf32>
    %cst_19 = arith.constant dense<0.000000e+00> : vector<2x64xf32>
    %34 = tpu.matmul %20, %3, %cst_19 {dimension_numbers = #tpu.dot_dimension_numbers<[1], [0], [0], [1], [0, 0, 1, 1], [], []>} : vector<2x64xf32>, vector<64x64xf32>, vector<2x64xf32> -> vector<2x64xf32>
    %35 = arith.addf %33, %34 : vector<2x64xf32>
    %36 = math.tanh %35 : vector<2x64xf32>
    %37 = vector.extract_strided_slice %36 {offsets = [0, 0], sizes = [2, 32], strides = [1, 1]} : vector<2x64xf32> to vector<2x32xf32>
    %c1 = arith.constant 1 : index
    %c0_20 = arith.constant 0 : index
    %c0_21 = arith.constant 0 : index
    %38 = vector.load %arg8[%c1, %c0_20, %c0_21] : memref<8x2x64xf32, #tpu.memory_space<vmem>>, vector<1x2x32xf32>
    %39 = vector.shape_cast %38 : vector<1x2x32xf32> to vector<2x32xf32>
    %40 = vector.shape_cast %37 : vector<2x32xf32> to vector<1x2x32xf32>
    tpu.vector_store %arg8[%c1, %c0_20, %c0_21], %40 {strides = array<i32>} : memref<8x2x64xf32, #tpu.memory_space<vmem>>, vector<1x2x32xf32>,
    %41 = vector.extract_strided_slice %36 {offsets = [0, 32], sizes = [2, 32], strides = [1, 1]} : vector<2x64xf32> to vector<2x32xf32>
    %c6 = arith.constant 6 : index
    %c0_22 = arith.constant 0 : index
    %c32_23 = arith.constant 32 : index
    %42 = vector.load %arg8[%c6, %c0_22, %c32_23] : memref<8x2x64xf32, #tpu.memory_space<vmem>>, vector<1x2x32xf32>
    %43 = vector.shape_cast %42 : vector<1x2x32xf32> to vector<2x32xf32>
    %44 = vector.shape_cast %41 : vector<2x32xf32> to vector<1x2x32xf32>
    tpu.vector_store %arg8[%c6, %c0_22, %c32_23], %44 {strides = array<i32>} : memref<8x2x64xf32, #tpu.memory_space<vmem>>, vector<1x2x32xf32>,
    %45 = vector.extract_strided_slice %11 {offsets = [2, 0, 0], sizes = [1, 2, 32], strides = [1, 1, 1]} : vector<8x2x64xf32> to vector<1x2x32xf32>
    %46 = vector.shape_cast %45 : vector<1x2x32xf32> to vector<2x32xf32>
    %47 = vector.extract_strided_slice %11 {offsets = [5, 0, 32], sizes = [1, 2, 32], strides = [1, 1, 1]} : vector<8x2x64xf32> to vector<1x2x32xf32>
    %48 = vector.shape_cast %47 : vector<1x2x32xf32> to vector<2x32xf32>
    %49 = tpu.concatenate %46, %48 in 1 : vector<2x32xf32>, vector<2x32xf32> -> vector<2x64xf32>
    %cst_24 = arith.constant dense<0.000000e+00> : vector<2x64xf32>
    %50 = tpu.matmul %36, %3, %cst_24 {dimension_numbers = #tpu.dot_dimension_numbers<[1], [0], [0], [1], [0, 0, 1, 1], [], []>} : vector<2x64xf32>, vector<64x64xf32>, vector<2x64xf32> -> vector<2x64xf32>
    %51 = arith.addf %49, %50 : vector<2x64xf32>
    %52 = math.tanh %51 : vector<2x64xf32>
    %53 = vector.extract_strided_slice %52 {offsets = [0, 0], sizes = [2, 32], strides = [1, 1]} : vector<2x64xf32> to vector<2x32xf32>
    %c2 = arith.constant 2 : index
    %c0_25 = arith.constant 0 : index
    %c0_26 = arith.constant 0 : index
    %54 = vector.load %arg8[%c2, %c0_25, %c0_26] : memref<8x2x64xf32, #tpu.memory_space<vmem>>, vector<1x2x32xf32>
    %55 = vector.shape_cast %54 : vector<1x2x32xf32> to vector<2x32xf32>
    %56 = vector.shape_cast %53 : vector<2x32xf32> to vector<1x2x32xf32>
    tpu.vector_store %arg8[%c2, %c0_25, %c0_26], %56 {strides = array<i32>} : memref<8x2x64xf32, #tpu.memory_space<vmem>>, vector<1x2x32xf32>,
    %57 = vector.extract_strided_slice %52 {offsets = [0, 32], sizes = [2, 32], strides = [1, 1]} : vector<2x64xf32> to vector<2x32xf32>
    %c5 = arith.constant 5 : index
    %c0_27 = arith.constant 0 : index
    %c32_28 = arith.constant 32 : index
    %58 = vector.load %arg8[%c5, %c0_27, %c32_28] : memref<8x2x64xf32, #tpu.memory_space<vmem>>, vector<1x2x32xf32>
    %59 = vector.shape_cast %58 : vector<1x2x32xf32> to vector<2x32xf32>
    %60 = vector.shape_cast %57 : vector<2x32xf32> to vector<1x2x32xf32>
    tpu.vector_store %arg8[%c5, %c0_27, %c32_28], %60 {strides = array<i32>} : memref<8x2x64xf32, #tpu.memory_space<vmem>>, vector<1x2x32xf32>,
    %61 = vector.extract_strided_slice %11 {offsets = [3, 0, 0], sizes = [1, 2, 32], strides = [1, 1, 1]} : vector<8x2x64xf32> to vector<1x2x32xf32>
    %62 = vector.shape_cast %61 : vector<1x2x32xf32> to vector<2x32xf32>
    %63 = vector.extract_strided_slice %11 {offsets = [4, 0, 32], sizes = [1, 2, 32], strides = [1, 1, 1]} : vector<8x2x64xf32> to vector<1x2x32xf32>
    %64 = vector.shape_cast %63 : vector<1x2x32xf32> to vector<2x32xf32>
    %65 = tpu.concatenate %62, %64 in 1 : vector<2x32xf32>, vector<2x32xf32> -> vector<2x64xf32>
    %cst_29 = arith.constant dense<0.000000e+00> : vector<2x64xf32>
    %66 = tpu.matmul %52, %3, %cst_29 {dimension_numbers = #tpu.dot_dimension_numbers<[1], [0], [0], [1], [0, 0, 1, 1], [], []>} : vector<2x64xf32>, vector<64x64xf32>, vector<2x64xf32> -> vector<2x64xf32>
    %67 = arith.addf %65, %66 : vector<2x64xf32>
    %68 = math.tanh %67 : vector<2x64xf32>
    %69 = vector.extract_strided_slice %68 {offsets = [0, 0], sizes = [2, 32], strides = [1, 1]} : vector<2x64xf32> to vector<2x32xf32>
    %c3 = arith.constant 3 : index
    %c0_30 = arith.constant 0 : index
    %c0_31 = arith.constant 0 : index
    %70 = vector.load %arg8[%c3, %c0_30, %c0_31] : memref<8x2x64xf32, #tpu.memory_space<vmem>>, vector<1x2x32xf32>
    %71 = vector.shape_cast %70 : vector<1x2x32xf32> to vector<2x32xf32>
    %72 = vector.shape_cast %69 : vector<2x32xf32> to vector<1x2x32xf32>
    tpu.vector_store %arg8[%c3, %c0_30, %c0_31], %72 {strides = array<i32>} : memref<8x2x64xf32, #tpu.memory_space<vmem>>, vector<1x2x32xf32>,
    %73 = vector.extract_strided_slice %68 {offsets = [0, 32], sizes = [2, 32], strides = [1, 1]} : vector<2x64xf32> to vector<2x32xf32>
    %c4 = arith.constant 4 : index
    %c0_32 = arith.constant 0 : index
    %c32_33 = arith.constant 32 : index
    %74 = vector.load %arg8[%c4, %c0_32, %c32_33] : memref<8x2x64xf32, #tpu.memory_space<vmem>>, vector<1x2x32xf32>
    %75 = vector.shape_cast %74 : vector<1x2x32xf32> to vector<2x32xf32>
    %76 = vector.shape_cast %73 : vector<2x32xf32> to vector<1x2x32xf32>
    tpu.vector_store %arg8[%c4, %c0_32, %c32_33], %76 {strides = array<i32>} : memref<8x2x64xf32, #tpu.memory_space<vmem>>, vector<1x2x32xf32>,
    %77 = vector.extract_strided_slice %11 {offsets = [4, 0, 0], sizes = [1, 2, 32], strides = [1, 1, 1]} : vector<8x2x64xf32> to vector<1x2x32xf32>
    %78 = vector.shape_cast %77 : vector<1x2x32xf32> to vector<2x32xf32>
    %79 = vector.extract_strided_slice %11 {offsets = [3, 0, 32], sizes = [1, 2, 32], strides = [1, 1, 1]} : vector<8x2x64xf32> to vector<1x2x32xf32>
    %80 = vector.shape_cast %79 : vector<1x2x32xf32> to vector<2x32xf32>
    %81 = tpu.concatenate %78, %80 in 1 : vector<2x32xf32>, vector<2x32xf32> -> vector<2x64xf32>
    %cst_34 = arith.constant dense<0.000000e+00> : vector<2x64xf32>
    %82 = tpu.matmul %68, %3, %cst_34 {dimension_numbers = #tpu.dot_dimension_numbers<[1], [0], [0], [1], [0, 0, 1, 1], [], []>} : vector<2x64xf32>, vector<64x64xf32>, vector<2x64xf32> -> vector<2x64xf32>
    %83 = arith.addf %81, %82 : vector<2x64xf32>
    %84 = math.tanh %83 : vector<2x64xf32>
    %85 = vector.extract_strided_slice %84 {offsets = [0, 0], sizes = [2, 32], strides = [1, 1]} : vector<2x64xf32> to vector<2x32xf32>
    %c4_35 = arith.constant 4 : index
    %c0_36 = arith.constant 0 : index
    %c0_37 = arith.constant 0 : index
    %86 = vector.load %arg8[%c4_35, %c0_36, %c0_37] : memref<8x2x64xf32, #tpu.memory_space<vmem>>, vector<1x2x32xf32>
    %87 = vector.shape_cast %86 : vector<1x2x32xf32> to vector<2x32xf32>
    %88 = vector.shape_cast %85 : vector<2x32xf32> to vector<1x2x32xf32>
    tpu.vector_store %arg8[%c4_35, %c0_36, %c0_37], %88 {strides = array<i32>} : memref<8x2x64xf32, #tpu.memory_space<vmem>>, vector<1x2x32xf32>,
    %89 = vector.extract_strided_slice %84 {offsets = [0, 32], sizes = [2, 32], strides = [1, 1]} : vector<2x64xf32> to vector<2x32xf32>
    %c3_38 = arith.constant 3 : index
    %c0_39 = arith.constant 0 : index
    %c32_40 = arith.constant 32 : index
    %90 = vector.load %arg8[%c3_38, %c0_39, %c32_40] : memref<8x2x64xf32, #tpu.memory_space<vmem>>, vector<1x2x32xf32>
    %91 = vector.shape_cast %90 : vector<1x2x32xf32> to vector<2x32xf32>
    %92 = vector.shape_cast %89 : vector<2x32xf32> to vector<1x2x32xf32>
    tpu.vector_store %arg8[%c3_38, %c0_39, %c32_40], %92 {strides = array<i32>} : memref<8x2x64xf32, #tpu.memory_space<vmem>>, vector<1x2x32xf32>,
    %93 = vector.extract_strided_slice %11 {offsets = [5, 0, 0], sizes = [1, 2, 32], strides = [1, 1, 1]} : vector<8x2x64xf32> to vector<1x2x32xf32>
    %94 = vector.shape_cast %93 : vector<1x2x32xf32> to vector<2x32xf32>
    %95 = vector.extract_strided_slice %11 {offsets = [2, 0, 32], sizes = [1, 2, 32], strides = [1, 1, 1]} : vector<8x2x64xf32> to vector<1x2x32xf32>
    %96 = vector.shape_cast %95 : vector<1x2x32xf32> to vector<2x32xf32>
    %97 = tpu.concatenate %94, %96 in 1 : vector<2x32xf32>, vector<2x32xf32> -> vector<2x64xf32>
    %cst_41 = arith.constant dense<0.000000e+00> : vector<2x64xf32>
    %98 = tpu.matmul %84, %3, %cst_41 {dimension_numbers = #tpu.dot_dimension_numbers<[1], [0], [0], [1], [0, 0, 1, 1], [], []>} : vector<2x64xf32>, vector<64x64xf32>, vector<2x64xf32> -> vector<2x64xf32>
    %99 = arith.addf %97, %98 : vector<2x64xf32>
    %100 = math.tanh %99 : vector<2x64xf32>
    %101 = vector.extract_strided_slice %100 {offsets = [0, 0], sizes = [2, 32], strides = [1, 1]} : vector<2x64xf32> to vector<2x32xf32>
    %c5_42 = arith.constant 5 : index
    %c0_43 = arith.constant 0 : index
    %c0_44 = arith.constant 0 : index
    %102 = vector.load %arg8[%c5_42, %c0_43, %c0_44] : memref<8x2x64xf32, #tpu.memory_space<vmem>>, vector<1x2x32xf32>
    %103 = vector.shape_cast %102 : vector<1x2x32xf32> to vector<2x32xf32>
    %104 = vector.shape_cast %101 : vector<2x32xf32> to vector<1x2x32xf32>
    tpu.vector_store %arg8[%c5_42, %c0_43, %c0_44], %104 {strides = array<i32>} : memref<8x2x64xf32, #tpu.memory_space<vmem>>, vector<1x2x32xf32>,
    %105 = vector.extract_strided_slice %100 {offsets = [0, 32], sizes = [2, 32], strides = [1, 1]} : vector<2x64xf32> to vector<2x32xf32>
    %c2_45 = arith.constant 2 : index
    %c0_46 = arith.constant 0 : index
    %c32_47 = arith.constant 32 : index
    %106 = vector.load %arg8[%c2_45, %c0_46, %c32_47] : memref<8x2x64xf32, #tpu.memory_space<vmem>>, vector<1x2x32xf32>
    %107 = vector.shape_cast %106 : vector<1x2x32xf32> to vector<2x32xf32>
    %108 = vector.shape_cast %105 : vector<2x32xf32> to vector<1x2x32xf32>
    tpu.vector_store %arg8[%c2_45, %c0_46, %c32_47], %108 {strides = array<i32>} : memref<8x2x64xf32, #tpu.memory_space<vmem>>, vector<1x2x32xf32>,
    %109 = vector.extract_strided_slice %11 {offsets = [6, 0, 0], sizes = [1, 2, 32], strides = [1, 1, 1]} : vector<8x2x64xf32> to vector<1x2x32xf32>
    %110 = vector.shape_cast %109 : vector<1x2x32xf32> to vector<2x32xf32>
    %111 = vector.extract_strided_slice %11 {offsets = [1, 0, 32], sizes = [1, 2, 32], strides = [1, 1, 1]} : vector<8x2x64xf32> to vector<1x2x32xf32>
    %112 = vector.shape_cast %111 : vector<1x2x32xf32> to vector<2x32xf32>
    %113 = tpu.concatenate %110, %112 in 1 : vector<2x32xf32>, vector<2x32xf32> -> vector<2x64xf32>
    %cst_48 = arith.constant dense<0.000000e+00> : vector<2x64xf32>
    %114 = tpu.matmul %100, %3, %cst_48 {dimension_numbers = #tpu.dot_dimension_numbers<[1], [0], [0], [1], [0, 0, 1, 1], [], []>} : vector<2x64xf32>, vector<64x64xf32>, vector<2x64xf32> -> vector<2x64xf32>
    %115 = arith.addf %113, %114 : vector<2x64xf32>
    %116 = math.tanh %115 : vector<2x64xf32>
    %117 = vector.extract_strided_slice %116 {offsets = [0, 0], sizes = [2, 32], strides = [1, 1]} : vector<2x64xf32> to vector<2x32xf32>
    %c6_49 = arith.constant 6 : index
    %c0_50 = arith.constant 0 : index
    %c0_51 = arith.constant 0 : index
    %118 = vector.load %arg8[%c6_49, %c0_50, %c0_51] : memref<8x2x64xf32, #tpu.memory_space<vmem>>, vector<1x2x32xf32>
    %119 = vector.shape_cast %118 : vector<1x2x32xf32> to vector<2x32xf32>
    %120 = vector.shape_cast %117 : vector<2x32xf32> to vector<1x2x32xf32>
    tpu.vector_store %arg8[%c6_49, %c0_50, %c0_51], %120 {strides = array<i32>} : memref<8x2x64xf32, #tpu.memory_space<vmem>>, vector<1x2x32xf32>,
    %121 = vector.extract_strided_slice %116 {offsets = [0, 32], sizes = [2, 32], strides = [1, 1]} : vector<2x64xf32> to vector<2x32xf32>
    %c1_52 = arith.constant 1 : index
    %c0_53 = arith.constant 0 : index
    %c32_54 = arith.constant 32 : index
    %122 = vector.load %arg8[%c1_52, %c0_53, %c32_54] : memref<8x2x64xf32, #tpu.memory_space<vmem>>, vector<1x2x32xf32>
    %123 = vector.shape_cast %122 : vector<1x2x32xf32> to vector<2x32xf32>
    %124 = vector.shape_cast %121 : vector<2x32xf32> to vector<1x2x32xf32>
    tpu.vector_store %arg8[%c1_52, %c0_53, %c32_54], %124 {strides = array<i32>} : memref<8x2x64xf32, #tpu.memory_space<vmem>>, vector<1x2x32xf32>,
    %125 = vector.extract_strided_slice %11 {offsets = [7, 0, 0], sizes = [1, 2, 32], strides = [1, 1, 1]} : vector<8x2x64xf32> to vector<1x2x32xf32>
    %126 = vector.shape_cast %125 : vector<1x2x32xf32> to vector<2x32xf32>
    %127 = vector.extract_strided_slice %11 {offsets = [0, 0, 32], sizes = [1, 2, 32], strides = [1, 1, 1]} : vector<8x2x64xf32> to vector<1x2x32xf32>
    %128 = vector.shape_cast %127 : vector<1x2x32xf32> to vector<2x32xf32>
    %129 = tpu.concatenate %126, %128 in 1 : vector<2x32xf32>, vector<2x32xf32> -> vector<2x64xf32>
    %cst_55 = arith.constant dense<0.000000e+00> : vector<2x64xf32>
    %130 = tpu.matmul %116, %3, %cst_55 {dimension_numbers = #tpu.dot_dimension_numbers<[1], [0], [0], [1], [0, 0, 1, 1], [], []>} : vector<2x64xf32>, vector<64x64xf32>, vector<2x64xf32> -> vector<2x64xf32>
    %131 = arith.addf %129, %130 : vector<2x64xf32>
    %132 = math.tanh %131 : vector<2x64xf32>
    %133 = vector.extract_strided_slice %132 {offsets = [0, 0], sizes = [2, 32], strides = [1, 1]} : vector<2x64xf32> to vector<2x32xf32>
    %c7_56 = arith.constant 7 : index
    %c0_57 = arith.constant 0 : index
    %c0_58 = arith.constant 0 : index
    %134 = vector.load %arg8[%c7_56, %c0_57, %c0_58] : memref<8x2x64xf32, #tpu.memory_space<vmem>>, vector<1x2x32xf32>
    %135 = vector.shape_cast %134 : vector<1x2x32xf32> to vector<2x32xf32>
    %136 = vector.shape_cast %133 : vector<2x32xf32> to vector<1x2x32xf32>
    tpu.vector_store %arg8[%c7_56, %c0_57, %c0_58], %136 {strides = array<i32>} : memref<8x2x64xf32, #tpu.memory_space<vmem>>, vector<1x2x32xf32>,
    %137 = vector.extract_strided_slice %132 {offsets = [0, 32], sizes = [2, 32], strides = [1, 1]} : vector<2x64xf32> to vector<2x32xf32>
    %c0_59 = arith.constant 0 : index
    %c0_60 = arith.constant 0 : index
    %c32_61 = arith.constant 32 : index
    %138 = vector.load %arg8[%c0_59, %c0_60, %c32_61] : memref<8x2x64xf32, #tpu.memory_space<vmem>>, vector<1x2x32xf32>
    %139 = vector.shape_cast %138 : vector<1x2x32xf32> to vector<2x32xf32>
    %140 = vector.shape_cast %137 : vector<2x32xf32> to vector<1x2x32xf32>
    tpu.vector_store %arg8[%c0_59, %c0_60, %c32_61], %140 {strides = array<i32>} : memref<8x2x64xf32, #tpu.memory_space<vmem>>, vector<1x2x32xf32>,
    %c0_62 = arith.constant 0 : index
    %c0_63 = arith.constant 0 : index
    %c0_64 = arith.constant 0 : index
    %c0_65 = arith.constant 0 : index
    %141 = vector.load %arg4[%c0_62, %c0_63, %c0_64, %c0_65] : memref<1x2x64x64xf32, #tpu.memory_space<vmem>>, vector<1x1x64x64xf32>
    %142 = vector.shape_cast %141 : vector<1x1x64x64xf32> to vector<64x64xf32>
    %c1_66 = arith.constant 1 : index
    %c0_67 = arith.constant 0 : index
    %c0_68 = arith.constant 0 : index
    %c0_69 = arith.constant 0 : index
    %143 = vector.load %arg5[%c1_66, %c0_67, %c0_68, %c0_69] : memref<2x2x64x64xf32, #tpu.memory_space<vmem>>, vector<1x1x64x64xf32>
    %144 = vector.shape_cast %143 : vector<1x1x64x64xf32> to vector<64x64xf32>
    %c1_70 = arith.constant 1 : index
    %c0_71 = arith.constant 0 : index
    %c0_72 = arith.constant 0 : index
    %c0_73 = arith.constant 0 : index
    %145 = vector.load %arg6[%c1_70, %c0_71, %c0_72, %c0_73] : memref<2x2x1x64xf32, #tpu.memory_space<vmem>>, vector<1x1x1x64xf32>
    %146 = vector.shape_cast %145 : vector<1x1x1x64xf32> to vector<1x64xf32>
    %c0_74 = arith.constant 0 : index
    %c0_75 = arith.constant 0 : index
    %c0_76 = arith.constant 0 : index
    %147 = vector.load %arg8[%c0_74, %c0_75, %c0_76] : memref<8x2x64xf32, #tpu.memory_space<vmem>>, vector<8x2x64xf32>
    %148 = vector.shape_cast %147 : vector<8x2x64xf32> to vector<16x64xf32>
    %cst_77 = arith.constant dense<0.000000e+00> : vector<16x64xf32>
    %149 = tpu.matmul %148, %142, %cst_77 {dimension_numbers = #tpu.dot_dimension_numbers<[1], [0], [0], [1], [0, 0, 1, 1], [], []>} : vector<16x64xf32>, vector<64x64xf32>, vector<16x64xf32> -> vector<16x64xf32>
    %150 = vector.broadcast %146 : vector<1x64xf32> to vector<16x64xf32>
    %151 = arith.addf %149, %150 : vector<16x64xf32>
    %152 = vector.shape_cast %151 : vector<16x64xf32> to vector<8x2x64xf32>
    %cst_78 = arith.constant 0.000000e+00 : f32
    %153 = vector.broadcast %cst_78 : f32 to vector<2x64xf32>
    %154 = vector.extract_strided_slice %152 {offsets = [0, 0, 0], sizes = [1, 2, 32], strides = [1, 1, 1]} : vector<8x2x64xf32> to vector<1x2x32xf32>
    %155 = vector.shape_cast %154 : vector<1x2x32xf32> to vector<2x32xf32>
    %156 = vector.extract_strided_slice %152 {offsets = [7, 0, 32], sizes = [1, 2, 32], strides = [1, 1, 1]} : vector<8x2x64xf32> to vector<1x2x32xf32>
    %157 = vector.shape_cast %156 : vector<1x2x32xf32> to vector<2x32xf32>
    %158 = tpu.concatenate %155, %157 in 1 : vector<2x32xf32>, vector<2x32xf32> -> vector<2x64xf32>
    %cst_79 = arith.constant dense<0.000000e+00> : vector<2x64xf32>
    %159 = tpu.matmul %153, %144, %cst_79 {dimension_numbers = #tpu.dot_dimension_numbers<[1], [0], [0], [1], [0, 0, 1, 1], [], []>} : vector<2x64xf32>, vector<64x64xf32>, vector<2x64xf32> -> vector<2x64xf32>
    %160 = arith.addf %158, %159 : vector<2x64xf32>
    %161 = math.tanh %160 : vector<2x64xf32>
    %162 = vector.extract_strided_slice %161 {offsets = [0, 0], sizes = [2, 32], strides = [1, 1]} : vector<2x64xf32> to vector<2x32xf32>
    %c0_80 = arith.constant 0 : index
    %c0_81 = arith.constant 0 : index
    %c0_82 = arith.constant 0 : index
    %163 = vector.load %arg9[%c0_80, %c0_81, %c0_82] : memref<8x2x64xf32, #tpu.memory_space<vmem>>, vector<1x2x32xf32>
    %164 = vector.shape_cast %163 : vector<1x2x32xf32> to vector<2x32xf32>
    %165 = vector.shape_cast %162 : vector<2x32xf32> to vector<1x2x32xf32>
    tpu.vector_store %arg9[%c0_80, %c0_81, %c0_82], %165 {strides = array<i32>} : memref<8x2x64xf32, #tpu.memory_space<vmem>>, vector<1x2x32xf32>,
    %166 = vector.extract_strided_slice %161 {offsets = [0, 32], sizes = [2, 32], strides = [1, 1]} : vector<2x64xf32> to vector<2x32xf32>
    %c7_83 = arith.constant 7 : index
    %c0_84 = arith.constant 0 : index
    %c32_85 = arith.constant 32 : index
    %167 = vector.load %arg9[%c7_83, %c0_84, %c32_85] : memref<8x2x64xf32, #tpu.memory_space<vmem>>, vector<1x2x32xf32>
    %168 = vector.shape_cast %167 : vector<1x2x32xf32> to vector<2x32xf32>
    %169 = vector.shape_cast %166 : vector<2x32xf32> to vector<1x2x32xf32>
    tpu.vector_store %arg9[%c7_83, %c0_84, %c32_85], %169 {strides = array<i32>} : memref<8x2x64xf32, #tpu.memory_space<vmem>>, vector<1x2x32xf32>,
    %170 = vector.extract_strided_slice %152 {offsets = [1, 0, 0], sizes = [1, 2, 32], strides = [1, 1, 1]} : vector<8x2x64xf32> to vector<1x2x32xf32>
    %171 = vector.shape_cast %170 : vector<1x2x32xf32> to vector<2x32xf32>
    %172 = vector.extract_strided_slice %152 {offsets = [6, 0, 32], sizes = [1, 2, 32], strides = [1, 1, 1]} : vector<8x2x64xf32> to vector<1x2x32xf32>
    %173 = vector.shape_cast %172 : vector<1x2x32xf32> to vector<2x32xf32>
    %174 = tpu.concatenate %171, %173 in 1 : vector<2x32xf32>, vector<2x32xf32> -> vector<2x64xf32>
    %cst_86 = arith.constant dense<0.000000e+00> : vector<2x64xf32>
    %175 = tpu.matmul %161, %144, %cst_86 {dimension_numbers = #tpu.dot_dimension_numbers<[1], [0], [0], [1], [0, 0, 1, 1], [], []>} : vector<2x64xf32>, vector<64x64xf32>, vector<2x64xf32> -> vector<2x64xf32>
    %176 = arith.addf %174, %175 : vector<2x64xf32>
    %177 = math.tanh %176 : vector<2x64xf32>
    %178 = vector.extract_strided_slice %177 {offsets = [0, 0], sizes = [2, 32], strides = [1, 1]} : vector<2x64xf32> to vector<2x32xf32>
    %c1_87 = arith.constant 1 : index
    %c0_88 = arith.constant 0 : index
    %c0_89 = arith.constant 0 : index
    %179 = vector.load %arg9[%c1_87, %c0_88, %c0_89] : memref<8x2x64xf32, #tpu.memory_space<vmem>>, vector<1x2x32xf32>
    %180 = vector.shape_cast %179 : vector<1x2x32xf32> to vector<2x32xf32>
    %181 = vector.shape_cast %178 : vector<2x32xf32> to vector<1x2x32xf32>
    tpu.vector_store %arg9[%c1_87, %c0_88, %c0_89], %181 {strides = array<i32>} : memref<8x2x64xf32, #tpu.memory_space<vmem>>, vector<1x2x32xf32>,
    %182 = vector.extract_strided_slice %177 {offsets = [0, 32], sizes = [2, 32], strides = [1, 1]} : vector<2x64xf32> to vector<2x32xf32>
    %c6_90 = arith.constant 6 : index
    %c0_91 = arith.constant 0 : index
    %c32_92 = arith.constant 32 : index
    %183 = vector.load %arg9[%c6_90, %c0_91, %c32_92] : memref<8x2x64xf32, #tpu.memory_space<vmem>>, vector<1x2x32xf32>
    %184 = vector.shape_cast %183 : vector<1x2x32xf32> to vector<2x32xf32>
    %185 = vector.shape_cast %182 : vector<2x32xf32> to vector<1x2x32xf32>
    tpu.vector_store %arg9[%c6_90, %c0_91, %c32_92], %185 {strides = array<i32>} : memref<8x2x64xf32, #tpu.memory_space<vmem>>, vector<1x2x32xf32>,
    %186 = vector.extract_strided_slice %152 {offsets = [2, 0, 0], sizes = [1, 2, 32], strides = [1, 1, 1]} : vector<8x2x64xf32> to vector<1x2x32xf32>
    %187 = vector.shape_cast %186 : vector<1x2x32xf32> to vector<2x32xf32>
    %188 = vector.extract_strided_slice %152 {offsets = [5, 0, 32], sizes = [1, 2, 32], strides = [1, 1, 1]} : vector<8x2x64xf32> to vector<1x2x32xf32>
    %189 = vector.shape_cast %188 : vector<1x2x32xf32> to vector<2x32xf32>
    %190 = tpu.concatenate %187, %189 in 1 : vector<2x32xf32>, vector<2x32xf32> -> vector<2x64xf32>
    %cst_93 = arith.constant dense<0.000000e+00> : vector<2x64xf32>
    %191 = tpu.matmul %177, %144, %cst_93 {dimension_numbers = #tpu.dot_dimension_numbers<[1], [0], [0], [1], [0, 0, 1, 1], [], []>} : vector<2x64xf32>, vector<64x64xf32>, vector<2x64xf32> -> vector<2x64xf32>
    %192 = arith.addf %190, %191 : vector<2x64xf32>
    %193 = math.tanh %192 : vector<2x64xf32>
    %194 = vector.extract_strided_slice %193 {offsets = [0, 0], sizes = [2, 32], strides = [1, 1]} : vector<2x64xf32> to vector<2x32xf32>
    %c2_94 = arith.constant 2 : index
    %c0_95 = arith.constant 0 : index
    %c0_96 = arith.constant 0 : index
    %195 = vector.load %arg9[%c2_94, %c0_95, %c0_96] : memref<8x2x64xf32, #tpu.memory_space<vmem>>, vector<1x2x32xf32>
    %196 = vector.shape_cast %195 : vector<1x2x32xf32> to vector<2x32xf32>
    %197 = vector.shape_cast %194 : vector<2x32xf32> to vector<1x2x32xf32>
    tpu.vector_store %arg9[%c2_94, %c0_95, %c0_96], %197 {strides = array<i32>} : memref<8x2x64xf32, #tpu.memory_space<vmem>>, vector<1x2x32xf32>,
    %198 = vector.extract_strided_slice %193 {offsets = [0, 32], sizes = [2, 32], strides = [1, 1]} : vector<2x64xf32> to vector<2x32xf32>
    %c5_97 = arith.constant 5 : index
    %c0_98 = arith.constant 0 : index
    %c32_99 = arith.constant 32 : index
    %199 = vector.load %arg9[%c5_97, %c0_98, %c32_99] : memref<8x2x64xf32, #tpu.memory_space<vmem>>, vector<1x2x32xf32>
    %200 = vector.shape_cast %199 : vector<1x2x32xf32> to vector<2x32xf32>
    %201 = vector.shape_cast %198 : vector<2x32xf32> to vector<1x2x32xf32>
    tpu.vector_store %arg9[%c5_97, %c0_98, %c32_99], %201 {strides = array<i32>} : memref<8x2x64xf32, #tpu.memory_space<vmem>>, vector<1x2x32xf32>,
    %202 = vector.extract_strided_slice %152 {offsets = [3, 0, 0], sizes = [1, 2, 32], strides = [1, 1, 1]} : vector<8x2x64xf32> to vector<1x2x32xf32>
    %203 = vector.shape_cast %202 : vector<1x2x32xf32> to vector<2x32xf32>
    %204 = vector.extract_strided_slice %152 {offsets = [4, 0, 32], sizes = [1, 2, 32], strides = [1, 1, 1]} : vector<8x2x64xf32> to vector<1x2x32xf32>
    %205 = vector.shape_cast %204 : vector<1x2x32xf32> to vector<2x32xf32>
    %206 = tpu.concatenate %203, %205 in 1 : vector<2x32xf32>, vector<2x32xf32> -> vector<2x64xf32>
    %cst_100 = arith.constant dense<0.000000e+00> : vector<2x64xf32>
    %207 = tpu.matmul %193, %144, %cst_100 {dimension_numbers = #tpu.dot_dimension_numbers<[1], [0], [0], [1], [0, 0, 1, 1], [], []>} : vector<2x64xf32>, vector<64x64xf32>, vector<2x64xf32> -> vector<2x64xf32>
    %208 = arith.addf %206, %207 : vector<2x64xf32>
    %209 = math.tanh %208 : vector<2x64xf32>
    %210 = vector.extract_strided_slice %209 {offsets = [0, 0], sizes = [2, 32], strides = [1, 1]} : vector<2x64xf32> to vector<2x32xf32>
    %c3_101 = arith.constant 3 : index
    %c0_102 = arith.constant 0 : index
    %c0_103 = arith.constant 0 : index
    %211 = vector.load %arg9[%c3_101, %c0_102, %c0_103] : memref<8x2x64xf32, #tpu.memory_space<vmem>>, vector<1x2x32xf32>
    %212 = vector.shape_cast %211 : vector<1x2x32xf32> to vector<2x32xf32>
    %213 = vector.shape_cast %210 : vector<2x32xf32> to vector<1x2x32xf32>
    tpu.vector_store %arg9[%c3_101, %c0_102, %c0_103], %213 {strides = array<i32>} : memref<8x2x64xf32, #tpu.memory_space<vmem>>, vector<1x2x32xf32>,
    %214 = vector.extract_strided_slice %209 {offsets = [0, 32], sizes = [2, 32], strides = [1, 1]} : vector<2x64xf32> to vector<2x32xf32>
    %c4_104 = arith.constant 4 : index
    %c0_105 = arith.constant 0 : index
    %c32_106 = arith.constant 32 : index
    %215 = vector.load %arg9[%c4_104, %c0_105, %c32_106] : memref<8x2x64xf32, #tpu.memory_space<vmem>>, vector<1x2x32xf32>
    %216 = vector.shape_cast %215 : vector<1x2x32xf32> to vector<2x32xf32>
    %217 = vector.shape_cast %214 : vector<2x32xf32> to vector<1x2x32xf32>
    tpu.vector_store %arg9[%c4_104, %c0_105, %c32_106], %217 {strides = array<i32>} : memref<8x2x64xf32, #tpu.memory_space<vmem>>, vector<1x2x32xf32>,
    %218 = vector.extract_strided_slice %152 {offsets = [4, 0, 0], sizes = [1, 2, 32], strides = [1, 1, 1]} : vector<8x2x64xf32> to vector<1x2x32xf32>
    %219 = vector.shape_cast %218 : vector<1x2x32xf32> to vector<2x32xf32>
    %220 = vector.extract_strided_slice %152 {offsets = [3, 0, 32], sizes = [1, 2, 32], strides = [1, 1, 1]} : vector<8x2x64xf32> to vector<1x2x32xf32>
    %221 = vector.shape_cast %220 : vector<1x2x32xf32> to vector<2x32xf32>
    %222 = tpu.concatenate %219, %221 in 1 : vector<2x32xf32>, vector<2x32xf32> -> vector<2x64xf32>
    %cst_107 = arith.constant dense<0.000000e+00> : vector<2x64xf32>
    %223 = tpu.matmul %209, %144, %cst_107 {dimension_numbers = #tpu.dot_dimension_numbers<[1], [0], [0], [1], [0, 0, 1, 1], [], []>} : vector<2x64xf32>, vector<64x64xf32>, vector<2x64xf32> -> vector<2x64xf32>
    %224 = arith.addf %222, %223 : vector<2x64xf32>
    %225 = math.tanh %224 : vector<2x64xf32>
    %226 = vector.extract_strided_slice %225 {offsets = [0, 0], sizes = [2, 32], strides = [1, 1]} : vector<2x64xf32> to vector<2x32xf32>
    %c4_108 = arith.constant 4 : index
    %c0_109 = arith.constant 0 : index
    %c0_110 = arith.constant 0 : index
    %227 = vector.load %arg9[%c4_108, %c0_109, %c0_110] : memref<8x2x64xf32, #tpu.memory_space<vmem>>, vector<1x2x32xf32>
    %228 = vector.shape_cast %227 : vector<1x2x32xf32> to vector<2x32xf32>
    %229 = vector.shape_cast %226 : vector<2x32xf32> to vector<1x2x32xf32>
    tpu.vector_store %arg9[%c4_108, %c0_109, %c0_110], %229 {strides = array<i32>} : memref<8x2x64xf32, #tpu.memory_space<vmem>>, vector<1x2x32xf32>,
    %230 = vector.extract_strided_slice %225 {offsets = [0, 32], sizes = [2, 32], strides = [1, 1]} : vector<2x64xf32> to vector<2x32xf32>
    %c3_111 = arith.constant 3 : index
    %c0_112 = arith.constant 0 : index
    %c32_113 = arith.constant 32 : index
    %231 = vector.load %arg9[%c3_111, %c0_112, %c32_113] : memref<8x2x64xf32, #tpu.memory_space<vmem>>, vector<1x2x32xf32>
    %232 = vector.shape_cast %231 : vector<1x2x32xf32> to vector<2x32xf32>
    %233 = vector.shape_cast %230 : vector<2x32xf32> to vector<1x2x32xf32>
    tpu.vector_store %arg9[%c3_111, %c0_112, %c32_113], %233 {strides = array<i32>} : memref<8x2x64xf32, #tpu.memory_space<vmem>>, vector<1x2x32xf32>,
    %234 = vector.extract_strided_slice %152 {offsets = [5, 0, 0], sizes = [1, 2, 32], strides = [1, 1, 1]} : vector<8x2x64xf32> to vector<1x2x32xf32>
    %235 = vector.shape_cast %234 : vector<1x2x32xf32> to vector<2x32xf32>
    %236 = vector.extract_strided_slice %152 {offsets = [2, 0, 32], sizes = [1, 2, 32], strides = [1, 1, 1]} : vector<8x2x64xf32> to vector<1x2x32xf32>
    %237 = vector.shape_cast %236 : vector<1x2x32xf32> to vector<2x32xf32>
    %238 = tpu.concatenate %235, %237 in 1 : vector<2x32xf32>, vector<2x32xf32> -> vector<2x64xf32>
    %cst_114 = arith.constant dense<0.000000e+00> : vector<2x64xf32>
    %239 = tpu.matmul %225, %144, %cst_114 {dimension_numbers = #tpu.dot_dimension_numbers<[1], [0], [0], [1], [0, 0, 1, 1], [], []>} : vector<2x64xf32>, vector<64x64xf32>, vector<2x64xf32> -> vector<2x64xf32>
    %240 = arith.addf %238, %239 : vector<2x64xf32>
    %241 = math.tanh %240 : vector<2x64xf32>
    %242 = vector.extract_strided_slice %241 {offsets = [0, 0], sizes = [2, 32], strides = [1, 1]} : vector<2x64xf32> to vector<2x32xf32>
    %c5_115 = arith.constant 5 : index
    %c0_116 = arith.constant 0 : index
    %c0_117 = arith.constant 0 : index
    %243 = vector.load %arg9[%c5_115, %c0_116, %c0_117] : memref<8x2x64xf32, #tpu.memory_space<vmem>>, vector<1x2x32xf32>
    %244 = vector.shape_cast %243 : vector<1x2x32xf32> to vector<2x32xf32>
    %245 = vector.shape_cast %242 : vector<2x32xf32> to vector<1x2x32xf32>
    tpu.vector_store %arg9[%c5_115, %c0_116, %c0_117], %245 {strides = array<i32>} : memref<8x2x64xf32, #tpu.memory_space<vmem>>, vector<1x2x32xf32>,
    %246 = vector.extract_strided_slice %241 {offsets = [0, 32], sizes = [2, 32], strides = [1, 1]} : vector<2x64xf32> to vector<2x32xf32>
    %c2_118 = arith.constant 2 : index
    %c0_119 = arith.constant 0 : index
    %c32_120 = arith.constant 32 : index
    %247 = vector.load %arg9[%c2_118, %c0_119, %c32_120] : memref<8x2x64xf32, #tpu.memory_space<vmem>>, vector<1x2x32xf32>
    %248 = vector.shape_cast %247 : vector<1x2x32xf32> to vector<2x32xf32>
    %249 = vector.shape_cast %246 : vector<2x32xf32> to vector<1x2x32xf32>
    tpu.vector_store %arg9[%c2_118, %c0_119, %c32_120], %249 {strides = array<i32>} : memref<8x2x64xf32, #tpu.memory_space<vmem>>, vector<1x2x32xf32>,
    %250 = vector.extract_strided_slice %152 {offsets = [6, 0, 0], sizes = [1, 2, 32], strides = [1, 1, 1]} : vector<8x2x64xf32> to vector<1x2x32xf32>
    %251 = vector.shape_cast %250 : vector<1x2x32xf32> to vector<2x32xf32>
    %252 = vector.extract_strided_slice %152 {offsets = [1, 0, 32], sizes = [1, 2, 32], strides = [1, 1, 1]} : vector<8x2x64xf32> to vector<1x2x32xf32>
    %253 = vector.shape_cast %252 : vector<1x2x32xf32> to vector<2x32xf32>
    %254 = tpu.concatenate %251, %253 in 1 : vector<2x32xf32>, vector<2x32xf32> -> vector<2x64xf32>
    %cst_121 = arith.constant dense<0.000000e+00> : vector<2x64xf32>
    %255 = tpu.matmul %241, %144, %cst_121 {dimension_numbers = #tpu.dot_dimension_numbers<[1], [0], [0], [1], [0, 0, 1, 1], [], []>} : vector<2x64xf32>, vector<64x64xf32>, vector<2x64xf32> -> vector<2x64xf32>
    %256 = arith.addf %254, %255 : vector<2x64xf32>
    %257 = math.tanh %256 : vector<2x64xf32>
    %258 = vector.extract_strided_slice %257 {offsets = [0, 0], sizes = [2, 32], strides = [1, 1]} : vector<2x64xf32> to vector<2x32xf32>
    %c6_122 = arith.constant 6 : index
    %c0_123 = arith.constant 0 : index
    %c0_124 = arith.constant 0 : index
    %259 = vector.load %arg9[%c6_122, %c0_123, %c0_124] : memref<8x2x64xf32, #tpu.memory_space<vmem>>, vector<1x2x32xf32>
    %260 = vector.shape_cast %259 : vector<1x2x32xf32> to vector<2x32xf32>
    %261 = vector.shape_cast %258 : vector<2x32xf32> to vector<1x2x32xf32>
    tpu.vector_store %arg9[%c6_122, %c0_123, %c0_124], %261 {strides = array<i32>} : memref<8x2x64xf32, #tpu.memory_space<vmem>>, vector<1x2x32xf32>,
    %262 = vector.extract_strided_slice %257 {offsets = [0, 32], sizes = [2, 32], strides = [1, 1]} : vector<2x64xf32> to vector<2x32xf32>
    %c1_125 = arith.constant 1 : index
    %c0_126 = arith.constant 0 : index
    %c32_127 = arith.constant 32 : index
    %263 = vector.load %arg9[%c1_125, %c0_126, %c32_127] : memref<8x2x64xf32, #tpu.memory_space<vmem>>, vector<1x2x32xf32>
    %264 = vector.shape_cast %263 : vector<1x2x32xf32> to vector<2x32xf32>
    %265 = vector.shape_cast %262 : vector<2x32xf32> to vector<1x2x32xf32>
    tpu.vector_store %arg9[%c1_125, %c0_126, %c32_127], %265 {strides = array<i32>} : memref<8x2x64xf32, #tpu.memory_space<vmem>>, vector<1x2x32xf32>,
    %266 = vector.extract_strided_slice %152 {offsets = [7, 0, 0], sizes = [1, 2, 32], strides = [1, 1, 1]} : vector<8x2x64xf32> to vector<1x2x32xf32>
    %267 = vector.shape_cast %266 : vector<1x2x32xf32> to vector<2x32xf32>
    %268 = vector.extract_strided_slice %152 {offsets = [0, 0, 32], sizes = [1, 2, 32], strides = [1, 1, 1]} : vector<8x2x64xf32> to vector<1x2x32xf32>
    %269 = vector.shape_cast %268 : vector<1x2x32xf32> to vector<2x32xf32>
    %270 = tpu.concatenate %267, %269 in 1 : vector<2x32xf32>, vector<2x32xf32> -> vector<2x64xf32>
    %cst_128 = arith.constant dense<0.000000e+00> : vector<2x64xf32>
    %271 = tpu.matmul %257, %144, %cst_128 {dimension_numbers = #tpu.dot_dimension_numbers<[1], [0], [0], [1], [0, 0, 1, 1], [], []>} : vector<2x64xf32>, vector<64x64xf32>, vector<2x64xf32> -> vector<2x64xf32>
    %272 = arith.addf %270, %271 : vector<2x64xf32>
    %273 = math.tanh %272 : vector<2x64xf32>
    %274 = vector.extract_strided_slice %273 {offsets = [0, 0], sizes = [2, 32], strides = [1, 1]} : vector<2x64xf32> to vector<2x32xf32>
    %c7_129 = arith.constant 7 : index
    %c0_130 = arith.constant 0 : index
    %c0_131 = arith.constant 0 : index
    %275 = vector.load %arg9[%c7_129, %c0_130, %c0_131] : memref<8x2x64xf32, #tpu.memory_space<vmem>>, vector<1x2x32xf32>
    %276 = vector.shape_cast %275 : vector<1x2x32xf32> to vector<2x32xf32>
    %277 = vector.shape_cast %274 : vector<2x32xf32> to vector<1x2x32xf32>
    tpu.vector_store %arg9[%c7_129, %c0_130, %c0_131], %277 {strides = array<i32>} : memref<8x2x64xf32, #tpu.memory_space<vmem>>, vector<1x2x32xf32>,
    %278 = vector.extract_strided_slice %273 {offsets = [0, 32], sizes = [2, 32], strides = [1, 1]} : vector<2x64xf32> to vector<2x32xf32>
    %c0_132 = arith.constant 0 : index
    %c0_133 = arith.constant 0 : index
    %c32_134 = arith.constant 32 : index
    %279 = vector.load %arg9[%c0_132, %c0_133, %c32_134] : memref<8x2x64xf32, #tpu.memory_space<vmem>>, vector<1x2x32xf32>
    %280 = vector.shape_cast %279 : vector<1x2x32xf32> to vector<2x32xf32>
    %281 = vector.shape_cast %278 : vector<2x32xf32> to vector<1x2x32xf32>
    tpu.vector_store %arg9[%c0_132, %c0_133, %c32_134], %281 {strides = array<i32>} : memref<8x2x64xf32, #tpu.memory_space<vmem>>, vector<1x2x32xf32>,
    %c1_135 = arith.constant 1 : index
    %c0_136 = arith.constant 0 : index
    %c0_137 = arith.constant 0 : index
    %282 = vector.load %arg3[%c1_135, %c0_136, %c0_137] : memref<2x16x64xf32, #tpu.memory_space<vmem>>, vector<1x16x64xf32>
    %283 = vector.shape_cast %282 : vector<1x16x64xf32> to vector<16x64xf32>
    %c0_138 = arith.constant 0 : index
    %c1_139 = arith.constant 1 : index
    %c0_140 = arith.constant 0 : index
    %c0_141 = arith.constant 0 : index
    %284 = vector.load %arg5[%c0_138, %c1_139, %c0_140, %c0_141] : memref<2x2x64x64xf32, #tpu.memory_space<vmem>>, vector<1x1x64x64xf32>
    %285 = vector.shape_cast %284 : vector<1x1x64x64xf32> to vector<64x64xf32>
    %c0_142 = arith.constant 0 : index
    %c1_143 = arith.constant 1 : index
    %c0_144 = arith.constant 0 : index
    %c0_145 = arith.constant 0 : index
    %286 = vector.load %arg6[%c0_142, %c1_143, %c0_144, %c0_145] : memref<2x2x1x64xf32, #tpu.memory_space<vmem>>, vector<1x1x1x64xf32>
    %287 = vector.shape_cast %286 : vector<1x1x1x64xf32> to vector<1x64xf32>
    %c0_146 = arith.constant 0 : index
    %c0_147 = arith.constant 0 : index
    %c0_148 = arith.constant 0 : index
    %288 = vector.load %arg2[%c0_146, %c0_147, %c0_148] : memref<6x2x16xf32, #tpu.memory_space<vmem>>, vector<6x2x16xf32>
    %289 = vector.shape_cast %288 : vector<6x2x16xf32> to vector<12x16xf32>
    %cst_149 = arith.constant dense<0.000000e+00> : vector<12x64xf32>
    %290 = tpu.matmul %289, %283, %cst_149 {dimension_numbers = #tpu.dot_dimension_numbers<[1], [0], [0], [1], [0, 0, 1, 1], [], []>} : vector<12x16xf32>, vector<16x64xf32>, vector<12x64xf32> -> vector<12x64xf32>
    %291 = vector.broadcast %287 : vector<1x64xf32> to vector<12x64xf32>
    %292 = arith.addf %290, %291 : vector<12x64xf32>
    %293 = vector.shape_cast %292 : vector<12x64xf32> to vector<6x2x64xf32>
    %cst_150 = arith.constant 0.000000e+00 : f32
    %294 = vector.broadcast %cst_150 : f32 to vector<2x64xf32>
    %295 = vector.extract_strided_slice %293 {offsets = [0, 0, 0], sizes = [1, 2, 32], strides = [1, 1, 1]} : vector<6x2x64xf32> to vector<1x2x32xf32>
    %296 = vector.shape_cast %295 : vector<1x2x32xf32> to vector<2x32xf32>
    %297 = vector.extract_strided_slice %293 {offsets = [5, 0, 32], sizes = [1, 2, 32], strides = [1, 1, 1]} : vector<6x2x64xf32> to vector<1x2x32xf32>
    %298 = vector.shape_cast %297 : vector<1x2x32xf32> to vector<2x32xf32>
    %299 = tpu.concatenate %296, %298 in 1 : vector<2x32xf32>, vector<2x32xf32> -> vector<2x64xf32>
    %cst_151 = arith.constant dense<0.000000e+00> : vector<2x64xf32>
    %300 = tpu.matmul %294, %285, %cst_151 {dimension_numbers = #tpu.dot_dimension_numbers<[1], [0], [0], [1], [0, 0, 1, 1], [], []>} : vector<2x64xf32>, vector<64x64xf32>, vector<2x64xf32> -> vector<2x64xf32>
    %301 = arith.addf %299, %300 : vector<2x64xf32>
    %302 = math.tanh %301 : vector<2x64xf32>
    %303 = vector.extract_strided_slice %302 {offsets = [0, 0], sizes = [2, 32], strides = [1, 1]} : vector<2x64xf32> to vector<2x32xf32>
    %c0_152 = arith.constant 0 : index
    %c0_153 = arith.constant 0 : index
    %c0_154 = arith.constant 0 : index
    %304 = vector.load %arg10[%c0_152, %c0_153, %c0_154] : memref<6x2x64xf32, #tpu.memory_space<vmem>>, vector<1x2x32xf32>
    %305 = vector.shape_cast %304 : vector<1x2x32xf32> to vector<2x32xf32>
    %306 = vector.shape_cast %303 : vector<2x32xf32> to vector<1x2x32xf32>
    tpu.vector_store %arg10[%c0_152, %c0_153, %c0_154], %306 {strides = array<i32>} : memref<6x2x64xf32, #tpu.memory_space<vmem>>, vector<1x2x32xf32>,
    %307 = vector.extract_strided_slice %302 {offsets = [0, 32], sizes = [2, 32], strides = [1, 1]} : vector<2x64xf32> to vector<2x32xf32>
    %c5_155 = arith.constant 5 : index
    %c0_156 = arith.constant 0 : index
    %c32_157 = arith.constant 32 : index
    %308 = vector.load %arg10[%c5_155, %c0_156, %c32_157] : memref<6x2x64xf32, #tpu.memory_space<vmem>>, vector<1x2x32xf32>
    %309 = vector.shape_cast %308 : vector<1x2x32xf32> to vector<2x32xf32>
    %310 = vector.shape_cast %307 : vector<2x32xf32> to vector<1x2x32xf32>
    tpu.vector_store %arg10[%c5_155, %c0_156, %c32_157], %310 {strides = array<i32>} : memref<6x2x64xf32, #tpu.memory_space<vmem>>, vector<1x2x32xf32>,
    %311 = vector.extract_strided_slice %293 {offsets = [1, 0, 0], sizes = [1, 2, 32], strides = [1, 1, 1]} : vector<6x2x64xf32> to vector<1x2x32xf32>
    %312 = vector.shape_cast %311 : vector<1x2x32xf32> to vector<2x32xf32>
    %313 = vector.extract_strided_slice %293 {offsets = [4, 0, 32], sizes = [1, 2, 32], strides = [1, 1, 1]} : vector<6x2x64xf32> to vector<1x2x32xf32>
    %314 = vector.shape_cast %313 : vector<1x2x32xf32> to vector<2x32xf32>
    %315 = tpu.concatenate %312, %314 in 1 : vector<2x32xf32>, vector<2x32xf32> -> vector<2x64xf32>
    %cst_158 = arith.constant dense<0.000000e+00> : vector<2x64xf32>
    %316 = tpu.matmul %302, %285, %cst_158 {dimension_numbers = #tpu.dot_dimension_numbers<[1], [0], [0], [1], [0, 0, 1, 1], [], []>} : vector<2x64xf32>, vector<64x64xf32>, vector<2x64xf32> -> vector<2x64xf32>
    %317 = arith.addf %315, %316 : vector<2x64xf32>
    %318 = math.tanh %317 : vector<2x64xf32>
    %319 = vector.extract_strided_slice %318 {offsets = [0, 0], sizes = [2, 32], strides = [1, 1]} : vector<2x64xf32> to vector<2x32xf32>
    %c1_159 = arith.constant 1 : index
    %c0_160 = arith.constant 0 : index
    %c0_161 = arith.constant 0 : index
    %320 = vector.load %arg10[%c1_159, %c0_160, %c0_161] : memref<6x2x64xf32, #tpu.memory_space<vmem>>, vector<1x2x32xf32>
    %321 = vector.shape_cast %320 : vector<1x2x32xf32> to vector<2x32xf32>
    %322 = vector.shape_cast %319 : vector<2x32xf32> to vector<1x2x32xf32>
    tpu.vector_store %arg10[%c1_159, %c0_160, %c0_161], %322 {strides = array<i32>} : memref<6x2x64xf32, #tpu.memory_space<vmem>>, vector<1x2x32xf32>,
    %323 = vector.extract_strided_slice %318 {offsets = [0, 32], sizes = [2, 32], strides = [1, 1]} : vector<2x64xf32> to vector<2x32xf32>
    %c4_162 = arith.constant 4 : index
    %c0_163 = arith.constant 0 : index
    %c32_164 = arith.constant 32 : index
    %324 = vector.load %arg10[%c4_162, %c0_163, %c32_164] : memref<6x2x64xf32, #tpu.memory_space<vmem>>, vector<1x2x32xf32>
    %325 = vector.shape_cast %324 : vector<1x2x32xf32> to vector<2x32xf32>
    %326 = vector.shape_cast %323 : vector<2x32xf32> to vector<1x2x32xf32>
    tpu.vector_store %arg10[%c4_162, %c0_163, %c32_164], %326 {strides = array<i32>} : memref<6x2x64xf32, #tpu.memory_space<vmem>>, vector<1x2x32xf32>,
    %327 = vector.extract_strided_slice %293 {offsets = [2, 0, 0], sizes = [1, 2, 32], strides = [1, 1, 1]} : vector<6x2x64xf32> to vector<1x2x32xf32>
    %328 = vector.shape_cast %327 : vector<1x2x32xf32> to vector<2x32xf32>
    %329 = vector.extract_strided_slice %293 {offsets = [3, 0, 32], sizes = [1, 2, 32], strides = [1, 1, 1]} : vector<6x2x64xf32> to vector<1x2x32xf32>
    %330 = vector.shape_cast %329 : vector<1x2x32xf32> to vector<2x32xf32>
    %331 = tpu.concatenate %328, %330 in 1 : vector<2x32xf32>, vector<2x32xf32> -> vector<2x64xf32>
    %cst_165 = arith.constant dense<0.000000e+00> : vector<2x64xf32>
    %332 = tpu.matmul %318, %285, %cst_165 {dimension_numbers = #tpu.dot_dimension_numbers<[1], [0], [0], [1], [0, 0, 1, 1], [], []>} : vector<2x64xf32>, vector<64x64xf32>, vector<2x64xf32> -> vector<2x64xf32>
    %333 = arith.addf %331, %332 : vector<2x64xf32>
    %334 = math.tanh %333 : vector<2x64xf32>
    %335 = vector.extract_strided_slice %334 {offsets = [0, 0], sizes = [2, 32], strides = [1, 1]} : vector<2x64xf32> to vector<2x32xf32>
    %c2_166 = arith.constant 2 : index
    %c0_167 = arith.constant 0 : index
    %c0_168 = arith.constant 0 : index
    %336 = vector.load %arg10[%c2_166, %c0_167, %c0_168] : memref<6x2x64xf32, #tpu.memory_space<vmem>>, vector<1x2x32xf32>
    %337 = vector.shape_cast %336 : vector<1x2x32xf32> to vector<2x32xf32>
    %338 = vector.shape_cast %335 : vector<2x32xf32> to vector<1x2x32xf32>
    tpu.vector_store %arg10[%c2_166, %c0_167, %c0_168], %338 {strides = array<i32>} : memref<6x2x64xf32, #tpu.memory_space<vmem>>, vector<1x2x32xf32>,
    %339 = vector.extract_strided_slice %334 {offsets = [0, 32], sizes = [2, 32], strides = [1, 1]} : vector<2x64xf32> to vector<2x32xf32>
    %c3_169 = arith.constant 3 : index
    %c0_170 = arith.constant 0 : index
    %c32_171 = arith.constant 32 : index
    %340 = vector.load %arg10[%c3_169, %c0_170, %c32_171] : memref<6x2x64xf32, #tpu.memory_space<vmem>>, vector<1x2x32xf32>
    %341 = vector.shape_cast %340 : vector<1x2x32xf32> to vector<2x32xf32>
    %342 = vector.shape_cast %339 : vector<2x32xf32> to vector<1x2x32xf32>
    tpu.vector_store %arg10[%c3_169, %c0_170, %c32_171], %342 {strides = array<i32>} : memref<6x2x64xf32, #tpu.memory_space<vmem>>, vector<1x2x32xf32>,
    %343 = vector.extract_strided_slice %293 {offsets = [3, 0, 0], sizes = [1, 2, 32], strides = [1, 1, 1]} : vector<6x2x64xf32> to vector<1x2x32xf32>
    %344 = vector.shape_cast %343 : vector<1x2x32xf32> to vector<2x32xf32>
    %345 = vector.extract_strided_slice %293 {offsets = [2, 0, 32], sizes = [1, 2, 32], strides = [1, 1, 1]} : vector<6x2x64xf32> to vector<1x2x32xf32>
    %346 = vector.shape_cast %345 : vector<1x2x32xf32> to vector<2x32xf32>
    %347 = tpu.concatenate %344, %346 in 1 : vector<2x32xf32>, vector<2x32xf32> -> vector<2x64xf32>
    %cst_172 = arith.constant dense<0.000000e+00> : vector<2x64xf32>
    %348 = tpu.matmul %334, %285, %cst_172 {dimension_numbers = #tpu.dot_dimension_numbers<[1], [0], [0], [1], [0, 0, 1, 1], [], []>} : vector<2x64xf32>, vector<64x64xf32>, vector<2x64xf32> -> vector<2x64xf32>
    %349 = arith.addf %347, %348 : vector<2x64xf32>
    %350 = math.tanh %349 : vector<2x64xf32>
    %351 = vector.extract_strided_slice %350 {offsets = [0, 0], sizes = [2, 32], strides = [1, 1]} : vector<2x64xf32> to vector<2x32xf32>
    %c3_173 = arith.constant 3 : index
    %c0_174 = arith.constant 0 : index
    %c0_175 = arith.constant 0 : index
    %352 = vector.load %arg10[%c3_173, %c0_174, %c0_175] : memref<6x2x64xf32, #tpu.memory_space<vmem>>, vector<1x2x32xf32>
    %353 = vector.shape_cast %352 : vector<1x2x32xf32> to vector<2x32xf32>
    %354 = vector.shape_cast %351 : vector<2x32xf32> to vector<1x2x32xf32>
    tpu.vector_store %arg10[%c3_173, %c0_174, %c0_175], %354 {strides = array<i32>} : memref<6x2x64xf32, #tpu.memory_space<vmem>>, vector<1x2x32xf32>,
    %355 = vector.extract_strided_slice %350 {offsets = [0, 32], sizes = [2, 32], strides = [1, 1]} : vector<2x64xf32> to vector<2x32xf32>
    %c2_176 = arith.constant 2 : index
    %c0_177 = arith.constant 0 : index
    %c32_178 = arith.constant 32 : index
    %356 = vector.load %arg10[%c2_176, %c0_177, %c32_178] : memref<6x2x64xf32, #tpu.memory_space<vmem>>, vector<1x2x32xf32>
    %357 = vector.shape_cast %356 : vector<1x2x32xf32> to vector<2x32xf32>
    %358 = vector.shape_cast %355 : vector<2x32xf32> to vector<1x2x32xf32>
    tpu.vector_store %arg10[%c2_176, %c0_177, %c32_178], %358 {strides = array<i32>} : memref<6x2x64xf32, #tpu.memory_space<vmem>>, vector<1x2x32xf32>,
    %359 = vector.extract_strided_slice %293 {offsets = [4, 0, 0], sizes = [1, 2, 32], strides = [1, 1, 1]} : vector<6x2x64xf32> to vector<1x2x32xf32>
    %360 = vector.shape_cast %359 : vector<1x2x32xf32> to vector<2x32xf32>
    %361 = vector.extract_strided_slice %293 {offsets = [1, 0, 32], sizes = [1, 2, 32], strides = [1, 1, 1]} : vector<6x2x64xf32> to vector<1x2x32xf32>
    %362 = vector.shape_cast %361 : vector<1x2x32xf32> to vector<2x32xf32>
    %363 = tpu.concatenate %360, %362 in 1 : vector<2x32xf32>, vector<2x32xf32> -> vector<2x64xf32>
    %cst_179 = arith.constant dense<0.000000e+00> : vector<2x64xf32>
    %364 = tpu.matmul %350, %285, %cst_179 {dimension_numbers = #tpu.dot_dimension_numbers<[1], [0], [0], [1], [0, 0, 1, 1], [], []>} : vector<2x64xf32>, vector<64x64xf32>, vector<2x64xf32> -> vector<2x64xf32>
    %365 = arith.addf %363, %364 : vector<2x64xf32>
    %366 = math.tanh %365 : vector<2x64xf32>
    %367 = vector.extract_strided_slice %366 {offsets = [0, 0], sizes = [2, 32], strides = [1, 1]} : vector<2x64xf32> to vector<2x32xf32>
    %c4_180 = arith.constant 4 : index
    %c0_181 = arith.constant 0 : index
    %c0_182 = arith.constant 0 : index
    %368 = vector.load %arg10[%c4_180, %c0_181, %c0_182] : memref<6x2x64xf32, #tpu.memory_space<vmem>>, vector<1x2x32xf32>
    %369 = vector.shape_cast %368 : vector<1x2x32xf32> to vector<2x32xf32>
    %370 = vector.shape_cast %367 : vector<2x32xf32> to vector<1x2x32xf32>
    tpu.vector_store %arg10[%c4_180, %c0_181, %c0_182], %370 {strides = array<i32>} : memref<6x2x64xf32, #tpu.memory_space<vmem>>, vector<1x2x32xf32>,
    %371 = vector.extract_strided_slice %366 {offsets = [0, 32], sizes = [2, 32], strides = [1, 1]} : vector<2x64xf32> to vector<2x32xf32>
    %c1_183 = arith.constant 1 : index
    %c0_184 = arith.constant 0 : index
    %c32_185 = arith.constant 32 : index
    %372 = vector.load %arg10[%c1_183, %c0_184, %c32_185] : memref<6x2x64xf32, #tpu.memory_space<vmem>>, vector<1x2x32xf32>
    %373 = vector.shape_cast %372 : vector<1x2x32xf32> to vector<2x32xf32>
    %374 = vector.shape_cast %371 : vector<2x32xf32> to vector<1x2x32xf32>
    tpu.vector_store %arg10[%c1_183, %c0_184, %c32_185], %374 {strides = array<i32>} : memref<6x2x64xf32, #tpu.memory_space<vmem>>, vector<1x2x32xf32>,
    %375 = vector.extract_strided_slice %293 {offsets = [5, 0, 0], sizes = [1, 2, 32], strides = [1, 1, 1]} : vector<6x2x64xf32> to vector<1x2x32xf32>
    %376 = vector.shape_cast %375 : vector<1x2x32xf32> to vector<2x32xf32>
    %377 = vector.extract_strided_slice %293 {offsets = [0, 0, 32], sizes = [1, 2, 32], strides = [1, 1, 1]} : vector<6x2x64xf32> to vector<1x2x32xf32>
    %378 = vector.shape_cast %377 : vector<1x2x32xf32> to vector<2x32xf32>
    %379 = tpu.concatenate %376, %378 in 1 : vector<2x32xf32>, vector<2x32xf32> -> vector<2x64xf32>
    %cst_186 = arith.constant dense<0.000000e+00> : vector<2x64xf32>
    %380 = tpu.matmul %366, %285, %cst_186 {dimension_numbers = #tpu.dot_dimension_numbers<[1], [0], [0], [1], [0, 0, 1, 1], [], []>} : vector<2x64xf32>, vector<64x64xf32>, vector<2x64xf32> -> vector<2x64xf32>
    %381 = arith.addf %379, %380 : vector<2x64xf32>
    %382 = math.tanh %381 : vector<2x64xf32>
    %383 = vector.extract_strided_slice %382 {offsets = [0, 0], sizes = [2, 32], strides = [1, 1]} : vector<2x64xf32> to vector<2x32xf32>
    %c5_187 = arith.constant 5 : index
    %c0_188 = arith.constant 0 : index
    %c0_189 = arith.constant 0 : index
    %384 = vector.load %arg10[%c5_187, %c0_188, %c0_189] : memref<6x2x64xf32, #tpu.memory_space<vmem>>, vector<1x2x32xf32>
    %385 = vector.shape_cast %384 : vector<1x2x32xf32> to vector<2x32xf32>
    %386 = vector.shape_cast %383 : vector<2x32xf32> to vector<1x2x32xf32>
    tpu.vector_store %arg10[%c5_187, %c0_188, %c0_189], %386 {strides = array<i32>} : memref<6x2x64xf32, #tpu.memory_space<vmem>>, vector<1x2x32xf32>,
    %387 = vector.extract_strided_slice %382 {offsets = [0, 32], sizes = [2, 32], strides = [1, 1]} : vector<2x64xf32> to vector<2x32xf32>
    %c0_190 = arith.constant 0 : index
    %c0_191 = arith.constant 0 : index
    %c32_192 = arith.constant 32 : index
    %388 = vector.load %arg10[%c0_190, %c0_191, %c32_192] : memref<6x2x64xf32, #tpu.memory_space<vmem>>, vector<1x2x32xf32>
    %389 = vector.shape_cast %388 : vector<1x2x32xf32> to vector<2x32xf32>
    %390 = vector.shape_cast %387 : vector<2x32xf32> to vector<1x2x32xf32>
    tpu.vector_store %arg10[%c0_190, %c0_191, %c32_192], %390 {strides = array<i32>} : memref<6x2x64xf32, #tpu.memory_space<vmem>>, vector<1x2x32xf32>,
    %c0_193 = arith.constant 0 : index
    %c1_194 = arith.constant 1 : index
    %c0_195 = arith.constant 0 : index
    %c0_196 = arith.constant 0 : index
    %391 = vector.load %arg4[%c0_193, %c1_194, %c0_195, %c0_196] : memref<1x2x64x64xf32, #tpu.memory_space<vmem>>, vector<1x1x64x64xf32>
    %392 = vector.shape_cast %391 : vector<1x1x64x64xf32> to vector<64x64xf32>
    %c1_197 = arith.constant 1 : index
    %c1_198 = arith.constant 1 : index
    %c0_199 = arith.constant 0 : index
    %c0_200 = arith.constant 0 : index
    %393 = vector.load %arg5[%c1_197, %c1_198, %c0_199, %c0_200] : memref<2x2x64x64xf32, #tpu.memory_space<vmem>>, vector<1x1x64x64xf32>
    %394 = vector.shape_cast %393 : vector<1x1x64x64xf32> to vector<64x64xf32>
    %c1_201 = arith.constant 1 : index
    %c1_202 = arith.constant 1 : index
    %c0_203 = arith.constant 0 : index
    %c0_204 = arith.constant 0 : index
    %395 = vector.load %arg6[%c1_201, %c1_202, %c0_203, %c0_204] : memref<2x2x1x64xf32, #tpu.memory_space<vmem>>, vector<1x1x1x64xf32>
    %396 = vector.shape_cast %395 : vector<1x1x1x64xf32> to vector<1x64xf32>
    %c0_205 = arith.constant 0 : index
    %c0_206 = arith.constant 0 : index
    %c0_207 = arith.constant 0 : index
    %397 = vector.load %arg10[%c0_205, %c0_206, %c0_207] : memref<6x2x64xf32, #tpu.memory_space<vmem>>, vector<6x2x64xf32>
    %398 = vector.shape_cast %397 : vector<6x2x64xf32> to vector<12x64xf32>
    %cst_208 = arith.constant dense<0.000000e+00> : vector<12x64xf32>
    %399 = tpu.matmul %398, %392, %cst_208 {dimension_numbers = #tpu.dot_dimension_numbers<[1], [0], [0], [1], [0, 0, 1, 1], [], []>} : vector<12x64xf32>, vector<64x64xf32>, vector<12x64xf32> -> vector<12x64xf32>
    %400 = vector.broadcast %396 : vector<1x64xf32> to vector<12x64xf32>
    %401 = arith.addf %399, %400 : vector<12x64xf32>
    %402 = vector.shape_cast %401 : vector<12x64xf32> to vector<6x2x64xf32>
    %cst_209 = arith.constant 0.000000e+00 : f32
    %403 = vector.broadcast %cst_209 : f32 to vector<2x64xf32>
    %404 = vector.extract_strided_slice %402 {offsets = [0, 0, 0], sizes = [1, 2, 32], strides = [1, 1, 1]} : vector<6x2x64xf32> to vector<1x2x32xf32>
    %405 = vector.shape_cast %404 : vector<1x2x32xf32> to vector<2x32xf32>
    %406 = vector.extract_strided_slice %402 {offsets = [5, 0, 32], sizes = [1, 2, 32], strides = [1, 1, 1]} : vector<6x2x64xf32> to vector<1x2x32xf32>
    %407 = vector.shape_cast %406 : vector<1x2x32xf32> to vector<2x32xf32>
    %408 = tpu.concatenate %405, %407 in 1 : vector<2x32xf32>, vector<2x32xf32> -> vector<2x64xf32>
    %cst_210 = arith.constant dense<0.000000e+00> : vector<2x64xf32>
    %409 = tpu.matmul %403, %394, %cst_210 {dimension_numbers = #tpu.dot_dimension_numbers<[1], [0], [0], [1], [0, 0, 1, 1], [], []>} : vector<2x64xf32>, vector<64x64xf32>, vector<2x64xf32> -> vector<2x64xf32>
    %410 = arith.addf %408, %409 : vector<2x64xf32>
    %411 = math.tanh %410 : vector<2x64xf32>
    %412 = vector.extract_strided_slice %411 {offsets = [0, 0], sizes = [2, 32], strides = [1, 1]} : vector<2x64xf32> to vector<2x32xf32>
    %c0_211 = arith.constant 0 : index
    %c0_212 = arith.constant 0 : index
    %c0_213 = arith.constant 0 : index
    %413 = vector.load %arg11[%c0_211, %c0_212, %c0_213] : memref<6x2x64xf32, #tpu.memory_space<vmem>>, vector<1x2x32xf32>
    %414 = vector.shape_cast %413 : vector<1x2x32xf32> to vector<2x32xf32>
    %415 = vector.shape_cast %412 : vector<2x32xf32> to vector<1x2x32xf32>
    tpu.vector_store %arg11[%c0_211, %c0_212, %c0_213], %415 {strides = array<i32>} : memref<6x2x64xf32, #tpu.memory_space<vmem>>, vector<1x2x32xf32>,
    %416 = vector.extract_strided_slice %411 {offsets = [0, 32], sizes = [2, 32], strides = [1, 1]} : vector<2x64xf32> to vector<2x32xf32>
    %c5_214 = arith.constant 5 : index
    %c0_215 = arith.constant 0 : index
    %c32_216 = arith.constant 32 : index
    %417 = vector.load %arg11[%c5_214, %c0_215, %c32_216] : memref<6x2x64xf32, #tpu.memory_space<vmem>>, vector<1x2x32xf32>
    %418 = vector.shape_cast %417 : vector<1x2x32xf32> to vector<2x32xf32>
    %419 = vector.shape_cast %416 : vector<2x32xf32> to vector<1x2x32xf32>
    tpu.vector_store %arg11[%c5_214, %c0_215, %c32_216], %419 {strides = array<i32>} : memref<6x2x64xf32, #tpu.memory_space<vmem>>, vector<1x2x32xf32>,
    %420 = vector.extract_strided_slice %402 {offsets = [1, 0, 0], sizes = [1, 2, 32], strides = [1, 1, 1]} : vector<6x2x64xf32> to vector<1x2x32xf32>
    %421 = vector.shape_cast %420 : vector<1x2x32xf32> to vector<2x32xf32>
    %422 = vector.extract_strided_slice %402 {offsets = [4, 0, 32], sizes = [1, 2, 32], strides = [1, 1, 1]} : vector<6x2x64xf32> to vector<1x2x32xf32>
    %423 = vector.shape_cast %422 : vector<1x2x32xf32> to vector<2x32xf32>
    %424 = tpu.concatenate %421, %423 in 1 : vector<2x32xf32>, vector<2x32xf32> -> vector<2x64xf32>
    %cst_217 = arith.constant dense<0.000000e+00> : vector<2x64xf32>
    %425 = tpu.matmul %411, %394, %cst_217 {dimension_numbers = #tpu.dot_dimension_numbers<[1], [0], [0], [1], [0, 0, 1, 1], [], []>} : vector<2x64xf32>, vector<64x64xf32>, vector<2x64xf32> -> vector<2x64xf32>
    %426 = arith.addf %424, %425 : vector<2x64xf32>
    %427 = math.tanh %426 : vector<2x64xf32>
    %428 = vector.extract_strided_slice %427 {offsets = [0, 0], sizes = [2, 32], strides = [1, 1]} : vector<2x64xf32> to vector<2x32xf32>
    %c1_218 = arith.constant 1 : index
    %c0_219 = arith.constant 0 : index
    %c0_220 = arith.constant 0 : index
    %429 = vector.load %arg11[%c1_218, %c0_219, %c0_220] : memref<6x2x64xf32, #tpu.memory_space<vmem>>, vector<1x2x32xf32>
    %430 = vector.shape_cast %429 : vector<1x2x32xf32> to vector<2x32xf32>
    %431 = vector.shape_cast %428 : vector<2x32xf32> to vector<1x2x32xf32>
    tpu.vector_store %arg11[%c1_218, %c0_219, %c0_220], %431 {strides = array<i32>} : memref<6x2x64xf32, #tpu.memory_space<vmem>>, vector<1x2x32xf32>,
    %432 = vector.extract_strided_slice %427 {offsets = [0, 32], sizes = [2, 32], strides = [1, 1]} : vector<2x64xf32> to vector<2x32xf32>
    %c4_221 = arith.constant 4 : index
    %c0_222 = arith.constant 0 : index
    %c32_223 = arith.constant 32 : index
    %433 = vector.load %arg11[%c4_221, %c0_222, %c32_223] : memref<6x2x64xf32, #tpu.memory_space<vmem>>, vector<1x2x32xf32>
    %434 = vector.shape_cast %433 : vector<1x2x32xf32> to vector<2x32xf32>
    %435 = vector.shape_cast %432 : vector<2x32xf32> to vector<1x2x32xf32>
    tpu.vector_store %arg11[%c4_221, %c0_222, %c32_223], %435 {strides = array<i32>} : memref<6x2x64xf32, #tpu.memory_space<vmem>>, vector<1x2x32xf32>,
    %436 = vector.extract_strided_slice %402 {offsets = [2, 0, 0], sizes = [1, 2, 32], strides = [1, 1, 1]} : vector<6x2x64xf32> to vector<1x2x32xf32>
    %437 = vector.shape_cast %436 : vector<1x2x32xf32> to vector<2x32xf32>
    %438 = vector.extract_strided_slice %402 {offsets = [3, 0, 32], sizes = [1, 2, 32], strides = [1, 1, 1]} : vector<6x2x64xf32> to vector<1x2x32xf32>
    %439 = vector.shape_cast %438 : vector<1x2x32xf32> to vector<2x32xf32>
    %440 = tpu.concatenate %437, %439 in 1 : vector<2x32xf32>, vector<2x32xf32> -> vector<2x64xf32>
    %cst_224 = arith.constant dense<0.000000e+00> : vector<2x64xf32>
    %441 = tpu.matmul %427, %394, %cst_224 {dimension_numbers = #tpu.dot_dimension_numbers<[1], [0], [0], [1], [0, 0, 1, 1], [], []>} : vector<2x64xf32>, vector<64x64xf32>, vector<2x64xf32> -> vector<2x64xf32>
    %442 = arith.addf %440, %441 : vector<2x64xf32>
    %443 = math.tanh %442 : vector<2x64xf32>
    %444 = vector.extract_strided_slice %443 {offsets = [0, 0], sizes = [2, 32], strides = [1, 1]} : vector<2x64xf32> to vector<2x32xf32>
    %c2_225 = arith.constant 2 : index
    %c0_226 = arith.constant 0 : index
    %c0_227 = arith.constant 0 : index
    %445 = vector.load %arg11[%c2_225, %c0_226, %c0_227] : memref<6x2x64xf32, #tpu.memory_space<vmem>>, vector<1x2x32xf32>
    %446 = vector.shape_cast %445 : vector<1x2x32xf32> to vector<2x32xf32>
    %447 = vector.shape_cast %444 : vector<2x32xf32> to vector<1x2x32xf32>
    tpu.vector_store %arg11[%c2_225, %c0_226, %c0_227], %447 {strides = array<i32>} : memref<6x2x64xf32, #tpu.memory_space<vmem>>, vector<1x2x32xf32>,
    %448 = vector.extract_strided_slice %443 {offsets = [0, 32], sizes = [2, 32], strides = [1, 1]} : vector<2x64xf32> to vector<2x32xf32>
    %c3_228 = arith.constant 3 : index
    %c0_229 = arith.constant 0 : index
    %c32_230 = arith.constant 32 : index
    %449 = vector.load %arg11[%c3_228, %c0_229, %c32_230] : memref<6x2x64xf32, #tpu.memory_space<vmem>>, vector<1x2x32xf32>
    %450 = vector.shape_cast %449 : vector<1x2x32xf32> to vector<2x32xf32>
    %451 = vector.shape_cast %448 : vector<2x32xf32> to vector<1x2x32xf32>
    tpu.vector_store %arg11[%c3_228, %c0_229, %c32_230], %451 {strides = array<i32>} : memref<6x2x64xf32, #tpu.memory_space<vmem>>, vector<1x2x32xf32>,
    %452 = vector.extract_strided_slice %402 {offsets = [3, 0, 0], sizes = [1, 2, 32], strides = [1, 1, 1]} : vector<6x2x64xf32> to vector<1x2x32xf32>
    %453 = vector.shape_cast %452 : vector<1x2x32xf32> to vector<2x32xf32>
    %454 = vector.extract_strided_slice %402 {offsets = [2, 0, 32], sizes = [1, 2, 32], strides = [1, 1, 1]} : vector<6x2x64xf32> to vector<1x2x32xf32>
    %455 = vector.shape_cast %454 : vector<1x2x32xf32> to vector<2x32xf32>
    %456 = tpu.concatenate %453, %455 in 1 : vector<2x32xf32>, vector<2x32xf32> -> vector<2x64xf32>
    %cst_231 = arith.constant dense<0.000000e+00> : vector<2x64xf32>
    %457 = tpu.matmul %443, %394, %cst_231 {dimension_numbers = #tpu.dot_dimension_numbers<[1], [0], [0], [1], [0, 0, 1, 1], [], []>} : vector<2x64xf32>, vector<64x64xf32>, vector<2x64xf32> -> vector<2x64xf32>
    %458 = arith.addf %456, %457 : vector<2x64xf32>
    %459 = math.tanh %458 : vector<2x64xf32>
    %460 = vector.extract_strided_slice %459 {offsets = [0, 0], sizes = [2, 32], strides = [1, 1]} : vector<2x64xf32> to vector<2x32xf32>
    %c3_232 = arith.constant 3 : index
    %c0_233 = arith.constant 0 : index
    %c0_234 = arith.constant 0 : index
    %461 = vector.load %arg11[%c3_232, %c0_233, %c0_234] : memref<6x2x64xf32, #tpu.memory_space<vmem>>, vector<1x2x32xf32>
    %462 = vector.shape_cast %461 : vector<1x2x32xf32> to vector<2x32xf32>
    %463 = vector.shape_cast %460 : vector<2x32xf32> to vector<1x2x32xf32>
    tpu.vector_store %arg11[%c3_232, %c0_233, %c0_234], %463 {strides = array<i32>} : memref<6x2x64xf32, #tpu.memory_space<vmem>>, vector<1x2x32xf32>,
    %464 = vector.extract_strided_slice %459 {offsets = [0, 32], sizes = [2, 32], strides = [1, 1]} : vector<2x64xf32> to vector<2x32xf32>
    %c2_235 = arith.constant 2 : index
    %c0_236 = arith.constant 0 : index
    %c32_237 = arith.constant 32 : index
    %465 = vector.load %arg11[%c2_235, %c0_236, %c32_237] : memref<6x2x64xf32, #tpu.memory_space<vmem>>, vector<1x2x32xf32>
    %466 = vector.shape_cast %465 : vector<1x2x32xf32> to vector<2x32xf32>
    %467 = vector.shape_cast %464 : vector<2x32xf32> to vector<1x2x32xf32>
    tpu.vector_store %arg11[%c2_235, %c0_236, %c32_237], %467 {strides = array<i32>} : memref<6x2x64xf32, #tpu.memory_space<vmem>>, vector<1x2x32xf32>,
    %468 = vector.extract_strided_slice %402 {offsets = [4, 0, 0], sizes = [1, 2, 32], strides = [1, 1, 1]} : vector<6x2x64xf32> to vector<1x2x32xf32>
    %469 = vector.shape_cast %468 : vector<1x2x32xf32> to vector<2x32xf32>
    %470 = vector.extract_strided_slice %402 {offsets = [1, 0, 32], sizes = [1, 2, 32], strides = [1, 1, 1]} : vector<6x2x64xf32> to vector<1x2x32xf32>
    %471 = vector.shape_cast %470 : vector<1x2x32xf32> to vector<2x32xf32>
    %472 = tpu.concatenate %469, %471 in 1 : vector<2x32xf32>, vector<2x32xf32> -> vector<2x64xf32>
    %cst_238 = arith.constant dense<0.000000e+00> : vector<2x64xf32>
    %473 = tpu.matmul %459, %394, %cst_238 {dimension_numbers = #tpu.dot_dimension_numbers<[1], [0], [0], [1], [0, 0, 1, 1], [], []>} : vector<2x64xf32>, vector<64x64xf32>, vector<2x64xf32> -> vector<2x64xf32>
    %474 = arith.addf %472, %473 : vector<2x64xf32>
    %475 = math.tanh %474 : vector<2x64xf32>
    %476 = vector.extract_strided_slice %475 {offsets = [0, 0], sizes = [2, 32], strides = [1, 1]} : vector<2x64xf32> to vector<2x32xf32>
    %c4_239 = arith.constant 4 : index
    %c0_240 = arith.constant 0 : index
    %c0_241 = arith.constant 0 : index
    %477 = vector.load %arg11[%c4_239, %c0_240, %c0_241] : memref<6x2x64xf32, #tpu.memory_space<vmem>>, vector<1x2x32xf32>
    %478 = vector.shape_cast %477 : vector<1x2x32xf32> to vector<2x32xf32>
    %479 = vector.shape_cast %476 : vector<2x32xf32> to vector<1x2x32xf32>
    tpu.vector_store %arg11[%c4_239, %c0_240, %c0_241], %479 {strides = array<i32>} : memref<6x2x64xf32, #tpu.memory_space<vmem>>, vector<1x2x32xf32>,
    %480 = vector.extract_strided_slice %475 {offsets = [0, 32], sizes = [2, 32], strides = [1, 1]} : vector<2x64xf32> to vector<2x32xf32>
    %c1_242 = arith.constant 1 : index
    %c0_243 = arith.constant 0 : index
    %c32_244 = arith.constant 32 : index
    %481 = vector.load %arg11[%c1_242, %c0_243, %c32_244] : memref<6x2x64xf32, #tpu.memory_space<vmem>>, vector<1x2x32xf32>
    %482 = vector.shape_cast %481 : vector<1x2x32xf32> to vector<2x32xf32>
    %483 = vector.shape_cast %480 : vector<2x32xf32> to vector<1x2x32xf32>
    tpu.vector_store %arg11[%c1_242, %c0_243, %c32_244], %483 {strides = array<i32>} : memref<6x2x64xf32, #tpu.memory_space<vmem>>, vector<1x2x32xf32>,
    %484 = vector.extract_strided_slice %402 {offsets = [5, 0, 0], sizes = [1, 2, 32], strides = [1, 1, 1]} : vector<6x2x64xf32> to vector<1x2x32xf32>
    %485 = vector.shape_cast %484 : vector<1x2x32xf32> to vector<2x32xf32>
    %486 = vector.extract_strided_slice %402 {offsets = [0, 0, 32], sizes = [1, 2, 32], strides = [1, 1, 1]} : vector<6x2x64xf32> to vector<1x2x32xf32>
    %487 = vector.shape_cast %486 : vector<1x2x32xf32> to vector<2x32xf32>
    %488 = tpu.concatenate %485, %487 in 1 : vector<2x32xf32>, vector<2x32xf32> -> vector<2x64xf32>
    %cst_245 = arith.constant dense<0.000000e+00> : vector<2x64xf32>
    %489 = tpu.matmul %475, %394, %cst_245 {dimension_numbers = #tpu.dot_dimension_numbers<[1], [0], [0], [1], [0, 0, 1, 1], [], []>} : vector<2x64xf32>, vector<64x64xf32>, vector<2x64xf32> -> vector<2x64xf32>
    %490 = arith.addf %488, %489 : vector<2x64xf32>
    %491 = math.tanh %490 : vector<2x64xf32>
    %492 = vector.extract_strided_slice %491 {offsets = [0, 0], sizes = [2, 32], strides = [1, 1]} : vector<2x64xf32> to vector<2x32xf32>
    %c5_246 = arith.constant 5 : index
    %c0_247 = arith.constant 0 : index
    %c0_248 = arith.constant 0 : index
    %493 = vector.load %arg11[%c5_246, %c0_247, %c0_248] : memref<6x2x64xf32, #tpu.memory_space<vmem>>, vector<1x2x32xf32>
    %494 = vector.shape_cast %493 : vector<1x2x32xf32> to vector<2x32xf32>
    %495 = vector.shape_cast %492 : vector<2x32xf32> to vector<1x2x32xf32>
    tpu.vector_store %arg11[%c5_246, %c0_247, %c0_248], %495 {strides = array<i32>} : memref<6x2x64xf32, #tpu.memory_space<vmem>>, vector<1x2x32xf32>,
    %496 = vector.extract_strided_slice %491 {offsets = [0, 32], sizes = [2, 32], strides = [1, 1]} : vector<2x64xf32> to vector<2x32xf32>
    %c0_249 = arith.constant 0 : index
    %c0_250 = arith.constant 0 : index
    %c32_251 = arith.constant 32 : index
    %497 = vector.load %arg11[%c0_249, %c0_250, %c32_251] : memref<6x2x64xf32, #tpu.memory_space<vmem>>, vector<1x2x32xf32>
    %498 = vector.shape_cast %497 : vector<1x2x32xf32> to vector<2x32xf32>
    %499 = vector.shape_cast %496 : vector<2x32xf32> to vector<1x2x32xf32>
    tpu.vector_store %arg11[%c0_249, %c0_250, %c32_251], %499 {strides = array<i32>} : memref<6x2x64xf32, #tpu.memory_space<vmem>>, vector<1x2x32xf32>,
    %c0_252 = arith.constant 0 : index
    %c0_253 = arith.constant 0 : index
    %c0_254 = arith.constant 0 : index
    %500 = vector.load %arg9[%c0_252, %c0_253, %c0_254] : memref<8x2x64xf32, #tpu.memory_space<vmem>>, vector<8x2x64xf32>
    %c0_255 = arith.constant 0 : index
    %c0_256 = arith.constant 0 : index
    %c0_257 = arith.constant 0 : index
    %501 = vector.load %arg11[%c0_255, %c0_256, %c0_257] : memref<6x2x64xf32, #tpu.memory_space<vmem>>, vector<6x2x64xf32>
    %502 = vector.extract_strided_slice %500 {offsets = [0, 0, 0], sizes = [8, 1, 64], strides = [1, 1, 1]} : vector<8x2x64xf32> to vector<8x1x64xf32>
    %503 = vector.shape_cast %502 : vector<8x1x64xf32> to vector<8x64xf32>
    %504 = vector.extract_strided_slice %501 {offsets = [0, 0, 0], sizes = [6, 1, 64], strides = [1, 1, 1]} : vector<6x2x64xf32> to vector<6x1x64xf32>
    %505 = vector.shape_cast %504 : vector<6x1x64xf32> to vector<6x64xf32>
    %cst_258 = arith.constant dense<0.000000e+00> : vector<8x6xf32>
    %506 = tpu.matmul %503, %505, %cst_258 {dimension_numbers = #tpu.dot_dimension_numbers<[1], [1], [0], [0], [0, 0, 1, 0], [], []>} : vector<8x64xf32>, vector<6x64xf32>, vector<8x6xf32> -> vector<8x6xf32>
    %c0_259 = arith.constant 0 : index
    %c0_260 = arith.constant 0 : index
    %c0_261 = arith.constant 0 : index
    %507 = vector.load %arg7[%c0_259, %c0_260, %c0_261] : memref<2x8x6xf32, #tpu.memory_space<vmem>>, vector<1x8x6xf32>
    %508 = vector.shape_cast %507 : vector<1x8x6xf32> to vector<8x6xf32>
    %509 = vector.shape_cast %506 : vector<8x6xf32> to vector<1x8x6xf32>
    tpu.vector_store %arg7[%c0_259, %c0_260, %c0_261], %509 {strides = array<i32>} : memref<2x8x6xf32, #tpu.memory_space<vmem>>, vector<1x8x6xf32>,
    %510 = vector.extract_strided_slice %500 {offsets = [0, 1, 0], sizes = [8, 1, 64], strides = [1, 1, 1]} : vector<8x2x64xf32> to vector<8x1x64xf32>
    %511 = vector.shape_cast %510 : vector<8x1x64xf32> to vector<8x64xf32>
    %512 = vector.extract_strided_slice %501 {offsets = [0, 1, 0], sizes = [6, 1, 64], strides = [1, 1, 1]} : vector<6x2x64xf32> to vector<6x1x64xf32>
    %513 = vector.shape_cast %512 : vector<6x1x64xf32> to vector<6x64xf32>
    %cst_262 = arith.constant dense<0.000000e+00> : vector<8x6xf32>
    %514 = tpu.matmul %511, %513, %cst_262 {dimension_numbers = #tpu.dot_dimension_numbers<[1], [1], [0], [0], [0, 0, 1, 0], [], []>} : vector<8x64xf32>, vector<6x64xf32>, vector<8x6xf32> -> vector<8x6xf32>
    %c1_263 = arith.constant 1 : index
    %c0_264 = arith.constant 0 : index
    %c0_265 = arith.constant 0 : index
    %515 = vector.load %arg7[%c1_263, %c0_264, %c0_265] : memref<2x8x6xf32, #tpu.memory_space<vmem>>, vector<1x8x6xf32>
    %516 = vector.shape_cast %515 : vector<1x8x6xf32> to vector<8x6xf32>
    %517 = vector.shape_cast %514 : vector<8x6xf32> to vector<1x8x6xf32>
    tpu.vector_store %arg7[%c1_263, %c0_264, %c0_265], %517 {strides = array<i32>} : memref<2x8x6xf32, #tpu.memory_space<vmem>>, vector<1x8x6xf32>,
    return
  }
  func.func @transform_0(%arg0: i32) -> (i32, i32, i32) {
    %c0_i32 = arith.constant 0 : i32
    %c0_i32_0 = arith.constant 0 : i32
    %c0_i32_1 = arith.constant 0 : i32
    %c0_i32_2 = arith.constant 0 : i32
    return %c0_i32, %c0_i32_0, %c0_i32_1 : i32, i32, i32
  }
  func.func @transform_1(%arg0: i32) -> (i32, i32, i32) {
    %c0_i32 = arith.constant 0 : i32
    %c0_i32_0 = arith.constant 0 : i32
    %c0_i32_1 = arith.constant 0 : i32
    %c0_i32_2 = arith.constant 0 : i32
    return %c0_i32, %c0_i32_0, %c0_i32_1 : i32, i32, i32
  }
  func.func @transform_2(%arg0: i32) -> (i32, i32, i32) {
    %c0_i32 = arith.constant 0 : i32
    %c0_i32_0 = arith.constant 0 : i32
    %c0_i32_1 = arith.constant 0 : i32
    %c0_i32_2 = arith.constant 0 : i32
    return %c0_i32, %c0_i32_0, %c0_i32_1 : i32, i32, i32
  }
  func.func @transform_3(%arg0: i32) -> (i32, i32, i32, i32) {
    %c0_i32 = arith.constant 0 : i32
    %c0_i32_0 = arith.constant 0 : i32
    %c0_i32_1 = arith.constant 0 : i32
    %c0_i32_2 = arith.constant 0 : i32
    %c0_i32_3 = arith.constant 0 : i32
    return %c0_i32, %c0_i32_0, %c0_i32_1, %c0_i32_2 : i32, i32, i32, i32
  }
  func.func @transform_4(%arg0: i32) -> (i32, i32, i32, i32) {
    %c0_i32 = arith.constant 0 : i32
    %c0_i32_0 = arith.constant 0 : i32
    %c0_i32_1 = arith.constant 0 : i32
    %c0_i32_2 = arith.constant 0 : i32
    %c0_i32_3 = arith.constant 0 : i32
    return %c0_i32, %c0_i32_0, %c0_i32_1, %c0_i32_2 : i32, i32, i32, i32
  }
  func.func @transform_5(%arg0: i32) -> (i32, i32, i32, i32) {
    %c0_i32 = arith.constant 0 : i32
    %c0_i32_0 = arith.constant 0 : i32
    %c0_i32_1 = arith.constant 0 : i32
    %c0_i32_2 = arith.constant 0 : i32
    %c0_i32_3 = arith.constant 0 : i32
    return %c0_i32, %c0_i32_0, %c0_i32_1, %c0_i32_2 : i32, i32, i32, i32
  }
  func.func @transform_6(%arg0: i32) -> (i32, i32, i32) {
    %c0_i32 = arith.constant 0 : i32
    %c0_i32_0 = arith.constant 0 : i32
    %c0_i32_1 = arith.constant 0 : i32
    %c0_i32_2 = arith.constant 0 : i32
    return %c0_i32, %c0_i32_0, %c0_i32_1 : i32, i32, i32
  }
}

</mosaic_0001>

<bundles_post_ra>
// kernel: tpu_custom_call.1
= control target key start
LH: loop header
LB: loop body
LE: loop exit
PB: predicated region body
PF: predicated region fallthrough
CT: control target
= control target key end

     0   :  { %11 = vsyncpa [#allocation7], 0  ;;  %s5425_s0 = inlined_call_operand.hbm [shape: f32[8,2,16], index: 0, kind: input, shape index: {}]   ;;  %s5426_s1 = inlined_call_operand.hbm [shape: f32[6,2,16], index: 1, kind: input, shape index: {}]   ;;  %s5427_s2 = inlined_call_operand.hbm [shape: f32[2,16,64], index: 2, kind: input, shape index: {}]   ;;  %s5428_s3 = inlined_call_operand.hbm [shape: f32[1,2,64,64], index: 3, kind: input, shape index: {}]   ;;  %s5429_s4 = inlined_call_operand.hbm [shape: f32[2,2,64,64], index: 4, kind: input, shape index: {}]   ;;  %s5430_s5 = inlined_call_operand.vmem [shape: f32[2,2,1,64], index: 5, kind: input, shape index: {}]   ;;  %s5431_s6 = inlined_call_operand.vmem [shape: f32[2,8,6], index: 6, kind: output, shape index: {}]  }
   0x1   :  { %12 = vsyncpa [#allocation9], 0 }
   0x2   :  { %13 = vsyncpa [#allocation12], 0  ;;  %s4752_s21 = smov [#allocation8]   ;;  %s4636_s25 = scalar_lea.hbm %s5426_s1, 192 }
   0x3   :  { %s31_s22 = sshll.u32 %s4752_s21, 4  ;;  %p4637_p0 = scmp.ne.s32.totalorder %s5426_s1, %s4636_s25  ;;  %s32_s22 = int_to_ptr.vmem [resolvable:$true] %s31_s22 }
   0x4   :  { %p4640_p1 = scmp.lt.u32.totalorder %s4636_s25, %s5426_s1 }
   0x6   :  { %p4642_p2 = pnand %p4640_p1, %p4637_p0 }
   0x8   :  { %4645 = shalt.err (!%p4642_p2)
}
   0x9   :  { %s4646_s30 = scalar_lea.vmem %s32_s22, 192  ;;  %p4651_p4 = scmp.lt.s32.totalorder %s32_s22, %s32_s22 }
   0xa   :  { %p4647_p3 = scmp.ne.s32.totalorder %s32_s22, %s4646_s30  ;;  %p4652_p5 = scmp.lt.s32.totalorder %s4646_s30, %s4646_s30 }
   0xc   :  { %p4653_p6 = por %p4652_p5, %p4651_p4 }
   0xe   :  { %p4654_p7 = pnand %p4653_p6, %p4647_p3 }
  0x10   :  { %4657 = shalt.err (!%p4654_p7)
}
  0x11   :  { %s4753_s7 = smov 32   ;;  %s4754_s8 = smov 2  }
  0x12   :  { %37 = dma.hbm_to_vmem [thread:$0]  %s5426_s1, 192, %s32_s22, [#allocation9], %s4753_s7, %s4753_s7, %s4754_s8  }
  0x13   :  { %s4755_s11 = smov [#allocation11]   ;;  %s4756_s13 = smov [#allocation6]  }
  0x14   :  { %s55_s12 = sshll.u32 %s4755_s11, 4  ;;  %s19_s14 = sshll.u32 %s4756_s13, 4  ;;  %s56_s12 = int_to_ptr.vmem [resolvable:$true] %s55_s12  ;;  %s20_s14 = int_to_ptr.vmem [resolvable:$true] %s19_s14 }
  0x15   :  { %s4658_s17 = scalar_lea.hbm %s5428_s3, 2048 }
  0x16   :  { %p4659_p8 = scmp.ne.s32.totalorder %s5428_s3, %s4658_s17  ;;  %p4662_p9 = scmp.lt.u32.totalorder %s4658_s17, %s5428_s3 }
  0x18   :  { %p4664_p10 = pnand %p4662_p9, %p4659_p8 }
  0x1a   :  { %4667 = shalt.err (!%p4664_p10)
}
  0x1b   :  { %s4668_s1 = scalar_lea.vmem %s56_s12, 2048  ;;  %p4673_p12 = scmp.lt.s32.totalorder %s56_s12, %s56_s12 }
  0x1c   :  { %p4669_p11 = scmp.ne.s32.totalorder %s56_s12, %s4668_s1  ;;  %p4674_p13 = scmp.lt.s32.totalorder %s4668_s1, %s4668_s1 }
  0x1e   :  { %p4675_p0 = por %p4674_p13, %p4673_p12 }
  0x20   :  { %p4676_p1 = pnand %p4675_p0, %p4669_p11 }
  0x22   :  { %4679 = shalt.err (!%p4676_p1)
}
  0x23   :  { %s4757_s22 = smov 128   ;;  %s4758_s23 = smov 8  }
  0x24   :  { %61 = dma.hbm_to_vmem [thread:$0]  %s5428_s3, 2048, %s56_s12, [#allocation12], %s4757_s22, %s4757_s22, %s4758_s23  }
  0x25   :  { %s4680_s28 = scalar_lea.hbm %s5425_s0, 256 }
  0x26   :  { %p4681_p2 = scmp.ne.s32.totalorder %s5425_s0, %s4680_s28  ;;  %p4684_p3 = scmp.lt.u32.totalorder %s4680_s28, %s5425_s0 }
  0x28   :  { %p4686_p4 = pnand %p4684_p3, %p4681_p2 }
  0x2a   :  { %4689 = shalt.err (!%p4686_p4)
}
  0x2b   :  { %s4690_s11 = scalar_lea.vmem %s20_s14, 256  ;;  %p4695_p6 = scmp.lt.s32.totalorder %s20_s14, %s20_s14 }
  0x2c   :  { %p4691_p5 = scmp.ne.s32.totalorder %s20_s14, %s4690_s11  ;;  %p4696_p7 = scmp.lt.s32.totalorder %s4690_s11, %s4690_s11 }
  0x2e   :  { %p4697_p8 = por %p4696_p7, %p4695_p6 }
  0x30   :  { %p4698_p9 = pnand %p4697_p8, %p4691_p5 }
  0x32   :  { %4701 = shalt.err (!%p4698_p9)
}
  0x33   :  { %25 = dma.hbm_to_vmem [thread:$0]  %s5425_s0, 256, %s20_s14, [#allocation7], %s4753_s7, %s4753_s7, %s4754_s8  }
  0x34   :  { %s4759_s13 = smov [#allocation10]   ;;  %s4760_s16 = smov [#allocation13]  }
  0x35   :  { %s43_s15 = sshll.u32 %s4759_s13, 4  ;;  %s67_s17 = sshll.u32 %s4760_s16, 4  ;;  %s44_s15 = int_to_ptr.vmem [resolvable:$true] %s43_s15  ;;  %s68_s17 = int_to_ptr.vmem [resolvable:$true] %s67_s17 }
  0x36   :  { %s4702_s20 = scalar_lea.hbm %s5427_s2, 512 }
  0x37   :  { %p4703_p10 = scmp.ne.s32.totalorder %s5427_s2, %s4702_s20  ;;  %p4706_p11 = scmp.lt.u32.totalorder %s4702_s20, %s5427_s2 }
  0x39   :  { %p4708_p12 = pnand %p4706_p11, %p4703_p10 }
  0x3b   :  { %4711 = shalt.err (!%p4708_p12)
}
  0x3c   :  { %s4712_s0 = scalar_lea.vmem %s44_s15, 512  ;;  %p4717_p0 = scmp.lt.s32.totalorder %s44_s15, %s44_s15 }
  0x3d   :  { %p4713_p13 = scmp.ne.s32.totalorder %s44_s15, %s4712_s0  ;;  %p4718_p1 = scmp.lt.s32.totalorder %s4712_s0, %s4712_s0 }
  0x3f   :  { %p4719_p2 = por %p4718_p1, %p4717_p0 }
  0x41   :  { %p4720_p3 = pnand %p4719_p2, %p4713_p13 }
  0x43   :  { %4723 = shalt.err (!%p4720_p3)
}
  0x44   :  { %49 = dma.hbm_to_vmem [thread:$0]  %s5427_s2, 512, %s44_s15, [#allocation9], %s4757_s22, %s4757_s22, %s4758_s23  }
  0x45   :  { %s4724_s27 = scalar_lea.hbm %s5429_s4, 4096 }
  0x46   :  { %p4725_p4 = scmp.ne.s32.totalorder %s5429_s4, %s4724_s27  ;;  %p4728_p5 = scmp.lt.u32.totalorder %s4724_s27, %s5429_s4 }
  0x48   :  { %p4730_p6 = pnand %p4728_p5, %p4725_p4 }
  0x4a   :  { %4733 = shalt.err (!%p4730_p6)
}
  0x4b   :  { %s4734_s10 = scalar_lea.vmem %s68_s17, 4096  ;;  %p4739_p8 = scmp.lt.s32.totalorder %s68_s17, %s68_s17 }
  0x4c   :  { %p4735_p7 = scmp.ne.s32.totalorder %s68_s17, %s4734_s10  ;;  %p4740_p9 = scmp.lt.s32.totalorder %s4734_s10, %s4734_s10 }
  0x4e   :  { %p4741_p10 = por %p4740_p9, %p4739_p8 }
  0x50   :  { %p4742_p11 = pnand %p4741_p10, %p4735_p7 }
  0x52   :  { %4745 = shalt.err (!%p4742_p11)
}
  0x53   :  { %73 = dma.hbm_to_vmem [thread:$0]  %s5429_s4, 4096, %s68_s17, [#allocation12], %s4757_s22, %s4757_s22, %s4758_s23  }
  0x54   :  { %4746 = dma.done.wait [#allocation7], 256  }
  0x55   :  { %4747 = vsyncadd [#allocation7], 4294967040 }
  0x56   :  { %4748 = dma.done.wait [#allocation9], 704  }
  0x57   :  { %4749 = vsyncadd [#allocation9], 4294966592 }
  0x58   :  { %4750 = dma.done.wait [#allocation12], 6144  }
  0x59   :  { %4751 = vsyncadd [#allocation12], 4294961152  ;;  %v129_v0 = vlaneseq  ;;  %v4761_v1 = vmov 0.0|0.0   ;;  %v4762_v2 = vmov 1983009808   ;;  %vm4763_vm0 = vmmov 0  }
  0x5a   :  { %4195 = vmatprep.subr.bf16.mxu1 %v4761_v1  ;;  %v127_v3 = vunpack.c.l.s4 %v4762_v2  ;;  %v4764_v4 = vmov 0.0   ;;  %v93_v7 = vld [vmem:[#allocation13] sm:$0xff]  ;;  %v94_v8 = vld [vmem:[#allocation13 + $0x8] sm:$0xff]  ;;  %v95_v19 = vld [vmem:[#allocation13 + $0x10] sm:$0xff]  ;;  %vm158_vm1 = vcmask 130048   ;;  %vm282_vm2 = vcmask 261120  }
  0x5b   :  { %3620 = vmatprep.mubr.msk.f32.mxu1 %vm4763_vm0, %v4764_v4  ;;  %v130_v6 = vshrl.u32 %v129_v0, 7  ;;  %v91_v9 = vld [vmem:[#allocation10] sm:$0xff]  ;;  %v4880_v11 = vpack.c.bf16 %v94_v8, %v93_v7  ;;  %v92_v12 = vld [vmem:[#allocation10 + $0x8] sm:$0xff]  ;;  %v96_v21 = vld [vmem:[#allocation13 + $0x18] sm:$0xff]  ;;  %vm360_vm3 = vcmask 254976   ;;  %vm363_vm4 = vcmask 517376  }
  0x5c   :  { %v128_v5 = vunpack.c.0.s8 %v127_v3  ;;  %v102_v13 = vld [vmem:[#allocation6] sm:$0x3]  ;;  %v103_v14 = vld [vmem:[#allocation6 + $0x2] sm:$0x3]  ;;  %v4191_v15 = vpack.c.bf16 %v92_v12, %v91_v9  ;;  %v104_v16 = vld [vmem:[#allocation6 + $0x4] sm:$0x3]  ;;  %v4885_v25 = vpack.c.bf16 %v96_v21, %v95_v19 }
  0x5d   :  { %v105_v17 = vld [vmem:[#allocation6 + $0x6] sm:$0x3]  ;;  %v124_v18 = vcombine.low %v102_v13, %v103_v14  ;;  %4197 = vmatpush3.bf16.msra.mxu1 %v4880_v11  ;;  %v106_v22 = vld [vmem:[#allocation6 + $0x8] sm:$0x3]  ;;  %v107_v23 = vld [vmem:[#allocation6 + $0xa] sm:$0x3] }
  0x5e   :  { %v4878_v10 = vsub.s32 %v128_v5, %v130_v6  ;;  %v125_v20 = vcombine.low %v104_v16, %v105_v17  ;;  %4192 = vmatprep.subr.bf16.mxu0 %v4191_v15  ;;  %4198 = vmatprep.subr.bf16.mxu1 %v4761_v1  ;;  %v108_v26 = vld [vmem:[#allocation6 + $0xc] sm:$0x3]  ;;  %v109_v27 = vld [vmem:[#allocation6 + $0xe] sm:$0x3]  ;;  %v141_v28 = vcombine.low %v106_v22, %v107_v23  ;;  %v97_v29 = vld [vmem:[#allocation13 + $0x20] sm:$0xff]  ;;  %vm284_vm5 = vcmask 523264  }
  0x5f   :  { %4194 = vmatpush3.bf16.msra.mxu0 %v4191_v15  ;;  %v142_v31 = vcombine.low %v108_v26, %v109_v27  ;;  %v98_v32 = vld [vmem:[#allocation13 + $0x28] sm:$0xff]  ;;  %v99_v37 = vld [vmem:[#allocation13 + $0x30] sm:$0xff]  ;;  %v100_v38 = vld [vmem:[#allocation13 + $0x38] sm:$0xff]  ;;  %vm3050_vm6 = vcmask 1041409   ;;  %vm3053_vm7 = vcmask 1042434   ;;  %vm3056_vm8 = vcmask 1043459  }
  0x60   :  { %v132_v24 = vrot.slane %v124_v18, %v4878_v10  ;;  %v139_v30 = vrot.slane %v125_v20, %v4878_v10  ;;  %v149_v33 = vrot.slane %v141_v28, %v4878_v10  ;;  %4207 = vmatprep.subr.bf16.mxu0 %v4761_v1  ;;  %v4892_v36 = vpack.c.bf16 %v98_v32, %v97_v29  ;;  %v3269_v41 = vld [vmem:[%s5430_s5] ss:$0 sm:$0xff] }
  0x61   :  { %4200 = vmatpush3.bf16.msra.mxu1 %v4885_v25  ;;  %v156_v35 = vrot.slane %v142_v31, %v4878_v10  ;;  %v4898_v40 = vpack.c.bf16 %v100_v38, %v99_v37  ;;  %v917_v31 = vld [vmem:[#allocation11] sm:$0xff]  ;;  %v918_v32 = vld [vmem:[#allocation11 + $0x8] sm:$0xff]  ;;  %vm3059_vm9 = vcmask 1044484   ;;  %vm3062_vm10 = vcmask 1045509  }
  0x62   :  { %v140_v34 = vcombine.low %v132_v24, %v139_v30  ;;  %4201 = vmatprep.subr.bf16.mxu1 %v4761_v1  ;;  %v922_v38 = vld [vmem:[#allocation11 + $0x28] sm:$0xff]  ;;  %vm3065_vm11 = vcmask 1046534   ;;  %vm3068_vm12 = vcmask 1047559   ;;  %vm3160_vm13 = vcmask 48128  }
  0x63   :  { %v157_v39 = vcombine.low %v149_v33, %v156_v35  ;;  %v4291_v33 = vpack.c.bf16 %v918_v32, %v917_v31  ;;  %v920_v35 = vld [vmem:[#allocation11 + $0x18] sm:$0xff] }
  0x64   :  { %3601 = vmatprep.mubr.msk.f32.mxu0 %vm158_vm1, %v140_v34  ;;  %v919_v34 = vld [vmem:[#allocation11 + $0x10] sm:$0xff] }
  0x65   :  { %3602 = vmatmul.mubr.msk.f32.vlgmr.msra.gmra.mrb[0].mxu0 %vm158_vm1, %v157_v39  ;;  %4203 = vmatpush3.bf16.msra.mxu1 %v4892_v36  ;;  %v4295_v37 = vpack.c.bf16 %v920_v35, %v919_v34  ;;  %v926_v39 = vld [vmem:[#allocation13 + $0x80] sm:$0xff] }
  0x66   :  { %4204 = vmatprep.subr.bf16.mxu1 %v4761_v1  ;;  %4209 = vmatpush3.bf16.msra.mxu0 %v4880_v11 }
  0x67   :  { %4210 = vmatprep.subr.bf16.mxu0 %v4761_v1  ;;  %3639 = vmatprep.mubr.msk.f32.mxu0 %vm4763_vm0, %v4764_v4 }
  0x69   :  { %4206 = vmatpush3.bf16.msra.mxu1 %v4898_v40 }
  0x6a   :  { %4212 = vmatpush3.bf16.msra.mxu0 %v4885_v25  ;;  %4219 = vmatprep.subr.bf16.mxu1 %v4761_v1 }
  0x6b   :  { %4213 = vmatprep.subr.bf16.mxu0 %v4761_v1 }
  0x6c   :  { %3621 = vmatmul.mubr.f32.vlgmr.msra.gmra.mrb[0].mxu1 %v4764_v4 }
  0x6d   :  { %4221 = vmatpush3.bf16.msra.mxu1 %v4880_v11  ;;  %3658 = vmatprep.mubr.msk.f32.mxu1 %vm4763_vm0, %v4764_v4 }
  0x6e   :  { %4215 = vmatpush3.bf16.msra.mxu0 %v4892_v36  ;;  %4222 = vmatprep.subr.bf16.mxu1 %v4761_v1 }
  0x6f   :  { %4216 = vmatprep.subr.bf16.mxu0 %v4761_v1 }
  0x71   :  { %4224 = vmatpush3.bf16.msra.mxu1 %v4885_v25 }
  0x72   :  { %4218 = vmatpush3.bf16.msra.mxu0 %v4898_v40  ;;  %4225 = vmatprep.subr.bf16.mxu1 %v4761_v1 }
  0x73   :  { %4231 = vmatprep.subr.bf16.mxu0 %v4761_v1 }
  0x75   :  { %4227 = vmatpush3.bf16.msra.mxu1 %v4892_v36 }
  0x76   :  { %4228 = vmatprep.subr.bf16.mxu1 %v4761_v1 }
  0x79   :  { %4230 = vmatpush3.bf16.msra.mxu1 %v4898_v40 }
  0x7a   :  { %4243 = vmatprep.subr.bf16.mxu1 %v4761_v1 }
 0x138   :  { %v3603_v42 = vpop.f32.mrb[0].mxu0 }
 0x139   :  { %v235_v43 = vadd.f32 %v3603_v42, %v3269_v41  ;;  %v229_v44 = vpop.f32.mrb[1].mxu0  ;;  %v928_v42 = vld [vmem:[#allocation13 + $0x90] sm:$0xff] }
 0x13a   :  { %v230_v45 = vadd.f32 %v3269_v41, %v229_v44  ;;  %v929_v44 = vld [vmem:[#allocation13 + $0x98] sm:$0xff] }
 0x13b   :  { %v257_v46 = vcombine.high %v235_v43, %v235_v43  ;;  %v264_v47 = vrot.slane %v235_v43, %v4878_v10 }
 0x13c   :  { %v240_v48 = vcombine.high %v230_v45, %v230_v45  ;;  %v247_v49 = vrot.slane %v230_v45, %v4878_v10  ;;  %v923_v45 = vld [vmem:[#allocation11 + $0x30] sm:$0xff] }
 0x13d   :  { %v271_v50 = vrot.slane %v257_v46, %v4878_v10  ;;  %v272_v51 = vcombine.high %v264_v47, %v264_v47  ;;  %v924_v46 = vld [vmem:[#allocation11 + $0x38] sm:$0xff] }
 0x13e   :  { %v254_v52 = vrot.slane %v240_v48, %v4878_v10  ;;  %v255_v53 = vcombine.high %v247_v49, %v247_v49  ;;  %v4303_v48 = vpack.c.bf16 %v924_v46, %v923_v45 }
 0x13f   :  { %v273_v54 = vcombine.high %v271_v50, %v271_v50  ;;  %v354_v55 = vpop.f32.mrb[0].mxu1 }
 0x140   :  { %v3622_v56 = vpop.f32.mrb[1].mxu1  ;;  %v365_v57 = vsel %vm282_vm2, %v255_v53, %v271_v50  ;;  %v445_v58 = vsel %vm282_vm2, %v254_v52, %v272_v51  ;;  %v256_v59 = vcombine.high %v254_v52, %v254_v52  ;;  %v4934_v60 = vsel %vm282_vm2, %v272_v51, %v254_v52  ;;  %v932_v51 = vld [vmem:[#allocation13 + $0xb0] sm:$0xff] }
 0x141   :  { %v283_v61 = vsel %vm282_vm2, %v247_v49, %v273_v54  ;;  %v4938_v62 = vsel %vm282_vm2, %v271_v50, %v255_v53  ;;  %v4941_v63 = vsel %vm282_vm2, %v273_v54, %v247_v49  ;;  %v930_v49 = vld [vmem:[#allocation13 + $0xa0] sm:$0xff]  ;;  %v931_v50 = vld [vmem:[#allocation13 + $0xa8] sm:$0xff]  ;;  %v933_v53 = vld [vmem:[#allocation13 + $0xb8] sm:$0xff] }
 0x142   :  { %v358_v0 = vadd.f32 %v354_v55, %v283_v61  ;;  %v525_v2 = vsel %vm282_vm2, %v256_v59, %v264_v47  ;;  %v4945_v3 = vsel %vm282_vm2, %v264_v47, %v256_v59  ;;  %v5025_v47 = vpack.c.bf16 %v929_v44, %v928_v42 }
 0x143   :  { %v5031_v52 = vpack.c.bf16 %v931_v50, %v930_v49  ;;  %v5034_v54 = vpack.c.bf16 %v933_v53, %v932_v51 }
 0x144   :  { %4580 = vtanh.f32 %v358_v0 }
 0x14e   :  { %v4581_v5 = vpop.eup %4580 }
 0x14f   :  { %361 = vst.msk [vmem:[#allocation2] sm:$0x3] %vm360_vm3, %v4581_v5  ;;  %3640 = vmatmul.mubr.msk.f32.vlgmr.msra.gmra.mrb[2].mxu0 %vm284_vm5, %v4581_v5 }
 0x150   :  { %364 = vst.msk [vmem:[#allocation2 + $0xe] sm:$0x3] %vm363_vm4, %v4581_v5  ;;  %4233 = vmatpush3.bf16.msra.mxu0 %v4880_v11  ;;  %3677 = vmatprep.mubr.msk.f32.mxu0 %vm4763_vm0, %v4764_v4 }
 0x151   :  { %4234 = vmatprep.subr.bf16.mxu0 %v4761_v1 }
 0x154   :  { %4236 = vmatpush3.bf16.msra.mxu0 %v4885_v25 }
 0x155   :  { %4237 = vmatprep.subr.bf16.mxu0 %v4761_v1 }
 0x158   :  { %4239 = vmatpush3.bf16.msra.mxu0 %v4892_v36 }
 0x159   :  { %4240 = vmatprep.subr.bf16.mxu0 %v4761_v1 }
 0x15c   :  { %4242 = vmatpush3.bf16.msra.mxu0 %v4898_v40 }
 0x15d   :  { %4255 = vmatprep.subr.bf16.mxu0 %v4761_v1 }
 0x222   :  { %v435_v6 = vpop.f32.mrb[2].mxu0 }
 0x223   :  { %v439_v7 = vadd.f32 %v435_v6, %v365_v57  ;;  %v3641_v8 = vpop.f32.mrb[3].mxu0 }
 0x225   :  { %4582 = vtanh.f32 %v439_v7 }
 0x22f   :  { %v4583_v9 = vpop.eup %4582 }
 0x230   :  { %442 = vst.msk [vmem:[#allocation2 + $0x2] sm:$0x3] %vm360_vm3, %v4583_v9  ;;  %3659 = vmatmul.mubr.msk.f32.vlgmr.msra.gmra.mrb[2].mxu1 %vm284_vm5, %v4583_v9 }
 0x231   :  { %444 = vst.msk [vmem:[#allocation2 + $0xc] sm:$0x3] %vm363_vm4, %v4583_v9  ;;  %4245 = vmatpush3.bf16.msra.mxu1 %v4880_v11  ;;  %3696 = vmatprep.mubr.msk.f32.mxu1 %vm4763_vm0, %v4764_v4 }
 0x232   :  { %4246 = vmatprep.subr.bf16.mxu1 %v4761_v1 }
 0x235   :  { %4248 = vmatpush3.bf16.msra.mxu1 %v4885_v25 }
 0x236   :  { %4249 = vmatprep.subr.bf16.mxu1 %v4761_v1 }
 0x239   :  { %4251 = vmatpush3.bf16.msra.mxu1 %v4892_v36 }
 0x23a   :  { %4252 = vmatprep.subr.bf16.mxu1 %v4761_v1 }
 0x23d   :  { %4254 = vmatpush3.bf16.msra.mxu1 %v4898_v40 }
 0x23e   :  { %4267 = vmatprep.subr.bf16.mxu1 %v4761_v1 }
 0x303   :  { %v515_v12 = vpop.f32.mrb[2].mxu1 }
 0x304   :  { %v519_v13 = vadd.f32 %v515_v12, %v445_v58  ;;  %v3660_v14 = vpop.f32.mrb[3].mxu1 }
 0x306   :  { %4584 = vtanh.f32 %v519_v13 }
 0x310   :  { %v4585_v15 = vpop.eup %4584 }
 0x311   :  { %522 = vst.msk [vmem:[#allocation2 + $0x4] sm:$0x3] %vm360_vm3, %v4585_v15  ;;  %3678 = vmatmul.mubr.msk.f32.vlgmr.msra.gmra.mrb[4].mxu0 %vm284_vm5, %v4585_v15 }
 0x312   :  { %524 = vst.msk [vmem:[#allocation2 + $0xa] sm:$0x3] %vm363_vm4, %v4585_v15  ;;  %4257 = vmatpush3.bf16.msra.mxu0 %v4880_v11  ;;  %3715 = vmatprep.mubr.msk.f32.mxu0 %vm4763_vm0, %v4764_v4 }
 0x313   :  { %4258 = vmatprep.subr.bf16.mxu0 %v4761_v1 }
 0x316   :  { %4260 = vmatpush3.bf16.msra.mxu0 %v4885_v25 }
 0x317   :  { %4261 = vmatprep.subr.bf16.mxu0 %v4761_v1 }
 0x31a   :  { %4263 = vmatpush3.bf16.msra.mxu0 %v4892_v36 }
 0x31b   :  { %4264 = vmatprep.subr.bf16.mxu0 %v4761_v1 }
 0x31e   :  { %4266 = vmatpush3.bf16.msra.mxu0 %v4898_v40 }
 0x31f   :  { %4279 = vmatprep.subr.bf16.mxu0 %v4761_v1 }
 0x3e4   :  { %v595_v16 = vpop.f32.mrb[4].mxu0 }
 0x3e5   :  { %v599_v17 = vadd.f32 %v595_v16, %v525_v2  ;;  %v3679_v18 = vpop.f32.mrb[5].mxu0 }
 0x3e7   :  { %4586 = vtanh.f32 %v599_v17 }
 0x3f1   :  { %v4587_v19 = vpop.eup %4586 }
 0x3f2   :  { %602 = vst.msk [vmem:[#allocation2 + $0x6] sm:$0x3] %vm360_vm3, %v4587_v19  ;;  %3697 = vmatmul.mubr.msk.f32.vlgmr.msra.gmra.mrb[4].mxu1 %vm284_vm5, %v4587_v19 }
 0x3f3   :  { %604 = vst.msk [vmem:[#allocation2 + $0x8] sm:$0x3] %vm363_vm4, %v4587_v19  ;;  %4269 = vmatpush3.bf16.msra.mxu1 %v4880_v11  ;;  %3734 = vmatprep.mubr.msk.f32.mxu1 %vm4763_vm0, %v4764_v4  ;;  %v3280_v19 = vld [vmem:[%s5430_s5 + $0x2] ss:$0 sm:$0xff] }
 0x3f4   :  { %4270 = vmatprep.subr.bf16.mxu1 %v4761_v1 }
 0x3f7   :  { %4272 = vmatpush3.bf16.msra.mxu1 %v4885_v25 }
 0x3f8   :  { %4273 = vmatprep.subr.bf16.mxu1 %v4761_v1 }
 0x3fb   :  { %4275 = vmatpush3.bf16.msra.mxu1 %v4892_v36 }
 0x3fc   :  { %4276 = vmatprep.subr.bf16.mxu1 %v4761_v1 }
 0x3ff   :  { %4278 = vmatpush3.bf16.msra.mxu1 %v4898_v40 }
 0x400   :  { %4292 = vmatprep.subr.bf16.mxu1 %v4291_v33 }
 0x4c5   :  { %v675_v20 = vpop.f32.mrb[4].mxu1 }
 0x4c6   :  { %v679_v21 = vadd.f32 %v675_v20, %v4945_v3  ;;  %v3698_v22 = vpop.f32.mrb[5].mxu1 }
 0x4c8   :  { %4588 = vtanh.f32 %v679_v21 }
 0x4d2   :  { %v4589_v23 = vpop.eup %4588 }
 0x4d3   :  { %681 = vst.msk [vmem:[#allocation2 + $0x8] sm:$0x3] %vm360_vm3, %v4589_v23  ;;  %3716 = vmatmul.mubr.msk.f32.vlgmr.msra.gmra.mrb[6].mxu0 %vm284_vm5, %v4589_v23 }
 0x4d4   :  { %682 = vst.msk [vmem:[#allocation2 + $0x6] sm:$0x3] %vm363_vm4, %v4589_v23  ;;  %4281 = vmatpush3.bf16.msra.mxu0 %v4880_v11  ;;  %3753 = vmatprep.mubr.msk.f32.mxu0 %vm4763_vm0, %v4764_v4 }
 0x4d5   :  { %4282 = vmatprep.subr.bf16.mxu0 %v4761_v1 }
 0x4d8   :  { %4284 = vmatpush3.bf16.msra.mxu0 %v4885_v25 }
 0x4d9   :  { %4285 = vmatprep.subr.bf16.mxu0 %v4761_v1 }
 0x4db   :  { %v939_v61 = vld [vmem:[#allocation2 + $0x6] sm:$0x3] }
 0x4dc   :  { %4287 = vmatpush3.bf16.msra.mxu0 %v4892_v36  ;;  %v921_v36 = vld [vmem:[#allocation11 + $0x20] sm:$0xff] }
 0x4dd   :  { %4288 = vmatprep.subr.bf16.mxu0 %v4761_v1  ;;  %v4299_v43 = vpack.c.bf16 %v922_v38, %v921_v36 }
 0x4e0   :  { %4290 = vmatpush3.bf16.msra.mxu0 %v4898_v40  ;;  %v927_v40 = vld [vmem:[#allocation13 + $0x88] sm:$0xff] }
 0x4e1   :  { %4307 = vmatprep.subr.bf16.mxu0 %v4761_v1  ;;  %v5022_v41 = vpack.c.bf16 %v927_v40, %v926_v39 }
 0x5a6   :  { %v753_v24 = vpop.f32.mrb[6].mxu0 }
 0x5a7   :  { %v757_v11 = vadd.f32 %v753_v24, %v4934_v60  ;;  %v3717_v26 = vpop.f32.mrb[7].mxu0 }
 0x5a9   :  { %4590 = vtanh.f32 %v757_v11 }
 0x5b3   :  { %v4591_v27 = vpop.eup %4590 }
 0x5b4   :  { %759 = vst.msk [vmem:[#allocation2 + $0xa] sm:$0x3] %vm360_vm3, %v4591_v27  ;;  %3735 = vmatmul.mubr.msk.f32.vlgmr.msra.gmra.mrb[6].mxu1 %vm284_vm5, %v4591_v27 }
 0x5b5   :  { %760 = vst.msk [vmem:[#allocation2 + $0x4] sm:$0x3] %vm363_vm4, %v4591_v27  ;;  %4294 = vmatpush3.bf16.msra.mxu1 %v4291_v33 }
 0x5b6   :  { %4296 = vmatprep.subr.bf16.mxu1 %v4295_v37 }
 0x5b9   :  { %4298 = vmatpush3.bf16.msra.mxu1 %v4295_v37 }
 0x5ba   :  { %4300 = vmatprep.subr.bf16.mxu1 %v4299_v43 }
 0x5bb   :  { %v941_v60 = vld [vmem:[#allocation2 + $0xa] sm:$0x3] }
 0x5bc   :  { %v938_v59 = vld [vmem:[#allocation2 + $0x4] sm:$0x3] }
 0x5bd   :  { %4302 = vmatpush3.bf16.msra.mxu1 %v4299_v43  ;;  %v959_v2 = vcombine.low %v938_v59, %v939_v61 }
 0x5be   :  { %4304 = vmatprep.subr.bf16.mxu1 %v4303_v48 }
 0x5bf   :  { %v973_v12 = vrot.slane %v959_v2, %v4878_v10  ;;  %v1745_v2 = vld [vmem:[#allocation10 + $0x18] sm:$0xff] }
 0x5c1   :  { %4306 = vmatpush3.bf16.msra.mxu1 %v4303_v48 }
 0x5c2   :  { %4319 = vmatprep.subr.bf16.mxu1 %v4761_v1 }
 0x687   :  { %v831_v25 = vpop.f32.mrb[6].mxu1 }
 0x688   :  { %v835_v28 = vadd.f32 %v831_v25, %v4938_v62  ;;  %v3736_v29 = vpop.f32.mrb[7].mxu1  ;;  %v940_v62 = vld [vmem:[#allocation2 + $0x8] sm:$0x3] }
 0x689   :  { %v975_v3 = vcombine.low %v940_v62, %v941_v60 }
 0x68a   :  { %4592 = vtanh.f32 %v835_v28 }
 0x68b   :  { %v983_v13 = vrot.slane %v975_v3, %v4878_v10  ;;  %v1757_v3 = vld [vmem:[#allocation8] sm:$0x3] }
 0x694   :  { %v4593_v30 = vpop.eup %4592 }
 0x695   :  { %837 = vst.msk [vmem:[#allocation2 + $0xc] sm:$0x3] %vm360_vm3, %v4593_v30  ;;  %3754 = vmatmul.mubr.msk.f32.vlgmr.msra.gmra.mrb[8].mxu0 %vm284_vm5, %v4593_v30 }
 0x696   :  { %838 = vst.msk [vmem:[#allocation2 + $0x2] sm:$0x3] %vm363_vm4, %v4593_v30  ;;  %3791 = vmatprep.mubr.msk.f32.mxu0 %vm4763_vm0, %v4764_v4  ;;  %4309 = vmatpush3.bf16.msra.mxu0 %v5022_v41 }
 0x697   :  { %4310 = vmatprep.subr.bf16.mxu0 %v4761_v1 }
 0x69a   :  { %4312 = vmatpush3.bf16.msra.mxu0 %v5025_v47 }
 0x69b   :  { %4313 = vmatprep.subr.bf16.mxu0 %v4761_v1 }
 0x69c   :  { %v942_v6 = vld [vmem:[#allocation2 + $0xc] sm:$0x3] }
 0x69d   :  { %v937_v0 = vld [vmem:[#allocation2 + $0x2] sm:$0x3] }
 0x69e   :  { %4315 = vmatpush3.bf16.msra.mxu0 %v5031_v52 }
 0x69f   :  { %4316 = vmatprep.subr.bf16.mxu0 %v4761_v1 }
 0x6a2   :  { %4318 = vmatpush3.bf16.msra.mxu0 %v5034_v54 }
 0x6a3   :  { %4331 = vmatprep.subr.bf16.mxu0 %v4761_v1 }
 0x6a5   :  { %3792 = vmatmul.mubr.f32.vlgmr.msra.gmra.mrb[10].mxu0 %v4764_v4 }
 0x6a6   :  { %4333 = vmatpush3.bf16.msra.mxu0 %v5022_v41  ;;  %3829 = vmatprep.mubr.msk.f32.mxu0 %vm4763_vm0, %v4764_v4 }
 0x6a7   :  { %4334 = vmatprep.subr.bf16.mxu0 %v4761_v1 }
 0x6aa   :  { %4336 = vmatpush3.bf16.msra.mxu0 %v5025_v47 }
 0x6ab   :  { %4337 = vmatprep.subr.bf16.mxu0 %v4761_v1 }
 0x6ae   :  { %4339 = vmatpush3.bf16.msra.mxu0 %v5031_v52 }
 0x6af   :  { %4340 = vmatprep.subr.bf16.mxu0 %v4761_v1 }
 0x6b2   :  { %4342 = vmatpush3.bf16.msra.mxu0 %v5034_v54 }
 0x6b3   :  { %4355 = vmatprep.subr.bf16.mxu0 %v4761_v1 }
 0x768   :  { %v909_v55 = vpop.f32.mrb[8].mxu0 }
 0x769   :  { %v913_v56 = vadd.f32 %v909_v55, %v4941_v63  ;;  %v3755_v57 = vpop.f32.mrb[9].mxu0 }
 0x76b   :  { %4594 = vtanh.f32 %v913_v56 }
 0x775   :  { %v4595_v58 = vpop.eup %4594 }
 0x776   :  { %915 = vst.msk [vmem:[#allocation2 + $0xe] sm:$0x3] %vm360_vm3, %v4595_v58 }
 0x777   :  { %916 = vst.msk [vmem:[#allocation2] sm:$0x3] %vm363_vm4, %v4595_v58 }
 0x778   :  { %v1182_v17 = vpop.f32.mrb[10].mxu0 }
 0x779   :  { %v3793_v18 = vpop.f32.mrb[11].mxu0 }
 0x77a   :  { %v1748_v18 = vld [vmem:[#allocation13 + $0x48] sm:$0xff] }
 0x77d   :  { %v943_v7 = vld [vmem:[#allocation2 + $0xe] sm:$0x3] }
 0x77e   :  { %v936_v5 = vld [vmem:[#allocation2] sm:$0x3]  ;;  %v976_v9 = vcombine.low %v942_v6, %v943_v7  ;;  %v1759_v7 = vld [vmem:[#allocation8 + $0x4] sm:$0x3] }
 0x77f   :  { %v958_v8 = vcombine.low %v936_v5, %v937_v0  ;;  %v1744_v0 = vld [vmem:[#allocation10 + $0x10] sm:$0xff] }
 0x780   :  { %v990_v14 = vrot.slane %v976_v9, %v4878_v10  ;;  %v1758_v5 = vld [vmem:[#allocation8 + $0x2] sm:$0x3] }
 0x781   :  { %v966_v63 = vrot.slane %v958_v8, %v4878_v10  ;;  %v1760_v8 = vld [vmem:[#allocation8 + $0x6] sm:$0x3] }
 0x782   :  { %v991_v16 = vcombine.low %v983_v13, %v990_v14  ;;  %v1761_v13 = vld [vmem:[#allocation8 + $0x8] sm:$0x3]  ;;  %v1762_v14 = vld [vmem:[#allocation8 + $0xa] sm:$0x3] }
 0x783   :  { %v974_v15 = vcombine.low %v966_v63, %v973_v12  ;;  %v1776_v63 = vcombine.low %v1759_v7, %v1760_v8 }
 0x785   :  { %3772 = vmatprep.mubr.msk.f32.mxu1 %vm284_vm5, %v974_v15  ;;  %v1792_v15 = vcombine.low %v1761_v13, %v1762_v14 }
 0x786   :  { %3773 = vmatmul.mubr.msk.f32.vlgmr.msra.gmra.mrb[8].mxu1 %vm284_vm5, %v991_v16 }
 0x787   :  { %4321 = vmatpush3.bf16.msra.mxu1 %v5022_v41  ;;  %3810 = vmatprep.mubr.msk.f32.mxu1 %vm4763_vm0, %v4764_v4 }
 0x788   :  { %4322 = vmatprep.subr.bf16.mxu1 %v4761_v1 }
 0x78b   :  { %4324 = vmatpush3.bf16.msra.mxu1 %v5025_v47 }
 0x78c   :  { %4325 = vmatprep.subr.bf16.mxu1 %v4761_v1 }
 0x78f   :  { %4327 = vmatpush3.bf16.msra.mxu1 %v5031_v52 }
 0x790   :  { %4328 = vmatprep.subr.bf16.mxu1 %v4761_v1 }
 0x793   :  { %4330 = vmatpush3.bf16.msra.mxu1 %v5034_v54 }
 0x794   :  { %4343 = vmatprep.subr.bf16.mxu1 %v4761_v1 }
 0x859   :  { %v3774_v20 = vpop.f32.mrb[8].mxu1 }
 0x85a   :  { %v1068_v21 = vadd.f32 %v3774_v20, %v3280_v19  ;;  %v1062_v22 = vpop.f32.mrb[9].mxu1  ;;  %v1799_v20 = vrot.slane %v1792_v15, %v4878_v10 }
 0x85b   :  { %v1063_v23 = vadd.f32 %v3280_v19, %v1062_v22  ;;  %v1749_v22 = vld [vmem:[#allocation13 + $0x50] sm:$0xff] }
 0x85c   :  { %v1090_v24 = vcombine.high %v1068_v21, %v1068_v21  ;;  %v1097_v11 = vrot.slane %v1068_v21, %v4878_v10 }
 0x85d   :  { %v1073_v26 = vcombine.high %v1063_v23, %v1063_v23  ;;  %v1080_v27 = vrot.slane %v1063_v23, %v4878_v10  ;;  %v1750_v23 = vld [vmem:[#allocation13 + $0x58] sm:$0xff] }
 0x85e   :  { %v1104_v25 = vrot.slane %v1090_v24, %v4878_v10  ;;  %v1105_v28 = vcombine.high %v1097_v11, %v1097_v11  ;;  %v5170_v24 = vpack.c.bf16 %v1750_v23, %v1749_v22  ;;  %v2393_v23 = vld [vmem:[#allocation13 + $0xc8] sm:$0xff] }
 0x85f   :  { %v1087_v29 = vrot.slane %v1073_v26, %v4878_v10  ;;  %v1088_v30 = vcombine.high %v1080_v27, %v1080_v27  ;;  %v1752_v26 = vld [vmem:[#allocation13 + $0x68] sm:$0xff] }
 0x860   :  { %v1106_v31 = vcombine.high %v1104_v25, %v1104_v25 }
 0x861   :  { %v1191_v32 = vsel %vm282_vm2, %v1088_v30, %v1104_v25  ;;  %v1271_v33 = vsel %vm282_vm2, %v1087_v29, %v1105_v28  ;;  %v1089_v34 = vcombine.high %v1087_v29, %v1087_v29  ;;  %v5079_v35 = vsel %vm282_vm2, %v1105_v28, %v1087_v29  ;;  %v1754_v28 = vld [vmem:[#allocation13 + $0x78] sm:$0xff] }
 0x862   :  { %v1115_v36 = vsel %vm282_vm2, %v1080_v27, %v1106_v31  ;;  %v5083_v37 = vsel %vm282_vm2, %v1104_v25, %v1088_v30  ;;  %v5086_v38 = vsel %vm282_vm2, %v1106_v31, %v1080_v27  ;;  %v1753_v25 = vld [vmem:[#allocation13 + $0x70] sm:$0xff] }
 0x863   :  { %v1186_v39 = vadd.f32 %v1182_v17, %v1115_v36  ;;  %v1351_v40 = vsel %vm282_vm2, %v1089_v34, %v1097_v11  ;;  %v5090_v42 = vsel %vm282_vm2, %v1097_v11, %v1089_v34  ;;  %v1747_v17 = vld [vmem:[#allocation13 + $0x40] sm:$0xff]  ;;  %v5180_v29 = vpack.c.bf16 %v1754_v28, %v1753_v25  ;;  %v2394_v25 = vld [vmem:[#allocation13 + $0xd0] sm:$0xff]  ;;  %v2395_v28 = vld [vmem:[#allocation13 + $0xd8] sm:$0xff] }
 0x864   :  { %v5165_v21 = vpack.c.bf16 %v1748_v18, %v1747_v17  ;;  %v1751_v11 = vld [vmem:[#allocation13 + $0x60] sm:$0xff]  ;;  %v2384_v17 = vld [vmem:[#allocation11 + $0x48] sm:$0xff] }
 0x865   :  { %4596 = vtanh.f32 %v1186_v39  ;;  %v5176_v27 = vpack.c.bf16 %v1752_v26, %v1751_v11  ;;  %v2388_v11 = vld [vmem:[#allocation11 + $0x68] sm:$0xff] }
 0x86f   :  { %v4597_v43 = vpop.eup %4596 }
 0x870   :  { %1188 = vst.msk [vmem:[#allocation3] sm:$0x3] %vm360_vm3, %v4597_v43  ;;  %3811 = vmatmul.mubr.msk.f32.vlgmr.msra.gmra.mrb[10].mxu1 %vm284_vm5, %v4597_v43 }
 0x871   :  { %1190 = vst.msk [vmem:[#allocation3 + $0xe] sm:$0x3] %vm363_vm4, %v4597_v43  ;;  %4345 = vmatpush3.bf16.msra.mxu1 %v5022_v41  ;;  %3848 = vmatprep.mubr.msk.f32.mxu1 %vm4763_vm0, %v4764_v4 }
 0x872   :  { %4346 = vmatprep.subr.bf16.mxu1 %v4761_v1 }
 0x875   :  { %4348 = vmatpush3.bf16.msra.mxu1 %v5025_v47 }
 0x876   :  { %4349 = vmatprep.subr.bf16.mxu1 %v4761_v1 }
 0x879   :  { %4351 = vmatpush3.bf16.msra.mxu1 %v5031_v52 }
 0x87a   :  { %4352 = vmatprep.subr.bf16.mxu1 %v4761_v1 }
 0x87d   :  { %4354 = vmatpush3.bf16.msra.mxu1 %v5034_v54 }
 0x87e   :  { %4367 = vmatprep.subr.bf16.mxu1 %v4761_v1 }
 0x943   :  { %v1261_v44 = vpop.f32.mrb[10].mxu1 }
 0x944   :  { %v1265_v45 = vadd.f32 %v1261_v44, %v1191_v32  ;;  %v3812_v46 = vpop.f32.mrb[11].mxu1 }
 0x946   :  { %4598 = vtanh.f32 %v1265_v45 }
 0x950   :  { %v4599_v48 = vpop.eup %4598 }
 0x951   :  { %1268 = vst.msk [vmem:[#allocation3 + $0x2] sm:$0x3] %vm360_vm3, %v4599_v48  ;;  %3830 = vmatmul.mubr.msk.f32.vlgmr.msra.gmra.mrb[12].mxu0 %vm284_vm5, %v4599_v48 }
 0x952   :  { %1270 = vst.msk [vmem:[#allocation3 + $0xc] sm:$0x3] %vm363_vm4, %v4599_v48  ;;  %4357 = vmatpush3.bf16.msra.mxu0 %v5022_v41  ;;  %3867 = vmatprep.mubr.msk.f32.mxu0 %vm4763_vm0, %v4764_v4 }
 0x953   :  { %4358 = vmatprep.subr.bf16.mxu0 %v4761_v1 }
 0x956   :  { %4360 = vmatpush3.bf16.msra.mxu0 %v5025_v47 }
 0x957   :  { %4361 = vmatprep.subr.bf16.mxu0 %v4761_v1 }
 0x95a   :  { %4363 = vmatpush3.bf16.msra.mxu0 %v5031_v52 }
 0x95b   :  { %4364 = vmatprep.subr.bf16.mxu0 %v4761_v1 }
 0x95e   :  { %4366 = vmatpush3.bf16.msra.mxu0 %v5034_v54 }
 0x95f   :  { %4379 = vmatprep.subr.bf16.mxu0 %v4761_v1 }
 0xa24   :  { %v1341_v49 = vpop.f32.mrb[12].mxu0 }
 0xa25   :  { %v1345_v50 = vadd.f32 %v1341_v49, %v1271_v33  ;;  %v3831_v51 = vpop.f32.mrb[13].mxu0  ;;  %v3291_v33 = vld [vmem:[%s5430_s5 + $0x1] ss:$0 sm:$0xff] }
 0xa27   :  { %4600 = vtanh.f32 %v1345_v50 }
 0xa31   :  { %v4601_v53 = vpop.eup %4600 }
 0xa32   :  { %1348 = vst.msk [vmem:[#allocation3 + $0x4] sm:$0x3] %vm360_vm3, %v4601_v53  ;;  %3849 = vmatmul.mubr.msk.f32.vlgmr.msra.gmra.mrb[12].mxu1 %vm284_vm5, %v4601_v53 }
 0xa33   :  { %1350 = vst.msk [vmem:[#allocation3 + $0xa] sm:$0x3] %vm363_vm4, %v4601_v53  ;;  %4369 = vmatpush3.bf16.msra.mxu1 %v5022_v41  ;;  %3886 = vmatprep.mubr.msk.f32.mxu1 %vm4763_vm0, %v4764_v4 }
 0xa34   :  { %4370 = vmatprep.subr.bf16.mxu1 %v4761_v1 }
 0xa37   :  { %4372 = vmatpush3.bf16.msra.mxu1 %v5025_v47 }
 0xa38   :  { %4373 = vmatprep.subr.bf16.mxu1 %v4761_v1 }
 0xa3b   :  { %4375 = vmatpush3.bf16.msra.mxu1 %v5031_v52 }
 0xa3c   :  { %4376 = vmatprep.subr.bf16.mxu1 %v4761_v1 }
 0xa3f   :  { %4378 = vmatpush3.bf16.msra.mxu1 %v5034_v54 }
 0xa40   :  { %4391 = vmatprep.subr.bf16.mxu1 %v4761_v1 }
 0xb05   :  { %v1421_v55 = vpop.f32.mrb[12].mxu1 }
 0xb06   :  { %v1425_v56 = vadd.f32 %v1421_v55, %v1351_v40  ;;  %v3850_v57 = vpop.f32.mrb[13].mxu1 }
 0xb08   :  { %4602 = vtanh.f32 %v1425_v56 }
 0xb12   :  { %v4603_v58 = vpop.eup %4602 }
 0xb13   :  { %1428 = vst.msk [vmem:[#allocation3 + $0x6] sm:$0x3] %vm360_vm3, %v4603_v58  ;;  %3868 = vmatmul.mubr.msk.f32.vlgmr.msra.gmra.mrb[14].mxu0 %vm284_vm5, %v4603_v58 }
 0xb14   :  { %1430 = vst.msk [vmem:[#allocation3 + $0x8] sm:$0x3] %vm363_vm4, %v4603_v58  ;;  %4381 = vmatpush3.bf16.msra.mxu0 %v5022_v41  ;;  %3905 = vmatprep.mubr.msk.f32.mxu0 %vm4763_vm0, %v4764_v4 }
 0xb15   :  { %4382 = vmatprep.subr.bf16.mxu0 %v4761_v1 }
 0xb18   :  { %4384 = vmatpush3.bf16.msra.mxu0 %v5025_v47 }
 0xb19   :  { %4385 = vmatprep.subr.bf16.mxu0 %v4761_v1 }
 0xb1c   :  { %4387 = vmatpush3.bf16.msra.mxu0 %v5031_v52 }
 0xb1d   :  { %4388 = vmatprep.subr.bf16.mxu0 %v4761_v1 }
 0xb20   :  { %4390 = vmatpush3.bf16.msra.mxu0 %v5034_v54 }
 0xbe6   :  { %v1501_v59 = vpop.f32.mrb[14].mxu0 }
 0xbe7   :  { %v1505_v60 = vadd.f32 %v1501_v59, %v5090_v42  ;;  %v3869_v61 = vpop.f32.mrb[15].mxu0 }
 0xbe9   :  { %4604 = vtanh.f32 %v1505_v60 }
 0xbf3   :  { %v4605_v62 = vpop.eup %4604 }
 0xbf4   :  { %1507 = vst.msk [vmem:[#allocation3 + $0x8] sm:$0x3] %vm360_vm3, %v4605_v62  ;;  %3887 = vmatmul.mubr.msk.f32.vlgmr.msra.gmra.mrb[14].mxu1 %vm284_vm5, %v4605_v62 }
 0xbf5   :  { %1508 = vst.msk [vmem:[#allocation3 + $0x6] sm:$0x3] %vm363_vm4, %v4605_v62  ;;  %4393 = vmatpush3.bf16.msra.mxu1 %v5022_v41  ;;  %3924 = vmatprep.mubr.msk.f32.mxu1 %vm4763_vm0, %v4764_v4  ;;  %v4403_v41 = vpack.c.bf16 %v1745_v2, %v1744_v0 }
 0xbf6   :  { %4394 = vmatprep.subr.bf16.mxu1 %v4761_v1 }
 0xbf7   :  { %4404 = vmatprep.subr.bf16.mxu0 %v4403_v41 }
 0xbf9   :  { %4396 = vmatpush3.bf16.msra.mxu1 %v5025_v47 }
 0xbfa   :  { %4397 = vmatprep.subr.bf16.mxu1 %v4761_v1 }
 0xbfd   :  { %4399 = vmatpush3.bf16.msra.mxu1 %v5031_v52  ;;  %v1775_v52 = vcombine.low %v1757_v3, %v1758_v5 }
 0xbfe   :  { %4400 = vmatprep.subr.bf16.mxu1 %v4761_v1 }
 0xbff   :  { %v1783_v12 = vrot.slane %v1775_v52, %v4878_v10 }
 0xc01   :  { %4402 = vmatpush3.bf16.msra.mxu1 %v5034_v54  ;;  %v1790_v54 = vrot.slane %v1776_v63, %v4878_v10 }
 0xc02   :  { %4419 = vmatprep.subr.bf16.mxu1 %v4761_v1 }
 0xc03   :  { %v1791_v16 = vcombine.low %v1783_v12, %v1790_v54 }
 0xcc7   :  { %v1579_v6 = vpop.f32.mrb[14].mxu1 }
 0xcc8   :  { %v1583_v47 = vadd.f32 %v1579_v6, %v5079_v35  ;;  %v3888_v9 = vpop.f32.mrb[15].mxu1 }
 0xcca   :  { %4606 = vtanh.f32 %v1583_v47 }
 0xcd4   :  { %v4607_v19 = vpop.eup %4606 }
 0xcd5   :  { %1585 = vst.msk [vmem:[#allocation3 + $0xa] sm:$0x3] %vm360_vm3, %v4607_v19  ;;  %3906 = vmatmul.mubr.msk.f32.vlgmr.msra.gmra.mrb[16].mxu0 %vm284_vm5, %v4607_v19 }
 0xcd6   :  { %1586 = vst.msk [vmem:[#allocation3 + $0x4] sm:$0x3] %vm363_vm4, %v4607_v19  ;;  %4406 = vmatpush3.bf16.msra.mxu0 %v4403_v41  ;;  %3931 = vmatprep.mubr.msk.f32.mxu0 %vm158_vm1, %v1791_v16  ;;  %v2383_v16 = vld [vmem:[#allocation11 + $0x40] sm:$0xff]  ;;  %v2385_v19 = vld [vmem:[#allocation11 + $0x50] sm:$0xff] }
 0xcd7   :  { %4407 = vmatprep.subr.bf16.mxu0 %v4761_v1  ;;  %v4479_v18 = vpack.c.bf16 %v2384_v17, %v2383_v16 }
 0xcd9   :  { %3932 = vmatmul.mubr.msk.f32.vlgmr.msra.gmra.mrb[18].mxu0 %vm158_vm1, %v1799_v20  ;;  %v2386_v20 = vld [vmem:[#allocation11 + $0x58] sm:$0xff] }
 0xcda   :  { %4409 = vmatpush3.bf16.msra.mxu0 %v5165_v21  ;;  %3950 = vmatprep.mubr.msk.f32.mxu0 %vm4763_vm0, %v4764_v4  ;;  %v4483_v22 = vpack.c.bf16 %v2386_v20, %v2385_v19 }
 0xcdb   :  { %4410 = vmatprep.subr.bf16.mxu0 %v4761_v1 }
 0xcde   :  { %4412 = vmatpush3.bf16.msra.mxu0 %v5170_v24 }
 0xcdf   :  { %4413 = vmatprep.subr.bf16.mxu0 %v4761_v1 }
 0xce2   :  { %4415 = vmatpush3.bf16.msra.mxu0 %v5176_v27 }
 0xce3   :  { %4416 = vmatprep.subr.bf16.mxu0 %v4761_v1 }
 0xce6   :  { %4418 = vmatpush3.bf16.msra.mxu0 %v5180_v29 }
 0xce7   :  { %4431 = vmatprep.subr.bf16.mxu0 %v4761_v1 }
 0xce9   :  { %3951 = vmatmul.mubr.f32.vlgmr.msra.gmra.mrb[20].mxu0 %v4764_v4 }
 0xcea   :  { %4433 = vmatpush3.bf16.msra.mxu0 %v5165_v21  ;;  %3988 = vmatprep.mubr.msk.f32.mxu0 %vm4763_vm0, %v4764_v4 }
 0xceb   :  { %4434 = vmatprep.subr.bf16.mxu0 %v4761_v1 }
 0xcee   :  { %4436 = vmatpush3.bf16.msra.mxu0 %v5170_v24 }
 0xcef   :  { %4437 = vmatprep.subr.bf16.mxu0 %v4761_v1 }
 0xcf2   :  { %4439 = vmatpush3.bf16.msra.mxu0 %v5176_v27 }
 0xcf3   :  { %4440 = vmatprep.subr.bf16.mxu0 %v4761_v1 }
 0xcf6   :  { %4442 = vmatpush3.bf16.msra.mxu0 %v5180_v29 }
 0xcf7   :  { %4455 = vmatprep.subr.bf16.mxu0 %v4761_v1 }
 0xda8   :  { %v1657_v30 = vpop.f32.mrb[16].mxu0 }
 0xda9   :  { %v1661_v31 = vadd.f32 %v1657_v30, %v5083_v37  ;;  %v3907_v32 = vpop.f32.mrb[17].mxu0  ;;  %v2390_v30 = vld [vmem:[#allocation11 + $0x78] sm:$0xff] }
 0xdab   :  { %4608 = vtanh.f32 %v1661_v31  ;;  %v5282_v31 = vpack.c.bf16 %v2395_v28, %v2394_v25 }
 0xdac   :  { %v3933_v34 = vpop.f32.mrb[18].mxu0 }
 0xdad   :  { %v1876_v35 = vadd.f32 %v3933_v34, %v3291_v33  ;;  %v1870_v36 = vpop.f32.mrb[19].mxu0  ;;  %v2397_v34 = vld [vmem:[#allocation13 + $0xe8] sm:$0xff] }
 0xdae   :  { %v1871_v39 = vadd.f32 %v3291_v33, %v1870_v36  ;;  %v2396_v33 = vld [vmem:[#allocation13 + $0xe0] sm:$0xff]  ;;  %v2398_v36 = vld [vmem:[#allocation13 + $0xf0] sm:$0xff] }
 0xdaf   :  { %v1904_v40 = vrot.slane %v1876_v35, %v4878_v10  ;;  %v5287_v35 = vpack.c.bf16 %v2397_v34, %v2396_v33 }
 0xdb0   :  { %v1881_v42 = vcombine.high %v1871_v39, %v1871_v39  ;;  %v1888_v43 = vrot.slane %v1871_v39, %v4878_v10  ;;  %v2399_v39 = vld [vmem:[#allocation13 + $0xf8] sm:$0xff] }
 0xdb1   :  { %v1905_v44 = vcombine.high %v1904_v40, %v1904_v40 }
 0xdb2   :  { %v1895_v45 = vrot.slane %v1881_v42, %v4878_v10  ;;  %v1896_v46 = vcombine.high %v1888_v43, %v1888_v43 }
 0xdb3   :  { %v1912_v37 = vsel %vm282_vm2, %v1888_v43, %v1905_v44  ;;  %v5205_v48 = vsel %vm282_vm2, %v1905_v44, %v1888_v43 }
 0xdb4   :  { %v1988_v49 = vsel %vm282_vm2, %v1896_v46, %v1904_v40  ;;  %v1897_v50 = vcombine.high %v1895_v45, %v1895_v45  ;;  %v5209_v51 = vsel %vm282_vm2, %v1904_v40, %v1896_v46  ;;  %v5292_v40 = vpack.c.bf16 %v2399_v39, %v2398_v36  ;;  %v3029_v36 = vld [vmem:[#allocation3 + $0x4] sm:$0x3] }
 0xdb5   :  { %v4609_v53 = vpop.eup %4608 }
 0xdb6   :  { %1663 = vst.msk [vmem:[#allocation3 + $0xc] sm:$0x3] %vm360_vm3, %v4609_v53  ;;  %3925 = vmatmul.mubr.msk.f32.vlgmr.msra.gmra.mrb[16].mxu1 %vm284_vm5, %v4609_v53  ;;  %v5215_v55 = vsel %vm282_vm2, %v1897_v50, %v1895_v45 }
 0xdb7   :  { %1664 = vst.msk [vmem:[#allocation3 + $0x2] sm:$0x3] %vm363_vm4, %v4609_v53  ;;  %4421 = vmatpush3.bf16.msra.mxu1 %v5165_v21  ;;  %3969 = vmatprep.mubr.msk.f32.mxu1 %vm4763_vm0, %v4764_v4 }
 0xdb8   :  { %4422 = vmatprep.subr.bf16.mxu1 %v4761_v1 }
 0xdbb   :  { %4424 = vmatpush3.bf16.msra.mxu1 %v5170_v24 }
 0xdbc   :  { %v1979_v56 = vpop.f32.mrb[20].mxu0  ;;  %4425 = vmatprep.subr.bf16.mxu1 %v4761_v1 }
 0xdbd   :  { %v1983_v57 = vadd.f32 %v1979_v56, %v1912_v37  ;;  %v3952_v58 = vpop.f32.mrb[21].mxu0 }
 0xdbe   :  { %v3028_v34 = vld [vmem:[#allocation3 + $0x2] sm:$0x3] }
 0xdbf   :  { %4610 = vtanh.f32 %v1983_v57  ;;  %4427 = vmatpush3.bf16.msra.mxu1 %v5176_v27  ;;  %v3049_v39 = vrot.slane %v3028_v34, 7 }
 0xdc0   :  { %4428 = vmatprep.subr.bf16.mxu1 %v4761_v1 }
 0xdc3   :  { %4430 = vmatpush3.bf16.msra.mxu1 %v5180_v29 }
 0xdc4   :  { %4443 = vmatprep.subr.bf16.mxu1 %v4761_v1 }
 0xdc9   :  { %v4611_v59 = vpop.eup %4610 }
 0xdca   :  { %1985 = vst.msk [vmem:[#allocation4] sm:$0x3] %vm360_vm3, %v4611_v59  ;;  %3970 = vmatmul.mubr.msk.f32.vlgmr.msra.gmra.mrb[18].mxu1 %vm284_vm5, %v4611_v59 }
 0xdcb   :  { %1987 = vst.msk [vmem:[#allocation4 + $0xa] sm:$0x3] %vm363_vm4, %v4611_v59  ;;  %4445 = vmatpush3.bf16.msra.mxu1 %v5165_v21  ;;  %4007 = vmatprep.mubr.msk.f32.mxu1 %vm4763_vm0, %v4764_v4 }
 0xdcc   :  { %4446 = vmatprep.subr.bf16.mxu1 %v4761_v1 }
 0xdcf   :  { %4448 = vmatpush3.bf16.msra.mxu1 %v5170_v24 }
 0xdd0   :  { %4449 = vmatprep.subr.bf16.mxu1 %v4761_v1 }
 0xdd3   :  { %4451 = vmatpush3.bf16.msra.mxu1 %v5176_v27 }
 0xdd4   :  { %4452 = vmatprep.subr.bf16.mxu1 %v4761_v1 }
 0xdd7   :  { %4454 = vmatpush3.bf16.msra.mxu1 %v5180_v29 }
 0xdd8   :  { %4467 = vmatprep.subr.bf16.mxu1 %v4761_v1 }
 0xe89   :  { %v1735_v60 = vpop.f32.mrb[16].mxu1 }
 0xe8a   :  { %v1739_v61 = vadd.f32 %v1735_v60, %v5086_v38  ;;  %v3926_v62 = vpop.f32.mrb[17].mxu1  ;;  %v2068_v38 = vsel %vm282_vm2, %v1895_v45, %v1897_v50 }
 0xe8c   :  { %4612 = vtanh.f32 %v1739_v61 }
 0xe96   :  { %v4613_v0 = vpop.eup %4612 }
 0xe97   :  { %1742 = vst.msk [vmem:[#allocation3] sm:$0x3] %vm363_vm4, %v4613_v0 }
 0xe98   :  { %1741 = vst.msk [vmem:[#allocation3 + $0xe] sm:$0x3] %vm360_vm3, %v4613_v0  ;;  %v3300_v0 = vld [vmem:[%s5430_s5 + $0x3] ss:$0 sm:$0xff] }
 0xe9d   :  { %v2058_v2 = vpop.f32.mrb[18].mxu1 }
 0xe9e   :  { %v2062_v41 = vadd.f32 %v2058_v2, %v1988_v49  ;;  %v3971_v3 = vpop.f32.mrb[19].mxu1 }
 0xea0   :  { %4614 = vtanh.f32 %v2062_v41 }
 0xeaa   :  { %v4615_v5 = vpop.eup %4614 }
 0xeab   :  { %2065 = vst.msk [vmem:[#allocation4 + $0x2] sm:$0x3] %vm360_vm3, %v4615_v5  ;;  %3989 = vmatmul.mubr.msk.f32.vlgmr.msra.gmra.mrb[22].mxu0 %vm284_vm5, %v4615_v5 }
 0xeac   :  { %2067 = vst.msk [vmem:[#allocation4 + $0x8] sm:$0x3] %vm363_vm4, %v4615_v5  ;;  %4457 = vmatpush3.bf16.msra.mxu0 %v5165_v21  ;;  %4026 = vmatprep.mubr.msk.f32.mxu0 %vm4763_vm0, %v4764_v4 }
 0xead   :  { %4458 = vmatprep.subr.bf16.mxu0 %v4761_v1 }
 0xeb0   :  { %4460 = vmatpush3.bf16.msra.mxu0 %v5170_v24 }
 0xeb1   :  { %4461 = vmatprep.subr.bf16.mxu0 %v4761_v1 }
 0xeb4   :  { %4463 = vmatpush3.bf16.msra.mxu0 %v5176_v27 }
 0xeb5   :  { %4464 = vmatprep.subr.bf16.mxu0 %v4761_v1 }
 0xeb8   :  { %4466 = vmatpush3.bf16.msra.mxu0 %v5180_v29 }
 0xeb9   :  { %4480 = vmatprep.subr.bf16.mxu0 %v4479_v18 }
 0xf7e   :  { %v2138_v6 = vpop.f32.mrb[22].mxu0 }
 0xf7f   :  { %v2142_v7 = vadd.f32 %v2138_v6, %v2068_v38  ;;  %v3990_v8 = vpop.f32.mrb[23].mxu0 }
 0xf81   :  { %4616 = vtanh.f32 %v2142_v7 }
 0xf8b   :  { %v4617_v47 = vpop.eup %4616 }
 0xf8c   :  { %2145 = vst.msk [vmem:[#allocation4 + $0x4] sm:$0x3] %vm360_vm3, %v4617_v47  ;;  %4008 = vmatmul.mubr.msk.f32.vlgmr.msra.gmra.mrb[20].mxu1 %vm284_vm5, %v4617_v47 }
 0xf8d   :  { %2147 = vst.msk [vmem:[#allocation4 + $0x6] sm:$0x3] %vm363_vm4, %v4617_v47  ;;  %4469 = vmatpush3.bf16.msra.mxu1 %v5165_v21  ;;  %4045 = vmatprep.mubr.msk.f32.mxu1 %vm4763_vm0, %v4764_v4  ;;  %v2392_v21 = vld [vmem:[#allocation13 + $0xc0] sm:$0xff] }
 0xf8e   :  { %4470 = vmatprep.subr.bf16.mxu1 %v4761_v1  ;;  %v5279_v26 = vpack.c.bf16 %v2393_v23, %v2392_v21 }
 0xf91   :  { %4472 = vmatpush3.bf16.msra.mxu1 %v5170_v24  ;;  %v2387_v24 = vld [vmem:[#allocation11 + $0x60] sm:$0xff] }
 0xf92   :  { %4473 = vmatprep.subr.bf16.mxu1 %v4761_v1 }
 0xf95   :  { %4475 = vmatpush3.bf16.msra.mxu1 %v5176_v27  ;;  %v4487_v27 = vpack.c.bf16 %v2388_v11, %v2387_v24 }
 0xf96   :  { %4476 = vmatprep.subr.bf16.mxu1 %v4761_v1 }
 0xf99   :  { %4478 = vmatpush3.bf16.msra.mxu1 %v5180_v29  ;;  %v2389_v29 = vld [vmem:[#allocation11 + $0x70] sm:$0xff] }
 0xf9a   :  { %4495 = vmatprep.subr.bf16.mxu1 %v4761_v1  ;;  %v4491_v32 = vpack.c.bf16 %v2390_v30, %v2389_v29 }
0x105f   :  { %v2218_v9 = vpop.f32.mrb[20].mxu1 }
0x1060   :  { %v2222_v52 = vadd.f32 %v2218_v9, %v5215_v55  ;;  %v4009_v63 = vpop.f32.mrb[21].mxu1 }
0x1062   :  { %4618 = vtanh.f32 %v2222_v52 }
0x106c   :  { %v4619_v12 = vpop.eup %4618 }
0x106d   :  { %2224 = vst.msk [vmem:[#allocation4 + $0x6] sm:$0x3] %vm360_vm3, %v4619_v12  ;;  %4027 = vmatmul.mubr.msk.f32.vlgmr.msra.gmra.mrb[24].mxu0 %vm284_vm5, %v4619_v12 }
0x106e   :  { %2225 = vst.msk [vmem:[#allocation4 + $0x4] sm:$0x3] %vm363_vm4, %v4619_v12  ;;  %4482 = vmatpush3.bf16.msra.mxu0 %v4479_v18 }
0x106f   :  { %4484 = vmatprep.subr.bf16.mxu0 %v4483_v22 }
0x1072   :  { %4486 = vmatpush3.bf16.msra.mxu0 %v4483_v22 }
0x1073   :  { %4488 = vmatprep.subr.bf16.mxu0 %v4487_v27 }
0x1074   :  { %v2405_v37 = vld [vmem:[#allocation4 + $0x6] sm:$0x3] }
0x1075   :  { %v2404_v46 = vld [vmem:[#allocation4 + $0x4] sm:$0x3] }
0x1076   :  { %4490 = vmatpush3.bf16.msra.mxu0 %v4487_v27  ;;  %v2421_v49 = vcombine.low %v2404_v46, %v2405_v37  ;;  %v3031_v46 = vld [vmem:[#allocation3 + $0x8] sm:$0x3] }
0x1077   :  { %4492 = vmatprep.subr.bf16.mxu0 %v4491_v32 }
0x107a   :  { %4494 = vmatpush3.bf16.msra.mxu0 %v4491_v32 }
0x107b   :  { %4507 = vmatprep.subr.bf16.mxu0 %v4761_v1 }
0x1140   :  { %v2296_v54 = vpop.f32.mrb[24].mxu0 }
0x1141   :  { %v2300_v13 = vadd.f32 %v2296_v54, %v5209_v51  ;;  %v4028_v14 = vpop.f32.mrb[25].mxu0 }
0x1143   :  { %4620 = vtanh.f32 %v2300_v13 }
0x114d   :  { %v4621_v15 = vpop.eup %4620 }
0x114e   :  { %2302 = vst.msk [vmem:[#allocation4 + $0x8] sm:$0x3] %vm360_vm3, %v4621_v15  ;;  %4046 = vmatmul.mubr.msk.f32.vlgmr.msra.gmra.mrb[22].mxu1 %vm284_vm5, %v4621_v15 }
0x114f   :  { %2303 = vst.msk [vmem:[#allocation4 + $0x2] sm:$0x3] %vm363_vm4, %v4621_v15  ;;  %4083 = vmatprep.mubr.msk.f32.mxu1 %vm4763_vm0, %v4764_v4  ;;  %4497 = vmatpush3.bf16.msra.mxu1 %v5279_v26 }
0x1150   :  { %4498 = vmatprep.subr.bf16.mxu1 %v4761_v1 }
0x1153   :  { %4500 = vmatpush3.bf16.msra.mxu1 %v5282_v31 }
0x1154   :  { %4501 = vmatprep.subr.bf16.mxu1 %v4761_v1 }
0x1155   :  { %v2406_v56 = vld [vmem:[#allocation4 + $0x8] sm:$0x3] }
0x1156   :  { %v2403_v51 = vld [vmem:[#allocation4 + $0x2] sm:$0x3] }
0x1157   :  { %4503 = vmatpush3.bf16.msra.mxu1 %v5287_v35 }
0x1158   :  { %4504 = vmatprep.subr.bf16.mxu1 %v4761_v1 }
0x115b   :  { %4506 = vmatpush3.bf16.msra.mxu1 %v5292_v40 }
0x115c   :  { %4519 = vmatprep.subr.bf16.mxu1 %v4761_v1 }
0x115e   :  { %4084 = vmatmul.mubr.f32.vlgmr.msra.gmra.mrb[24].mxu1 %v4764_v4 }
0x115f   :  { %4521 = vmatpush3.bf16.msra.mxu1 %v5279_v26  ;;  %4121 = vmatprep.mubr.msk.f32.mxu1 %vm4763_vm0, %v4764_v4 }
0x1160   :  { %4522 = vmatprep.subr.bf16.mxu1 %v4761_v1 }
0x1163   :  { %4524 = vmatpush3.bf16.msra.mxu1 %v5282_v31 }
0x1164   :  { %4525 = vmatprep.subr.bf16.mxu1 %v4761_v1 }
0x1167   :  { %4527 = vmatpush3.bf16.msra.mxu1 %v5287_v35 }
0x1168   :  { %4528 = vmatprep.subr.bf16.mxu1 %v4761_v1 }
0x116b   :  { %4530 = vmatpush3.bf16.msra.mxu1 %v5292_v40 }
0x116c   :  { %4543 = vmatprep.subr.bf16.mxu1 %v4761_v1 }
0x1221   :  { %v2374_v42 = vpop.f32.mrb[22].mxu1 }
0x1222   :  { %v2378_v43 = vadd.f32 %v2374_v42, %v5205_v48  ;;  %v4047_v44 = vpop.f32.mrb[23].mxu1  ;;  %v2435_v48 = vrot.slane %v2421_v49, %v4878_v10 }
0x1223   :  { %v3052_v44 = vrot.slane %v3029_v36, 6 }
0x1224   :  { %4622 = vtanh.f32 %v2378_v43  ;;  %v3030_v43 = vld [vmem:[#allocation3 + $0x6] sm:$0x3] }
0x1225   :  { %v3055_v49 = vrot.slane %v3030_v43, 5 }
0x122e   :  { %v4623_v45 = vpop.eup %4622 }
0x122f   :  { %2380 = vst.msk [vmem:[#allocation4 + $0xa] sm:$0x3] %vm360_vm3, %v4623_v45 }
0x1230   :  { %2381 = vst.msk [vmem:[#allocation4] sm:$0x3] %vm363_vm4, %v4623_v45 }
0x1231   :  { %v2624_v61 = vpop.f32.mrb[24].mxu1 }
0x1232   :  { %v4085_v62 = vpop.f32.mrb[25].mxu1 }
0x1236   :  { %v2407_v53 = vld [vmem:[#allocation4 + $0xa] sm:$0x3] }
0x1237   :  { %v2402_v50 = vld [vmem:[#allocation4] sm:$0x3]  ;;  %v2437_v57 = vcombine.low %v2406_v56, %v2407_v53 }
0x1238   :  { %v2420_v55 = vcombine.low %v2402_v50, %v2403_v51  ;;  %v3164_v51 = vrot.slane %v3029_v36, 7 }
0x1239   :  { %v2444_v60 = vrot.slane %v2437_v57, %v4878_v10  ;;  %v3032_v57 = vld [vmem:[#allocation3 + $0xa] sm:$0x3] }
0x123a   :  { %v2428_v58 = vrot.slane %v2420_v55, %v4878_v10  ;;  %v3058_v55 = vrot.slane %v3031_v46, 4 }
0x123c   :  { %v2436_v59 = vcombine.low %v2428_v58, %v2435_v48  ;;  %v3033_v58 = vld [vmem:[#allocation3 + $0xc] sm:$0x3] }
0x123e   :  { %4064 = vmatprep.mubr.msk.f32.mxu0 %vm284_vm5, %v2436_v59 }
0x123f   :  { %4065 = vmatmul.mubr.msk.f32.vlgmr.msra.gmra.mrb[26].mxu0 %vm284_vm5, %v2444_v60  ;;  %v3166_v60 = vrot.slane %v3030_v43, 6 }
0x1240   :  { %4509 = vmatpush3.bf16.msra.mxu0 %v5279_v26  ;;  %4102 = vmatprep.mubr.msk.f32.mxu0 %vm4763_vm0, %v4764_v4 }
0x1241   :  { %4510 = vmatprep.subr.bf16.mxu0 %v4761_v1 }
0x1244   :  { %4512 = vmatpush3.bf16.msra.mxu0 %v5282_v31 }
0x1245   :  { %4513 = vmatprep.subr.bf16.mxu0 %v4761_v1 }
0x1248   :  { %4515 = vmatpush3.bf16.msra.mxu0 %v5287_v35 }
0x1249   :  { %4516 = vmatprep.subr.bf16.mxu0 %v4761_v1 }
0x124c   :  { %4518 = vmatpush3.bf16.msra.mxu0 %v5292_v40 }
0x124d   :  { %4531 = vmatprep.subr.bf16.mxu0 %v4761_v1 }
0x1312   :  { %v4066_v2 = vpop.f32.mrb[26].mxu0 }
0x1313   :  { %v2521_v41 = vadd.f32 %v4066_v2, %v3300_v0  ;;  %v2515_v3 = vpop.f32.mrb[27].mxu0 }
0x1314   :  { %v2516_v5 = vadd.f32 %v3300_v0, %v2515_v3  ;;  %v3168_v0 = vrot.slane %v3031_v46, 5  ;;  %v3061_v3 = vrot.slane %v3032_v57, 3 }
0x1315   :  { %v2549_v38 = vrot.slane %v2521_v41, %v4878_v10 }
0x1316   :  { %v2526_v6 = vcombine.high %v2516_v5, %v2516_v5  ;;  %v2533_v7 = vrot.slane %v2516_v5, %v4878_v10  ;;  %v3064_v5 = vrot.slane %v3033_v58, 2 }
0x1317   :  { %v2550_v8 = vcombine.high %v2549_v38, %v2549_v38 }
0x1318   :  { %v2540_v47 = vrot.slane %v2526_v6, %v4878_v10  ;;  %v2541_v9 = vcombine.high %v2533_v7, %v2533_v7 }
0x1319   :  { %v2557_v52 = vsel %vm282_vm2, %v2533_v7, %v2550_v8  ;;  %v5333_v63 = vsel %vm282_vm2, %v2550_v8, %v2533_v7 }
0x131a   :  { %v2628_v12 = vadd.f32 %v2624_v61, %v2557_v52  ;;  %v2633_v54 = vsel %vm282_vm2, %v2541_v9, %v2549_v38  ;;  %v2542_v13 = vcombine.high %v2540_v47, %v2540_v47  ;;  %v2871_v14 = vsel %vm282_vm2, %v2549_v38, %v2541_v9 }
0x131c   :  { %4624 = vtanh.f32 %v2628_v12  ;;  %v2793_v15 = vsel %vm282_vm2, %v2542_v13, %v2540_v47  ;;  %v2713_v20 = vsel %vm282_vm2, %v2540_v47, %v2542_v13 }
0x1326   :  { %v4625_v16 = vpop.eup %4624 }
0x1327   :  { %2630 = vst.msk [vmem:[#allocation5] sm:$0x3] %vm360_vm3, %v4625_v16  ;;  %4103 = vmatmul.mubr.msk.f32.vlgmr.msra.gmra.mrb[28].mxu0 %vm284_vm5, %v4625_v16 }
0x1328   :  { %2632 = vst.msk [vmem:[#allocation5 + $0xa] sm:$0x3] %vm363_vm4, %v4625_v16  ;;  %4533 = vmatpush3.bf16.msra.mxu0 %v5279_v26  ;;  %4140 = vmatprep.mubr.msk.f32.mxu0 %vm4763_vm0, %v4764_v4 }
0x1329   :  { %4534 = vmatprep.subr.bf16.mxu0 %v4761_v1 }
0x132c   :  { %4536 = vmatpush3.bf16.msra.mxu0 %v5282_v31 }
0x132d   :  { %4537 = vmatprep.subr.bf16.mxu0 %v4761_v1 }
0x1330   :  { %4539 = vmatpush3.bf16.msra.mxu0 %v5287_v35 }
0x1331   :  { %4540 = vmatprep.subr.bf16.mxu0 %v4761_v1 }
0x1334   :  { %4542 = vmatpush3.bf16.msra.mxu0 %v5292_v40 }
0x1335   :  { %4555 = vmatprep.subr.bf16.mxu0 %v4761_v1 }
0x13fa   :  { %v2703_v10 = vpop.f32.mrb[28].mxu0 }
0x13fb   :  { %v2707_v17 = vadd.f32 %v2703_v10, %v2633_v54  ;;  %v4104_v18 = vpop.f32.mrb[29].mxu0  ;;  %v3034_v10 = vld [vmem:[#allocation3 + $0xe] sm:$0x3] }
0x13fd   :  { %4626 = vtanh.f32 %v2707_v17 }
0x1407   :  { %v4627_v19 = vpop.eup %4626 }
0x1408   :  { %2710 = vst.msk [vmem:[#allocation5 + $0x2] sm:$0x3] %vm360_vm3, %v4627_v19  ;;  %4122 = vmatmul.mubr.msk.f32.vlgmr.msra.gmra.mrb[26].mxu1 %vm284_vm5, %v4627_v19 }
0x1409   :  { %2712 = vst.msk [vmem:[#allocation5 + $0x8] sm:$0x3] %vm363_vm4, %v4627_v19  ;;  %4545 = vmatpush3.bf16.msra.mxu1 %v5279_v26  ;;  %4159 = vmatprep.mubr.msk.f32.mxu1 %vm4763_vm0, %v4764_v4 }
0x140a   :  { %4546 = vmatprep.subr.bf16.mxu1 %v4761_v1 }
0x140d   :  { %4548 = vmatpush3.bf16.msra.mxu1 %v5282_v31 }
0x140e   :  { %4549 = vmatprep.subr.bf16.mxu1 %v4761_v1 }
0x1411   :  { %4551 = vmatpush3.bf16.msra.mxu1 %v5287_v35 }
0x1412   :  { %4552 = vmatprep.subr.bf16.mxu1 %v4761_v1 }
0x1415   :  { %4554 = vmatpush3.bf16.msra.mxu1 %v5292_v40 }
0x1416   :  { %4181 = vmatprep.subr.mxu1 %v4764_v4 }
0x14db   :  { %v2783_v21 = vpop.f32.mrb[26].mxu1 }
0x14dc   :  { %v2787_v22 = vadd.f32 %v2783_v21, %v2713_v20  ;;  %v4123_v23 = vpop.f32.mrb[27].mxu1 }
0x14de   :  { %4628 = vtanh.f32 %v2787_v22  ;;  %v3170_v22 = vrot.slane %v3032_v57, 4 }
0x14e8   :  { %v4629_v24 = vpop.eup %4628 }
0x14e9   :  { %2790 = vst.msk [vmem:[#allocation5 + $0x4] sm:$0x3] %vm360_vm3, %v4629_v24  ;;  %4141 = vmatmul.mubr.msk.f32.vlgmr.msra.gmra.mrb[30].mxu0 %vm284_vm5, %v4629_v24 }
0x14ea   :  { %2792 = vst.msk [vmem:[#allocation5 + $0x6] sm:$0x3] %vm363_vm4, %v4629_v24  ;;  %4557 = vmatpush3.bf16.msra.mxu0 %v5279_v26  ;;  %4178 = vmatprep.mubr.msk.f32.mxu0 %vm4763_vm0, %v4764_v4 }
0x14eb   :  { %4558 = vmatprep.subr.bf16.mxu0 %v4761_v1 }
0x14ee   :  { %4560 = vmatpush3.bf16.msra.mxu0 %v5282_v31 }
0x14ef   :  { %4561 = vmatprep.subr.bf16.mxu0 %v4761_v1 }
0x14f2   :  { %4563 = vmatpush3.bf16.msra.mxu0 %v5287_v35  ;;  %v3027_v35 = vld [vmem:[#allocation3] sm:$0x3] }
0x14f3   :  { %4564 = vmatprep.subr.bf16.mxu0 %v4761_v1  ;;  %v3162_v42 = vrot.slane %v3027_v35, 1 }
0x14f5   :  { %v3163_v50 = vsel %vm3050_vm6, %v3028_v34, %v3162_v42 }
0x14f6   :  { %4566 = vmatpush3.bf16.msra.mxu0 %v5292_v40  ;;  %v3051_v40 = vsel %vm3050_vm6, %v3049_v39, %v3027_v35  ;;  %v3165_v48 = vsel %vm3053_vm7, %v3164_v51, %v3163_v50 }
0x14f7   :  { %v3054_v37 = vsel %vm3053_vm7, %v3052_v44, %v3051_v40  ;;  %v3167_v38 = vsel %vm3056_vm8, %v3166_v60, %v3165_v48 }
0x14f8   :  { %v3057_v53 = vsel %vm3056_vm8, %v3055_v49, %v3054_v37 }
0x14f9   :  { %v3060_v62 = vsel %vm3059_vm9, %v3058_v55, %v3057_v53 }
0x15bc   :  { %v2863_v11 = vpop.f32.mrb[30].mxu0 }
0x15bd   :  { %v2867_v27 = vadd.f32 %v2863_v11, %v2793_v15  ;;  %v4142_v25 = vpop.f32.mrb[31].mxu0 }
0x15bf   :  { %4630 = vtanh.f32 %v2867_v27  ;;  %v3067_v27 = vrot.slane %v3034_v10, 1 }
0x15c9   :  { %v4631_v26 = vpop.eup %4630 }
0x15ca   :  { %2869 = vst.msk [vmem:[#allocation5 + $0x6] sm:$0x3] %vm360_vm3, %v4631_v26  ;;  %4160 = vmatmul.mubr.msk.f32.vlgmr.msra.gmra.mrb[28].mxu1 %vm284_vm5, %v4631_v26 }
0x15cb   :  { %2870 = vst.msk [vmem:[#allocation5 + $0x4] sm:$0x3] %vm363_vm4, %v4631_v26  ;;  %4183 = vmatprep.mubr.msk.f32.mxu1 %vm4763_vm0, %v4764_v4 }
0x15d1   :  { %v3038_v61 = vld [vmem:[#allocation5 + $0x6] sm:$0x3] }
0x15d2   :  { %v3037_v59 = vld [vmem:[#allocation5 + $0x4] sm:$0x3]  ;;  %v3080_v9 = vrot.slane %v3038_v61, 5  ;;  %v3180_v18 = vrot.slane %v3038_v61, 6 }
0x15d3   :  { %v3078_v8 = vrot.slane %v3037_v59, 6  ;;  %v3178_v13 = vrot.slane %v3037_v59, 7 }
0x169d   :  { %v2941_v28 = vpop.f32.mrb[28].mxu1 }
0x169e   :  { %v2945_v29 = vadd.f32 %v2941_v28, %v2871_v14  ;;  %v4161_v30 = vpop.f32.mrb[29].mxu1  ;;  %v3169_v14 = vsel %vm3059_vm9, %v3168_v0, %v3167_v38 }
0x169f   :  { %v3171_v26 = vsel %vm3062_vm10, %v3170_v22, %v3169_v14 }
0x16a0   :  { %4632 = vtanh.f32 %v2945_v29  ;;  %v3172_v29 = vrot.slane %v3033_v58, 3 }
0x16aa   :  { %v4633_v1 = vpop.eup %4632 }
0x16ab   :  { %2947 = vst.msk [vmem:[#allocation5 + $0x8] sm:$0x3] %vm360_vm3, %v4633_v1  ;;  %4179 = vmatmul.mubr.msk.f32.vlgmr.msra.gmra.mrb[32].mxu0 %vm284_vm5, %v4633_v1 }
0x16ac   :  { %2948 = vst.msk [vmem:[#allocation5 + $0x2] sm:$0x3] %vm363_vm4, %v4633_v1 }
0x16b2   :  { %v3039_v2 = vld [vmem:[#allocation5 + $0x8] sm:$0x3] }
0x16b3   :  { %v3036_v56 = vld [vmem:[#allocation5 + $0x2] sm:$0x3]  ;;  %v3082_v54 = vrot.slane %v3039_v2, 4  ;;  %v3182_v21 = vrot.slane %v3039_v2, 5 }
0x16b4   :  { %v3076_v41 = vrot.slane %v3036_v56, 7 }
0x177e   :  { %v3019_v31 = vpop.f32.mrb[32].mxu0 }
0x177f   :  { %v3023_v32 = vadd.f32 %v3019_v31, %v5333_v63  ;;  %v4180_v33 = vpop.f32.mrb[33].mxu0  ;;  %v3063_v63 = vsel %vm3062_vm10, %v3061_v3, %v3060_v62  ;;  %v3173_v31 = vsel %vm3065_vm11, %v3172_v29, %v3171_v26 }
0x1780   :  { %v3066_v24 = vsel %vm3065_vm11, %v3064_v5, %v3063_v63 }
0x1781   :  { %4634 = vtanh.f32 %v3023_v32  ;;  %v3069_v30 = vsel %vm3068_vm12, %v3067_v27, %v3066_v24  ;;  %v3174_v32 = vrot.slane %v3034_v10, 2 }
0x1783   :  { %v3175_v33 = vsel %vm3068_vm12, %v3174_v32, %v3173_v31 }
0x178b   :  { %v4635_v45 = vpop.eup %4634 }
0x178c   :  { %3026 = vst.msk [vmem:[#allocation5] sm:$0x3] %vm363_vm4, %v4635_v45 }
0x178d   :  { %3025 = vst.msk [vmem:[#allocation5 + $0xa] sm:$0x3] %vm360_vm3, %v4635_v45 }
0x1793   :  { %v3035_v6 = vld [vmem:[#allocation5] sm:$0x3] }
0x1794   :  { %v3040_v7 = vld [vmem:[#allocation5 + $0xa] sm:$0x3]  ;;  %v3077_v47 = vsel %vm3050_vm6, %v3076_v41, %v3035_v6  ;;  %v3176_v52 = vrot.slane %v3035_v6, 1 }
0x1795   :  { %v3079_v12 = vsel %vm3053_vm7, %v3078_v8, %v3077_v47  ;;  %v3084_v16 = vrot.slane %v3040_v7, 3  ;;  %v3184_v28 = vrot.slane %v3040_v7, 4 }
0x1796   :  { %v3081_v15 = vsel %vm3056_vm8, %v3080_v9, %v3079_v12  ;;  %v3177_v17 = vsel %vm3050_vm6, %v3036_v56, %v3176_v52 }
0x1797   :  { %v3083_v19 = vsel %vm3059_vm9, %v3082_v54, %v3081_v15  ;;  %v3179_v20 = vsel %vm3053_vm7, %v3178_v13, %v3177_v17 }
0x1798   :  { %v3085_v23 = vsel %vm3062_vm10, %v3084_v16, %v3083_v19  ;;  %v3181_v11 = vsel %vm3056_vm8, %v3180_v18, %v3179_v20 }
0x1799   :  { %4182 = vmatpush3.xpose.msk.msra.mxu1 %vm284_vm5, %v3085_v23  ;;  %v3183_v25 = vsel %vm3059_vm9, %v3182_v21, %v3181_v11 }
0x179a   :  { %4186 = vmatprep.subr.mxu1 %v4764_v4  ;;  %v3185_v1 = vsel %vm3062_vm10, %v3184_v28, %v3183_v25 }
0x179c   :  { %4184 = vmatmul.mubr.msk.f32.vlgmr.msra.gmra.mrb[30].mxu1 %vm284_vm5, %v3069_v30 }
0x179d   :  { %4187 = vmatpush3.xpose.msk.msra.mxu1 %vm284_vm5, %v3185_v1  ;;  %4188 = vmatprep.mubr.msk.f32.mxu1 %vm4763_vm0, %v4764_v4 }
0x17a0   :  { %4189 = vmatmul.mubr.msk.f32.vlgmr.msra.gmra.mrb[32].mxu1 %vm284_vm5, %v3175_v33 }
0x186f   :  { %v3156_v34 = vpop.f32.mrb[30].mxu1 }
0x1870   :  { %3161 = vst.msk [vmem:[%s5431_s6] sm:$0xff] %vm3160_vm13, %v3156_v34  ;;  %v4185_v35 = vpop.f32.mrb[31].mxu1 }
0x1873   :  { %v3256_v36 = vpop.f32.mrb[32].mxu1 }
0x1874   :  { %3312 = vst.msk [vmem:[%s5431_s6 + $0x8] sm:$0xff] %vm3160_vm13, %v3256_v36  ;;  %v4190_v39 = vpop.f32.mrb[33].mxu1 }
0x1875   :  { %3266 = vsyncpa [#allocation7], 1 }
0x1876   :  { %3267 = vsyncpa [#allocation9], 1 }
0x1877   :  { %3268 = vsyncpa [#allocation12], 1 }

</bundles_post_ra>
